<compile_context>
chip_gen: v7x
topology: tpu7x:2x2x1
jax: 0.10.0
libtpu: 0.0.40
codegen_flags: <defaults>
</compile_context>

<pallas_src>
import jax
import jax.numpy as jnp
from jax.experimental import pallas as pl
from jax.experimental.pallas import tpu as pltpu

NEG_BIG = -1e30  # finite "-inf" for padded vocab columns (avoids 0*inf -> NaN)


# ----------------------------------------------------------------------------
# One LSTM step with gate-fused weights (PyTorch gate order i, f, g, o).
#   gates_x : (B, 4H) precomputed x_t @ W_ih + b  (already off the serial chain)
#   w_hh    : (H, 4H) recurrent weight value (loaded at point of use)
# ----------------------------------------------------------------------------
def _lstm_step(gates_x, h, c, w_hh, hidden):
    g = gates_x + jnp.dot(h, w_hh, preferred_element_type=jnp.float32)   # (B, 4H)
    i = jax.nn.sigmoid(g[:, :hidden])
    f = jax.nn.sigmoid(g[:, hidden:2 * hidden])
    z = jnp.tanh(g[:, 2 * hidden:3 * hidden])
    o = jax.nn.sigmoid(g[:, 3 * hidden:])
    c_new = f * c + i * z
    h_new = o * jnp.tanh(c_new)
    return h_new, c_new


# ----------------------------------------------------------------------------
# Fused kernel: bidirectional encoder + decoder (teacher forcing) + projection
# + cross-entropy, single invocation, everything resident in VMEM.
# ----------------------------------------------------------------------------
def seq2seq_kernel(x_ref, y_ref, onehot_ref,
                   enc_wih_ref, enc_whh_ref, enc_b_ref,
                   dec_wih_ref, dec_whh_ref, dec_b_ref,
                   wproj_ref, bproj_ref,
                   logits_ref, loss_ref,
                   h0_scr, c0_scr, h_scr):
    TsB = x_ref.shape[0]          # Ts * B (time-major rows)
    TdB = y_ref.shape[0]          # Td * B
    H = enc_whh_ref.shape[1]
    Hd = dec_whh_ref.shape[0]
    B = h0_scr.shape[0]
    Ts = TsB // B
    Td = TdB // B

    # ---------------- encoder ----------------
    # Batched input projection for ALL timesteps (one MXU call per direction);
    # bias folded in here so only h.W_hh remains inside the recurrence.
    xg_f = (jnp.dot(x_ref[...], enc_wih_ref[0], preferred_element_type=jnp.float32)
            + enc_b_ref[0])                                            # (Ts*B, 4H)
    xg_b = (jnp.dot(x_ref[...], enc_wih_ref[1], preferred_element_type=jnp.float32)
            + enc_b_ref[1])                                            # (Ts*B, 4H)

    z0 = jnp.zeros((B, H), jnp.float32)
    h_f, c_f, h_b, c_b = z0, z0, z0, z0
    # Fully unrolled; fwd & bwd directions fused so the backward pass indexes the
    # reversed timestep directly (no flipped HBM copy). Recurrent weights are
    # read from their refs at point of use (rides a vld slot next to the matmul).
    for t in range(Ts):
        h_f, c_f = _lstm_step(xg_f[t * B:(t + 1) * B, :], h_f, c_f,
                              enc_whh_ref[0], H)
        tb = Ts - 1 - t
        h_b, c_b = _lstm_step(xg_b[tb * B:(tb + 1) * B, :], h_b, c_b,
                              enc_whh_ref[1], H)

    # Decoder initial state = concat(fwd, bwd) final states, assembled with two
    # tiny lane-slice stores into VMEM scratch (stays on chip, never hits HBM).
    h0_scr[:, :H] = h_f
    h0_scr[:, H:] = h_b
    c0_scr[:, :H] = c_f
    c0_scr[:, H:] = c_b

    # ---------------- decoder (full teacher forcing) ----------------
    yg = (jnp.dot(y_ref[...], dec_wih_ref[...], preferred_element_type=jnp.float32)
          + dec_b_ref[...])                                            # (Td*B, 4Hd)

    h, c = h0_scr[...], c0_scr[...]
    for t in range(Td):
        h, c = _lstm_step(yg[t * B:(t + 1) * B, :], h, c, dec_whh_ref[...], Hd)
        h_scr[t * B:(t + 1) * B, :] = h      # stash h_t; projection is after the loop

    # ---- vocab projection + CE, hoisted out of the recurrence (one MXU call) ----
    logits = (jnp.dot(h_scr[...], wproj_ref[...], preferred_element_type=jnp.float32)
              + bproj_ref[...])                                        # (Td*B, Vpad)
    logits_ref[...] = logits                 # single bulk lane-dense store

    m = jnp.max(logits, axis=-1, keepdims=True)          # pad cols are -1e30 -> ignored
    lse = m + jnp.log(jnp.sum(jnp.exp(logits - m), axis=-1, keepdims=True))
    tgt = jnp.sum(onehot_ref[...] * logits, axis=-1, keepdims=True)
    loss_ref[...] = jnp.sum(lse - tgt, axis=0, keepdims=True) / TdB    # mean CE


def run_seq2seq(x2, y2, onehot, params, batch_size):
    TdB, Vp = onehot.shape
    Hd = params["dec_w_hh"].shape[0]
    return pl.pallas_call(
        seq2seq_kernel,
        out_shape=(
            jax.ShapeDtypeStruct((TdB, Vp), jnp.float32),   # padded logits, time-major rows
            jax.ShapeDtypeStruct((1, 1), jnp.float32),      # mean CE loss
        ),
        scratch_shapes=[
            pltpu.VMEM((batch_size, Hd), jnp.float32),      # h0 = [h_fwd | h_bwd]
            pltpu.VMEM((batch_size, Hd), jnp.float32),      # c0 = [c_fwd | c_bwd]
            pltpu.VMEM((TdB, Hd), jnp.float32),             # decoder hidden states
        ],
    )(x2, y2, onehot,
      params["enc_w_ih"], params["enc_w_hh"], params["enc_b"],
      params["dec_w_ih"], params["dec_w_hh"], params["dec_b"],
      params["proj_w"], params["proj_b"])


# ----------------------------------------------------------------------------
# Full forward pass. Wrapper only does embedding gathers, label one-hot and
# tiny layout fix-ups / argmax (a few KB of XLA layout plumbing).
# ----------------------------------------------------------------------------
@jax.jit
def seq2seq_forward(params, src_ids, label_ids):
    B, Td = label_ids.shape
    emb = params["embedding"]
    E = emb.shape[1]
    V = emb.shape[0]
    Vp = params["proj_w"].shape[1]

    # Encoder inputs: embeddings gathered time-major and flattened to the
    # (T*B, E) slab consumed by the kernel's batched input projection.
    x2 = jnp.take(emb, src_ids.T, axis=0).reshape(-1, E)

    # Decoder inputs: gold labels shifted right (start id = 0), teacher forcing.
    start = jnp.zeros((B, 1), label_ids.dtype)
    dec_in = jnp.concatenate([start, label_ids[:, :-1]], axis=1)
    y2 = jnp.take(emb, dec_in.T, axis=0).reshape(-1, E)

    # Targets as a one-hot slab over the padded vocab (pad columns all-zero),
    # time-major to match the kernel's (t, b) row order.
    onehot = jax.nn.one_hot(label_ids.T.reshape(-1), Vp, dtype=jnp.float32)

    logits_flat, loss = run_seq2seq(x2, y2, onehot, params, B)

    dec_output = jnp.transpose(logits_flat.reshape(Td, B, Vp), (1, 0, 2))[:, :, :V]
    preds = jnp.argmax(dec_output, axis=-1).astype(jnp.int32)   # == topk(k=1) indices

    return {
        "predicted_probs_tokens": dec_output,    # [B, T, num_classes] raw logits
        "predicted_tags_tokens": preds,          # [B, T] int32
        "loss": loss[0, 0],
    }


# ----------------------------------------------------------------------------
# Deterministic parameter init (gate-fused weight layout, padded projection)
# ----------------------------------------------------------------------------
def init_params(key, vocab, emb, enc_h, dec_h, vocab_pad):
    ks = jax.random.split(key, 6)
    s = lambda k, shape, scale: jax.random.normal(k, shape, jnp.float32) * scale
    proj_w = jnp.pad(s(ks[5], (dec_h, vocab), 1.0 / jnp.sqrt(dec_h)),
                     ((0, 0), (0, vocab_pad - vocab)))
    proj_b = jnp.full((1, vocab_pad), NEG_BIG, jnp.float32).at[:, :vocab].set(0.0)
    return {
        "embedding": s(ks[0], (vocab, emb), 0.1),
        # encoder: [direction, in, 4H] / [direction, H, 4H]; gates fused along the
        # last axis in PyTorch order (i, f, g, o); bias is pre-summed b_ih + b_hh.
        "enc_w_ih": s(ks[1], (2, emb, 4 * enc_h), 1.0 / jnp.sqrt(emb)),
        "enc_w_hh": s(ks[2], (2, enc_h, 4 * enc_h), 1.0 / jnp.sqrt(enc_h)),
        "enc_b": jnp.zeros((2, 1, 4 * enc_h), jnp.float32),
        # decoder: gate-fused
        "dec_w_ih": s(ks[3], (emb, 4 * dec_h), 1.0 / jnp.sqrt(emb)),
        "dec_w_hh": s(ks[4], (dec_h, 4 * dec_h), 1.0 / jnp.sqrt(dec_h)),
        "dec_b": jnp.zeros((1, 4 * dec_h), jnp.float32),
        # vocab projection padded to a lane-dense width (128); pad columns get
        # weight 0 and bias -1e30 so they never affect the argmax or the LSE.
        "proj_w": proj_w,
        "proj_b": proj_b,
    }


if __name__ == "__main__":
    B, T_SRC, T_DEC = 2, 8, 8
    EMB, ENC_H = 16, 32
    BIDIRECTIONAL = True
    DEC_H = 2 * ENC_H if BIDIRECTIONAL else ENC_H
    VOCAB = 24
    VPAD = 128

    key = jax.random.PRNGKey(0)
    kp, ks, kl = jax.random.split(key, 3)
    params = init_params(kp, VOCAB, EMB, ENC_H, DEC_H, VPAD)
    src_ids = jax.random.randint(ks, (B, T_SRC), 0, VOCAB, jnp.int32)
    label_ids = jax.random.randint(kl, (B, T_DEC), 0, VOCAB, jnp.int32)

    out = seq2seq_forward(params, src_ids, label_ids)
    jax.block_until_ready(out)

    assert out["predicted_probs_tokens"].shape == (B, T_DEC, VOCAB)
    assert out["predicted_tags_tokens"].shape == (B, T_DEC)
    assert out["loss"].shape == ()
    assert bool(jnp.isfinite(out["loss"]))
    print("KERNEL_OK")
</pallas_src>

<mosaic_0001>
module attributes {stable_mosaic.version = 11 : i64} {
  func.func @seq2seq_kernel(%arg0: memref<16x16xf32, #tpu.memory_space<vmem>>, %arg1: memref<16x16xf32, #tpu.memory_space<vmem>>, %arg2: memref<16x128xf32, #tpu.memory_space<vmem>>, %arg3: memref<2x16x128xf32, #tpu.memory_space<vmem>>, %arg4: memref<2x32x128xf32, #tpu.memory_space<vmem>>, %arg5: memref<2x1x128xf32, #tpu.memory_space<vmem>>, %arg6: memref<16x256xf32, #tpu.memory_space<vmem>>, %arg7: memref<64x256xf32, #tpu.memory_space<vmem>>, %arg8: memref<1x256xf32, #tpu.memory_space<vmem>>, %arg9: memref<64x128xf32, #tpu.memory_space<vmem>>, %arg10: memref<1x128xf32, #tpu.memory_space<vmem>>, %arg11: memref<16x128xf32, #tpu.memory_space<vmem>>, %arg12: memref<1x1xf32, #tpu.memory_space<vmem>>, %arg13: memref<2x64xf32, #tpu.memory_space<vmem>>, %arg14: memref<2x64xf32, #tpu.memory_space<vmem>>, %arg15: memref<16x64xf32, #tpu.memory_space<vmem>>) attributes {dimension_semantics = [], scalar_prefetch = 0 : i64, scratch_operands = 3 : i64, tpu.core_type = #tpu.core_type<tc>} {
    %c0 = arith.constant 0 : index
    %c0_0 = arith.constant 0 : index
    %0 = vector.load %arg0[%c0, %c0_0] : memref<16x16xf32, #tpu.memory_space<vmem>>, vector<16x16xf32>
    %c0_1 = arith.constant 0 : index
    %c0_2 = arith.constant 0 : index
    %c0_3 = arith.constant 0 : index
    %1 = vector.load %arg3[%c0_1, %c0_2, %c0_3] : memref<2x16x128xf32, #tpu.memory_space<vmem>>, vector<1x16x128xf32>
    %2 = vector.shape_cast %1 : vector<1x16x128xf32> to vector<16x128xf32>
    %cst = arith.constant dense<0.000000e+00> : vector<16x128xf32>
    %3 = tpu.matmul %0, %2, %cst {dimension_numbers = #tpu.dot_dimension_numbers<[1], [0], [0], [1], [0, 0, 1, 1], [], []>} : vector<16x16xf32>, vector<16x128xf32>, vector<16x128xf32> -> vector<16x128xf32>
    %c0_4 = arith.constant 0 : index
    %c0_5 = arith.constant 0 : index
    %c0_6 = arith.constant 0 : index
    %4 = vector.load %arg5[%c0_4, %c0_5, %c0_6] : memref<2x1x128xf32, #tpu.memory_space<vmem>>, vector<1x1x128xf32>
    %5 = vector.shape_cast %4 : vector<1x1x128xf32> to vector<1x128xf32>
    %6 = vector.broadcast %5 : vector<1x128xf32> to vector<16x128xf32>
    %7 = arith.addf %3, %6 : vector<16x128xf32>
    %c0_7 = arith.constant 0 : index
    %c0_8 = arith.constant 0 : index
    %8 = vector.load %arg0[%c0_7, %c0_8] : memref<16x16xf32, #tpu.memory_space<vmem>>, vector<16x16xf32>
    %c1 = arith.constant 1 : index
    %c0_9 = arith.constant 0 : index
    %c0_10 = arith.constant 0 : index
    %9 = vector.load %arg3[%c1, %c0_9, %c0_10] : memref<2x16x128xf32, #tpu.memory_space<vmem>>, vector<1x16x128xf32>
    %10 = vector.shape_cast %9 : vector<1x16x128xf32> to vector<16x128xf32>
    %cst_11 = arith.constant dense<0.000000e+00> : vector<16x128xf32>
    %11 = tpu.matmul %8, %10, %cst_11 {dimension_numbers = #tpu.dot_dimension_numbers<[1], [0], [0], [1], [0, 0, 1, 1], [], []>} : vector<16x16xf32>, vector<16x128xf32>, vector<16x128xf32> -> vector<16x128xf32>
    %c1_12 = arith.constant 1 : index
    %c0_13 = arith.constant 0 : index
    %c0_14 = arith.constant 0 : index
    %12 = vector.load %arg5[%c1_12, %c0_13, %c0_14] : memref<2x1x128xf32, #tpu.memory_space<vmem>>, vector<1x1x128xf32>
    %13 = vector.shape_cast %12 : vector<1x1x128xf32> to vector<1x128xf32>
    %14 = vector.broadcast %13 : vector<1x128xf32> to vector<16x128xf32>
    %15 = arith.addf %11, %14 : vector<16x128xf32>
    %cst_15 = arith.constant 0.000000e+00 : f32
    %16 = vector.broadcast %cst_15 : f32 to vector<2x32xf32>
    %17 = vector.extract_strided_slice %7 {offsets = [0, 0], sizes = [2, 128], strides = [1, 1]} : vector<16x128xf32> to vector<2x128xf32>
    %c0_16 = arith.constant 0 : index
    %c0_17 = arith.constant 0 : index
    %c0_18 = arith.constant 0 : index
    %18 = vector.load %arg4[%c0_16, %c0_17, %c0_18] : memref<2x32x128xf32, #tpu.memory_space<vmem>>, vector<1x32x128xf32>
    %19 = vector.shape_cast %18 : vector<1x32x128xf32> to vector<32x128xf32>
    %cst_19 = arith.constant dense<0.000000e+00> : vector<2x128xf32>
    %20 = tpu.matmul %16, %19, %cst_19 {dimension_numbers = #tpu.dot_dimension_numbers<[1], [0], [0], [1], [0, 0, 1, 1], [], []>} : vector<2x32xf32>, vector<32x128xf32>, vector<2x128xf32> -> vector<2x128xf32>
    %21 = arith.addf %17, %20 : vector<2x128xf32>
    %22 = vector.extract_strided_slice %21 {offsets = [0, 0], sizes = [2, 32], strides = [1, 1]} : vector<2x128xf32> to vector<2x32xf32>
    %23 = arith.negf %22 : vector<2x32xf32>
    %24 = math.exp %23 : vector<2x32xf32>
    %cst_20 = arith.constant 1.000000e+00 : f32
    %25 = vector.broadcast %cst_20 : f32 to vector<2x32xf32>
    %26 = arith.addf %25, %24 : vector<2x32xf32>
    %27 = arith.divf %25, %26 : vector<2x32xf32>
    %28 = vector.extract_strided_slice %21 {offsets = [0, 32], sizes = [2, 32], strides = [1, 1]} : vector<2x128xf32> to vector<2x32xf32>
    %29 = arith.negf %28 : vector<2x32xf32>
    %30 = math.exp %29 : vector<2x32xf32>
    %cst_21 = arith.constant 1.000000e+00 : f32
    %31 = vector.broadcast %cst_21 : f32 to vector<2x32xf32>
    %32 = arith.addf %31, %30 : vector<2x32xf32>
    %33 = arith.divf %31, %32 : vector<2x32xf32>
    %34 = vector.extract_strided_slice %21 {offsets = [0, 64], sizes = [2, 32], strides = [1, 1]} : vector<2x128xf32> to vector<2x32xf32>
    %35 = math.tanh %34 : vector<2x32xf32>
    %36 = vector.extract_strided_slice %21 {offsets = [0, 96], sizes = [2, 32], strides = [1, 1]} : vector<2x128xf32> to vector<2x32xf32>
    %37 = arith.negf %36 : vector<2x32xf32>
    %38 = math.exp %37 : vector<2x32xf32>
    %cst_22 = arith.constant 1.000000e+00 : f32
    %39 = vector.broadcast %cst_22 : f32 to vector<2x32xf32>
    %40 = arith.addf %39, %38 : vector<2x32xf32>
    %41 = arith.divf %39, %40 : vector<2x32xf32>
    %42 = arith.mulf %33, %16 : vector<2x32xf32>
    %43 = arith.mulf %27, %35 : vector<2x32xf32>
    %44 = arith.addf %42, %43 : vector<2x32xf32>
    %45 = math.tanh %44 : vector<2x32xf32>
    %46 = arith.mulf %41, %45 : vector<2x32xf32>
    %47 = vector.extract_strided_slice %15 {offsets = [14, 0], sizes = [2, 128], strides = [1, 1]} : vector<16x128xf32> to vector<2x128xf32>
    %c1_23 = arith.constant 1 : index
    %c0_24 = arith.constant 0 : index
    %c0_25 = arith.constant 0 : index
    %48 = vector.load %arg4[%c1_23, %c0_24, %c0_25] : memref<2x32x128xf32, #tpu.memory_space<vmem>>, vector<1x32x128xf32>
    %49 = vector.shape_cast %48 : vector<1x32x128xf32> to vector<32x128xf32>
    %cst_26 = arith.constant dense<0.000000e+00> : vector<2x128xf32>
    %50 = tpu.matmul %16, %49, %cst_26 {dimension_numbers = #tpu.dot_dimension_numbers<[1], [0], [0], [1], [0, 0, 1, 1], [], []>} : vector<2x32xf32>, vector<32x128xf32>, vector<2x128xf32> -> vector<2x128xf32>
    %51 = arith.addf %47, %50 : vector<2x128xf32>
    %52 = vector.extract_strided_slice %51 {offsets = [0, 0], sizes = [2, 32], strides = [1, 1]} : vector<2x128xf32> to vector<2x32xf32>
    %53 = arith.negf %52 : vector<2x32xf32>
    %54 = math.exp %53 : vector<2x32xf32>
    %cst_27 = arith.constant 1.000000e+00 : f32
    %55 = vector.broadcast %cst_27 : f32 to vector<2x32xf32>
    %56 = arith.addf %55, %54 : vector<2x32xf32>
    %57 = arith.divf %55, %56 : vector<2x32xf32>
    %58 = vector.extract_strided_slice %51 {offsets = [0, 32], sizes = [2, 32], strides = [1, 1]} : vector<2x128xf32> to vector<2x32xf32>
    %59 = arith.negf %58 : vector<2x32xf32>
    %60 = math.exp %59 : vector<2x32xf32>
    %cst_28 = arith.constant 1.000000e+00 : f32
    %61 = vector.broadcast %cst_28 : f32 to vector<2x32xf32>
    %62 = arith.addf %61, %60 : vector<2x32xf32>
    %63 = arith.divf %61, %62 : vector<2x32xf32>
    %64 = vector.extract_strided_slice %51 {offsets = [0, 64], sizes = [2, 32], strides = [1, 1]} : vector<2x128xf32> to vector<2x32xf32>
    %65 = math.tanh %64 : vector<2x32xf32>
    %66 = vector.extract_strided_slice %51 {offsets = [0, 96], sizes = [2, 32], strides = [1, 1]} : vector<2x128xf32> to vector<2x32xf32>
    %67 = arith.negf %66 : vector<2x32xf32>
    %68 = math.exp %67 : vector<2x32xf32>
    %cst_29 = arith.constant 1.000000e+00 : f32
    %69 = vector.broadcast %cst_29 : f32 to vector<2x32xf32>
    %70 = arith.addf %69, %68 : vector<2x32xf32>
    %71 = arith.divf %69, %70 : vector<2x32xf32>
    %72 = arith.mulf %63, %16 : vector<2x32xf32>
    %73 = arith.mulf %57, %65 : vector<2x32xf32>
    %74 = arith.addf %72, %73 : vector<2x32xf32>
    %75 = math.tanh %74 : vector<2x32xf32>
    %76 = arith.mulf %71, %75 : vector<2x32xf32>
    %77 = vector.extract_strided_slice %7 {offsets = [2, 0], sizes = [2, 128], strides = [1, 1]} : vector<16x128xf32> to vector<2x128xf32>
    %c0_30 = arith.constant 0 : index
    %c0_31 = arith.constant 0 : index
    %c0_32 = arith.constant 0 : index
    %78 = vector.load %arg4[%c0_30, %c0_31, %c0_32] : memref<2x32x128xf32, #tpu.memory_space<vmem>>, vector<1x32x128xf32>
    %79 = vector.shape_cast %78 : vector<1x32x128xf32> to vector<32x128xf32>
    %cst_33 = arith.constant dense<0.000000e+00> : vector<2x128xf32>
    %80 = tpu.matmul %46, %79, %cst_33 {dimension_numbers = #tpu.dot_dimension_numbers<[1], [0], [0], [1], [0, 0, 1, 1], [], []>} : vector<2x32xf32>, vector<32x128xf32>, vector<2x128xf32> -> vector<2x128xf32>
    %81 = arith.addf %77, %80 : vector<2x128xf32>
    %82 = vector.extract_strided_slice %81 {offsets = [0, 0], sizes = [2, 32], strides = [1, 1]} : vector<2x128xf32> to vector<2x32xf32>
    %83 = arith.negf %82 : vector<2x32xf32>
    %84 = math.exp %83 : vector<2x32xf32>
    %cst_34 = arith.constant 1.000000e+00 : f32
    %85 = vector.broadcast %cst_34 : f32 to vector<2x32xf32>
    %86 = arith.addf %85, %84 : vector<2x32xf32>
    %87 = arith.divf %85, %86 : vector<2x32xf32>
    %88 = vector.extract_strided_slice %81 {offsets = [0, 32], sizes = [2, 32], strides = [1, 1]} : vector<2x128xf32> to vector<2x32xf32>
    %89 = arith.negf %88 : vector<2x32xf32>
    %90 = math.exp %89 : vector<2x32xf32>
    %cst_35 = arith.constant 1.000000e+00 : f32
    %91 = vector.broadcast %cst_35 : f32 to vector<2x32xf32>
    %92 = arith.addf %91, %90 : vector<2x32xf32>
    %93 = arith.divf %91, %92 : vector<2x32xf32>
    %94 = vector.extract_strided_slice %81 {offsets = [0, 64], sizes = [2, 32], strides = [1, 1]} : vector<2x128xf32> to vector<2x32xf32>
    %95 = math.tanh %94 : vector<2x32xf32>
    %96 = vector.extract_strided_slice %81 {offsets = [0, 96], sizes = [2, 32], strides = [1, 1]} : vector<2x128xf32> to vector<2x32xf32>
    %97 = arith.negf %96 : vector<2x32xf32>
    %98 = math.exp %97 : vector<2x32xf32>
    %cst_36 = arith.constant 1.000000e+00 : f32
    %99 = vector.broadcast %cst_36 : f32 to vector<2x32xf32>
    %100 = arith.addf %99, %98 : vector<2x32xf32>
    %101 = arith.divf %99, %100 : vector<2x32xf32>
    %102 = arith.mulf %93, %44 : vector<2x32xf32>
    %103 = arith.mulf %87, %95 : vector<2x32xf32>
    %104 = arith.addf %102, %103 : vector<2x32xf32>
    %105 = math.tanh %104 : vector<2x32xf32>
    %106 = arith.mulf %101, %105 : vector<2x32xf32>
    %107 = vector.extract_strided_slice %15 {offsets = [12, 0], sizes = [2, 128], strides = [1, 1]} : vector<16x128xf32> to vector<2x128xf32>
    %c1_37 = arith.constant 1 : index
    %c0_38 = arith.constant 0 : index
    %c0_39 = arith.constant 0 : index
    %108 = vector.load %arg4[%c1_37, %c0_38, %c0_39] : memref<2x32x128xf32, #tpu.memory_space<vmem>>, vector<1x32x128xf32>
    %109 = vector.shape_cast %108 : vector<1x32x128xf32> to vector<32x128xf32>
    %cst_40 = arith.constant dense<0.000000e+00> : vector<2x128xf32>
    %110 = tpu.matmul %76, %109, %cst_40 {dimension_numbers = #tpu.dot_dimension_numbers<[1], [0], [0], [1], [0, 0, 1, 1], [], []>} : vector<2x32xf32>, vector<32x128xf32>, vector<2x128xf32> -> vector<2x128xf32>
    %111 = arith.addf %107, %110 : vector<2x128xf32>
    %112 = vector.extract_strided_slice %111 {offsets = [0, 0], sizes = [2, 32], strides = [1, 1]} : vector<2x128xf32> to vector<2x32xf32>
    %113 = arith.negf %112 : vector<2x32xf32>
    %114 = math.exp %113 : vector<2x32xf32>
    %cst_41 = arith.constant 1.000000e+00 : f32
    %115 = vector.broadcast %cst_41 : f32 to vector<2x32xf32>
    %116 = arith.addf %115, %114 : vector<2x32xf32>
    %117 = arith.divf %115, %116 : vector<2x32xf32>
    %118 = vector.extract_strided_slice %111 {offsets = [0, 32], sizes = [2, 32], strides = [1, 1]} : vector<2x128xf32> to vector<2x32xf32>
    %119 = arith.negf %118 : vector<2x32xf32>
    %120 = math.exp %119 : vector<2x32xf32>
    %cst_42 = arith.constant 1.000000e+00 : f32
    %121 = vector.broadcast %cst_42 : f32 to vector<2x32xf32>
    %122 = arith.addf %121, %120 : vector<2x32xf32>
    %123 = arith.divf %121, %122 : vector<2x32xf32>
    %124 = vector.extract_strided_slice %111 {offsets = [0, 64], sizes = [2, 32], strides = [1, 1]} : vector<2x128xf32> to vector<2x32xf32>
    %125 = math.tanh %124 : vector<2x32xf32>
    %126 = vector.extract_strided_slice %111 {offsets = [0, 96], sizes = [2, 32], strides = [1, 1]} : vector<2x128xf32> to vector<2x32xf32>
    %127 = arith.negf %126 : vector<2x32xf32>
    %128 = math.exp %127 : vector<2x32xf32>
    %cst_43 = arith.constant 1.000000e+00 : f32
    %129 = vector.broadcast %cst_43 : f32 to vector<2x32xf32>
    %130 = arith.addf %129, %128 : vector<2x32xf32>
    %131 = arith.divf %129, %130 : vector<2x32xf32>
    %132 = arith.mulf %123, %74 : vector<2x32xf32>
    %133 = arith.mulf %117, %125 : vector<2x32xf32>
    %134 = arith.addf %132, %133 : vector<2x32xf32>
    %135 = math.tanh %134 : vector<2x32xf32>
    %136 = arith.mulf %131, %135 : vector<2x32xf32>
    %137 = vector.extract_strided_slice %7 {offsets = [4, 0], sizes = [2, 128], strides = [1, 1]} : vector<16x128xf32> to vector<2x128xf32>
    %c0_44 = arith.constant 0 : index
    %c0_45 = arith.constant 0 : index
    %c0_46 = arith.constant 0 : index
    %138 = vector.load %arg4[%c0_44, %c0_45, %c0_46] : memref<2x32x128xf32, #tpu.memory_space<vmem>>, vector<1x32x128xf32>
    %139 = vector.shape_cast %138 : vector<1x32x128xf32> to vector<32x128xf32>
    %cst_47 = arith.constant dense<0.000000e+00> : vector<2x128xf32>
    %140 = tpu.matmul %106, %139, %cst_47 {dimension_numbers = #tpu.dot_dimension_numbers<[1], [0], [0], [1], [0, 0, 1, 1], [], []>} : vector<2x32xf32>, vector<32x128xf32>, vector<2x128xf32> -> vector<2x128xf32>
    %141 = arith.addf %137, %140 : vector<2x128xf32>
    %142 = vector.extract_strided_slice %141 {offsets = [0, 0], sizes = [2, 32], strides = [1, 1]} : vector<2x128xf32> to vector<2x32xf32>
    %143 = arith.negf %142 : vector<2x32xf32>
    %144 = math.exp %143 : vector<2x32xf32>
    %cst_48 = arith.constant 1.000000e+00 : f32
    %145 = vector.broadcast %cst_48 : f32 to vector<2x32xf32>
    %146 = arith.addf %145, %144 : vector<2x32xf32>
    %147 = arith.divf %145, %146 : vector<2x32xf32>
    %148 = vector.extract_strided_slice %141 {offsets = [0, 32], sizes = [2, 32], strides = [1, 1]} : vector<2x128xf32> to vector<2x32xf32>
    %149 = arith.negf %148 : vector<2x32xf32>
    %150 = math.exp %149 : vector<2x32xf32>
    %cst_49 = arith.constant 1.000000e+00 : f32
    %151 = vector.broadcast %cst_49 : f32 to vector<2x32xf32>
    %152 = arith.addf %151, %150 : vector<2x32xf32>
    %153 = arith.divf %151, %152 : vector<2x32xf32>
    %154 = vector.extract_strided_slice %141 {offsets = [0, 64], sizes = [2, 32], strides = [1, 1]} : vector<2x128xf32> to vector<2x32xf32>
    %155 = math.tanh %154 : vector<2x32xf32>
    %156 = vector.extract_strided_slice %141 {offsets = [0, 96], sizes = [2, 32], strides = [1, 1]} : vector<2x128xf32> to vector<2x32xf32>
    %157 = arith.negf %156 : vector<2x32xf32>
    %158 = math.exp %157 : vector<2x32xf32>
    %cst_50 = arith.constant 1.000000e+00 : f32
    %159 = vector.broadcast %cst_50 : f32 to vector<2x32xf32>
    %160 = arith.addf %159, %158 : vector<2x32xf32>
    %161 = arith.divf %159, %160 : vector<2x32xf32>
    %162 = arith.mulf %153, %104 : vector<2x32xf32>
    %163 = arith.mulf %147, %155 : vector<2x32xf32>
    %164 = arith.addf %162, %163 : vector<2x32xf32>
    %165 = math.tanh %164 : vector<2x32xf32>
    %166 = arith.mulf %161, %165 : vector<2x32xf32>
    %167 = vector.extract_strided_slice %15 {offsets = [10, 0], sizes = [2, 128], strides = [1, 1]} : vector<16x128xf32> to vector<2x128xf32>
    %c1_51 = arith.constant 1 : index
    %c0_52 = arith.constant 0 : index
    %c0_53 = arith.constant 0 : index
    %168 = vector.load %arg4[%c1_51, %c0_52, %c0_53] : memref<2x32x128xf32, #tpu.memory_space<vmem>>, vector<1x32x128xf32>
    %169 = vector.shape_cast %168 : vector<1x32x128xf32> to vector<32x128xf32>
    %cst_54 = arith.constant dense<0.000000e+00> : vector<2x128xf32>
    %170 = tpu.matmul %136, %169, %cst_54 {dimension_numbers = #tpu.dot_dimension_numbers<[1], [0], [0], [1], [0, 0, 1, 1], [], []>} : vector<2x32xf32>, vector<32x128xf32>, vector<2x128xf32> -> vector<2x128xf32>
    %171 = arith.addf %167, %170 : vector<2x128xf32>
    %172 = vector.extract_strided_slice %171 {offsets = [0, 0], sizes = [2, 32], strides = [1, 1]} : vector<2x128xf32> to vector<2x32xf32>
    %173 = arith.negf %172 : vector<2x32xf32>
    %174 = math.exp %173 : vector<2x32xf32>
    %cst_55 = arith.constant 1.000000e+00 : f32
    %175 = vector.broadcast %cst_55 : f32 to vector<2x32xf32>
    %176 = arith.addf %175, %174 : vector<2x32xf32>
    %177 = arith.divf %175, %176 : vector<2x32xf32>
    %178 = vector.extract_strided_slice %171 {offsets = [0, 32], sizes = [2, 32], strides = [1, 1]} : vector<2x128xf32> to vector<2x32xf32>
    %179 = arith.negf %178 : vector<2x32xf32>
    %180 = math.exp %179 : vector<2x32xf32>
    %cst_56 = arith.constant 1.000000e+00 : f32
    %181 = vector.broadcast %cst_56 : f32 to vector<2x32xf32>
    %182 = arith.addf %181, %180 : vector<2x32xf32>
    %183 = arith.divf %181, %182 : vector<2x32xf32>
    %184 = vector.extract_strided_slice %171 {offsets = [0, 64], sizes = [2, 32], strides = [1, 1]} : vector<2x128xf32> to vector<2x32xf32>
    %185 = math.tanh %184 : vector<2x32xf32>
    %186 = vector.extract_strided_slice %171 {offsets = [0, 96], sizes = [2, 32], strides = [1, 1]} : vector<2x128xf32> to vector<2x32xf32>
    %187 = arith.negf %186 : vector<2x32xf32>
    %188 = math.exp %187 : vector<2x32xf32>
    %cst_57 = arith.constant 1.000000e+00 : f32
    %189 = vector.broadcast %cst_57 : f32 to vector<2x32xf32>
    %190 = arith.addf %189, %188 : vector<2x32xf32>
    %191 = arith.divf %189, %190 : vector<2x32xf32>
    %192 = arith.mulf %183, %134 : vector<2x32xf32>
    %193 = arith.mulf %177, %185 : vector<2x32xf32>
    %194 = arith.addf %192, %193 : vector<2x32xf32>
    %195 = math.tanh %194 : vector<2x32xf32>
    %196 = arith.mulf %191, %195 : vector<2x32xf32>
    %197 = vector.extract_strided_slice %7 {offsets = [6, 0], sizes = [2, 128], strides = [1, 1]} : vector<16x128xf32> to vector<2x128xf32>
    %c0_58 = arith.constant 0 : index
    %c0_59 = arith.constant 0 : index
    %c0_60 = arith.constant 0 : index
    %198 = vector.load %arg4[%c0_58, %c0_59, %c0_60] : memref<2x32x128xf32, #tpu.memory_space<vmem>>, vector<1x32x128xf32>
    %199 = vector.shape_cast %198 : vector<1x32x128xf32> to vector<32x128xf32>
    %cst_61 = arith.constant dense<0.000000e+00> : vector<2x128xf32>
    %200 = tpu.matmul %166, %199, %cst_61 {dimension_numbers = #tpu.dot_dimension_numbers<[1], [0], [0], [1], [0, 0, 1, 1], [], []>} : vector<2x32xf32>, vector<32x128xf32>, vector<2x128xf32> -> vector<2x128xf32>
    %201 = arith.addf %197, %200 : vector<2x128xf32>
    %202 = vector.extract_strided_slice %201 {offsets = [0, 0], sizes = [2, 32], strides = [1, 1]} : vector<2x128xf32> to vector<2x32xf32>
    %203 = arith.negf %202 : vector<2x32xf32>
    %204 = math.exp %203 : vector<2x32xf32>
    %cst_62 = arith.constant 1.000000e+00 : f32
    %205 = vector.broadcast %cst_62 : f32 to vector<2x32xf32>
    %206 = arith.addf %205, %204 : vector<2x32xf32>
    %207 = arith.divf %205, %206 : vector<2x32xf32>
    %208 = vector.extract_strided_slice %201 {offsets = [0, 32], sizes = [2, 32], strides = [1, 1]} : vector<2x128xf32> to vector<2x32xf32>
    %209 = arith.negf %208 : vector<2x32xf32>
    %210 = math.exp %209 : vector<2x32xf32>
    %cst_63 = arith.constant 1.000000e+00 : f32
    %211 = vector.broadcast %cst_63 : f32 to vector<2x32xf32>
    %212 = arith.addf %211, %210 : vector<2x32xf32>
    %213 = arith.divf %211, %212 : vector<2x32xf32>
    %214 = vector.extract_strided_slice %201 {offsets = [0, 64], sizes = [2, 32], strides = [1, 1]} : vector<2x128xf32> to vector<2x32xf32>
    %215 = math.tanh %214 : vector<2x32xf32>
    %216 = vector.extract_strided_slice %201 {offsets = [0, 96], sizes = [2, 32], strides = [1, 1]} : vector<2x128xf32> to vector<2x32xf32>
    %217 = arith.negf %216 : vector<2x32xf32>
    %218 = math.exp %217 : vector<2x32xf32>
    %cst_64 = arith.constant 1.000000e+00 : f32
    %219 = vector.broadcast %cst_64 : f32 to vector<2x32xf32>
    %220 = arith.addf %219, %218 : vector<2x32xf32>
    %221 = arith.divf %219, %220 : vector<2x32xf32>
    %222 = arith.mulf %213, %164 : vector<2x32xf32>
    %223 = arith.mulf %207, %215 : vector<2x32xf32>
    %224 = arith.addf %222, %223 : vector<2x32xf32>
    %225 = math.tanh %224 : vector<2x32xf32>
    %226 = arith.mulf %221, %225 : vector<2x32xf32>
    %227 = vector.extract_strided_slice %15 {offsets = [8, 0], sizes = [2, 128], strides = [1, 1]} : vector<16x128xf32> to vector<2x128xf32>
    %c1_65 = arith.constant 1 : index
    %c0_66 = arith.constant 0 : index
    %c0_67 = arith.constant 0 : index
    %228 = vector.load %arg4[%c1_65, %c0_66, %c0_67] : memref<2x32x128xf32, #tpu.memory_space<vmem>>, vector<1x32x128xf32>
    %229 = vector.shape_cast %228 : vector<1x32x128xf32> to vector<32x128xf32>
    %cst_68 = arith.constant dense<0.000000e+00> : vector<2x128xf32>
    %230 = tpu.matmul %196, %229, %cst_68 {dimension_numbers = #tpu.dot_dimension_numbers<[1], [0], [0], [1], [0, 0, 1, 1], [], []>} : vector<2x32xf32>, vector<32x128xf32>, vector<2x128xf32> -> vector<2x128xf32>
    %231 = arith.addf %227, %230 : vector<2x128xf32>
    %232 = vector.extract_strided_slice %231 {offsets = [0, 0], sizes = [2, 32], strides = [1, 1]} : vector<2x128xf32> to vector<2x32xf32>
    %233 = arith.negf %232 : vector<2x32xf32>
    %234 = math.exp %233 : vector<2x32xf32>
    %cst_69 = arith.constant 1.000000e+00 : f32
    %235 = vector.broadcast %cst_69 : f32 to vector<2x32xf32>
    %236 = arith.addf %235, %234 : vector<2x32xf32>
    %237 = arith.divf %235, %236 : vector<2x32xf32>
    %238 = vector.extract_strided_slice %231 {offsets = [0, 32], sizes = [2, 32], strides = [1, 1]} : vector<2x128xf32> to vector<2x32xf32>
    %239 = arith.negf %238 : vector<2x32xf32>
    %240 = math.exp %239 : vector<2x32xf32>
    %cst_70 = arith.constant 1.000000e+00 : f32
    %241 = vector.broadcast %cst_70 : f32 to vector<2x32xf32>
    %242 = arith.addf %241, %240 : vector<2x32xf32>
    %243 = arith.divf %241, %242 : vector<2x32xf32>
    %244 = vector.extract_strided_slice %231 {offsets = [0, 64], sizes = [2, 32], strides = [1, 1]} : vector<2x128xf32> to vector<2x32xf32>
    %245 = math.tanh %244 : vector<2x32xf32>
    %246 = vector.extract_strided_slice %231 {offsets = [0, 96], sizes = [2, 32], strides = [1, 1]} : vector<2x128xf32> to vector<2x32xf32>
    %247 = arith.negf %246 : vector<2x32xf32>
    %248 = math.exp %247 : vector<2x32xf32>
    %cst_71 = arith.constant 1.000000e+00 : f32
    %249 = vector.broadcast %cst_71 : f32 to vector<2x32xf32>
    %250 = arith.addf %249, %248 : vector<2x32xf32>
    %251 = arith.divf %249, %250 : vector<2x32xf32>
    %252 = arith.mulf %243, %194 : vector<2x32xf32>
    %253 = arith.mulf %237, %245 : vector<2x32xf32>
    %254 = arith.addf %252, %253 : vector<2x32xf32>
    %255 = math.tanh %254 : vector<2x32xf32>
    %256 = arith.mulf %251, %255 : vector<2x32xf32>
    %257 = vector.extract_strided_slice %7 {offsets = [8, 0], sizes = [2, 128], strides = [1, 1]} : vector<16x128xf32> to vector<2x128xf32>
    %c0_72 = arith.constant 0 : index
    %c0_73 = arith.constant 0 : index
    %c0_74 = arith.constant 0 : index
    %258 = vector.load %arg4[%c0_72, %c0_73, %c0_74] : memref<2x32x128xf32, #tpu.memory_space<vmem>>, vector<1x32x128xf32>
    %259 = vector.shape_cast %258 : vector<1x32x128xf32> to vector<32x128xf32>
    %cst_75 = arith.constant dense<0.000000e+00> : vector<2x128xf32>
    %260 = tpu.matmul %226, %259, %cst_75 {dimension_numbers = #tpu.dot_dimension_numbers<[1], [0], [0], [1], [0, 0, 1, 1], [], []>} : vector<2x32xf32>, vector<32x128xf32>, vector<2x128xf32> -> vector<2x128xf32>
    %261 = arith.addf %257, %260 : vector<2x128xf32>
    %262 = vector.extract_strided_slice %261 {offsets = [0, 0], sizes = [2, 32], strides = [1, 1]} : vector<2x128xf32> to vector<2x32xf32>
    %263 = arith.negf %262 : vector<2x32xf32>
    %264 = math.exp %263 : vector<2x32xf32>
    %cst_76 = arith.constant 1.000000e+00 : f32
    %265 = vector.broadcast %cst_76 : f32 to vector<2x32xf32>
    %266 = arith.addf %265, %264 : vector<2x32xf32>
    %267 = arith.divf %265, %266 : vector<2x32xf32>
    %268 = vector.extract_strided_slice %261 {offsets = [0, 32], sizes = [2, 32], strides = [1, 1]} : vector<2x128xf32> to vector<2x32xf32>
    %269 = arith.negf %268 : vector<2x32xf32>
    %270 = math.exp %269 : vector<2x32xf32>
    %cst_77 = arith.constant 1.000000e+00 : f32
    %271 = vector.broadcast %cst_77 : f32 to vector<2x32xf32>
    %272 = arith.addf %271, %270 : vector<2x32xf32>
    %273 = arith.divf %271, %272 : vector<2x32xf32>
    %274 = vector.extract_strided_slice %261 {offsets = [0, 64], sizes = [2, 32], strides = [1, 1]} : vector<2x128xf32> to vector<2x32xf32>
    %275 = math.tanh %274 : vector<2x32xf32>
    %276 = vector.extract_strided_slice %261 {offsets = [0, 96], sizes = [2, 32], strides = [1, 1]} : vector<2x128xf32> to vector<2x32xf32>
    %277 = arith.negf %276 : vector<2x32xf32>
    %278 = math.exp %277 : vector<2x32xf32>
    %cst_78 = arith.constant 1.000000e+00 : f32
    %279 = vector.broadcast %cst_78 : f32 to vector<2x32xf32>
    %280 = arith.addf %279, %278 : vector<2x32xf32>
    %281 = arith.divf %279, %280 : vector<2x32xf32>
    %282 = arith.mulf %273, %224 : vector<2x32xf32>
    %283 = arith.mulf %267, %275 : vector<2x32xf32>
    %284 = arith.addf %282, %283 : vector<2x32xf32>
    %285 = math.tanh %284 : vector<2x32xf32>
    %286 = arith.mulf %281, %285 : vector<2x32xf32>
    %287 = vector.extract_strided_slice %15 {offsets = [6, 0], sizes = [2, 128], strides = [1, 1]} : vector<16x128xf32> to vector<2x128xf32>
    %c1_79 = arith.constant 1 : index
    %c0_80 = arith.constant 0 : index
    %c0_81 = arith.constant 0 : index
    %288 = vector.load %arg4[%c1_79, %c0_80, %c0_81] : memref<2x32x128xf32, #tpu.memory_space<vmem>>, vector<1x32x128xf32>
    %289 = vector.shape_cast %288 : vector<1x32x128xf32> to vector<32x128xf32>
    %cst_82 = arith.constant dense<0.000000e+00> : vector<2x128xf32>
    %290 = tpu.matmul %256, %289, %cst_82 {dimension_numbers = #tpu.dot_dimension_numbers<[1], [0], [0], [1], [0, 0, 1, 1], [], []>} : vector<2x32xf32>, vector<32x128xf32>, vector<2x128xf32> -> vector<2x128xf32>
    %291 = arith.addf %287, %290 : vector<2x128xf32>
    %292 = vector.extract_strided_slice %291 {offsets = [0, 0], sizes = [2, 32], strides = [1, 1]} : vector<2x128xf32> to vector<2x32xf32>
    %293 = arith.negf %292 : vector<2x32xf32>
    %294 = math.exp %293 : vector<2x32xf32>
    %cst_83 = arith.constant 1.000000e+00 : f32
    %295 = vector.broadcast %cst_83 : f32 to vector<2x32xf32>
    %296 = arith.addf %295, %294 : vector<2x32xf32>
    %297 = arith.divf %295, %296 : vector<2x32xf32>
    %298 = vector.extract_strided_slice %291 {offsets = [0, 32], sizes = [2, 32], strides = [1, 1]} : vector<2x128xf32> to vector<2x32xf32>
    %299 = arith.negf %298 : vector<2x32xf32>
    %300 = math.exp %299 : vector<2x32xf32>
    %cst_84 = arith.constant 1.000000e+00 : f32
    %301 = vector.broadcast %cst_84 : f32 to vector<2x32xf32>
    %302 = arith.addf %301, %300 : vector<2x32xf32>
    %303 = arith.divf %301, %302 : vector<2x32xf32>
    %304 = vector.extract_strided_slice %291 {offsets = [0, 64], sizes = [2, 32], strides = [1, 1]} : vector<2x128xf32> to vector<2x32xf32>
    %305 = math.tanh %304 : vector<2x32xf32>
    %306 = vector.extract_strided_slice %291 {offsets = [0, 96], sizes = [2, 32], strides = [1, 1]} : vector<2x128xf32> to vector<2x32xf32>
    %307 = arith.negf %306 : vector<2x32xf32>
    %308 = math.exp %307 : vector<2x32xf32>
    %cst_85 = arith.constant 1.000000e+00 : f32
    %309 = vector.broadcast %cst_85 : f32 to vector<2x32xf32>
    %310 = arith.addf %309, %308 : vector<2x32xf32>
    %311 = arith.divf %309, %310 : vector<2x32xf32>
    %312 = arith.mulf %303, %254 : vector<2x32xf32>
    %313 = arith.mulf %297, %305 : vector<2x32xf32>
    %314 = arith.addf %312, %313 : vector<2x32xf32>
    %315 = math.tanh %314 : vector<2x32xf32>
    %316 = arith.mulf %311, %315 : vector<2x32xf32>
    %317 = vector.extract_strided_slice %7 {offsets = [10, 0], sizes = [2, 128], strides = [1, 1]} : vector<16x128xf32> to vector<2x128xf32>
    %c0_86 = arith.constant 0 : index
    %c0_87 = arith.constant 0 : index
    %c0_88 = arith.constant 0 : index
    %318 = vector.load %arg4[%c0_86, %c0_87, %c0_88] : memref<2x32x128xf32, #tpu.memory_space<vmem>>, vector<1x32x128xf32>
    %319 = vector.shape_cast %318 : vector<1x32x128xf32> to vector<32x128xf32>
    %cst_89 = arith.constant dense<0.000000e+00> : vector<2x128xf32>
    %320 = tpu.matmul %286, %319, %cst_89 {dimension_numbers = #tpu.dot_dimension_numbers<[1], [0], [0], [1], [0, 0, 1, 1], [], []>} : vector<2x32xf32>, vector<32x128xf32>, vector<2x128xf32> -> vector<2x128xf32>
    %321 = arith.addf %317, %320 : vector<2x128xf32>
    %322 = vector.extract_strided_slice %321 {offsets = [0, 0], sizes = [2, 32], strides = [1, 1]} : vector<2x128xf32> to vector<2x32xf32>
    %323 = arith.negf %322 : vector<2x32xf32>
    %324 = math.exp %323 : vector<2x32xf32>
    %cst_90 = arith.constant 1.000000e+00 : f32
    %325 = vector.broadcast %cst_90 : f32 to vector<2x32xf32>
    %326 = arith.addf %325, %324 : vector<2x32xf32>
    %327 = arith.divf %325, %326 : vector<2x32xf32>
    %328 = vector.extract_strided_slice %321 {offsets = [0, 32], sizes = [2, 32], strides = [1, 1]} : vector<2x128xf32> to vector<2x32xf32>
    %329 = arith.negf %328 : vector<2x32xf32>
    %330 = math.exp %329 : vector<2x32xf32>
    %cst_91 = arith.constant 1.000000e+00 : f32
    %331 = vector.broadcast %cst_91 : f32 to vector<2x32xf32>
    %332 = arith.addf %331, %330 : vector<2x32xf32>
    %333 = arith.divf %331, %332 : vector<2x32xf32>
    %334 = vector.extract_strided_slice %321 {offsets = [0, 64], sizes = [2, 32], strides = [1, 1]} : vector<2x128xf32> to vector<2x32xf32>
    %335 = math.tanh %334 : vector<2x32xf32>
    %336 = vector.extract_strided_slice %321 {offsets = [0, 96], sizes = [2, 32], strides = [1, 1]} : vector<2x128xf32> to vector<2x32xf32>
    %337 = arith.negf %336 : vector<2x32xf32>
    %338 = math.exp %337 : vector<2x32xf32>
    %cst_92 = arith.constant 1.000000e+00 : f32
    %339 = vector.broadcast %cst_92 : f32 to vector<2x32xf32>
    %340 = arith.addf %339, %338 : vector<2x32xf32>
    %341 = arith.divf %339, %340 : vector<2x32xf32>
    %342 = arith.mulf %333, %284 : vector<2x32xf32>
    %343 = arith.mulf %327, %335 : vector<2x32xf32>
    %344 = arith.addf %342, %343 : vector<2x32xf32>
    %345 = math.tanh %344 : vector<2x32xf32>
    %346 = arith.mulf %341, %345 : vector<2x32xf32>
    %347 = vector.extract_strided_slice %15 {offsets = [4, 0], sizes = [2, 128], strides = [1, 1]} : vector<16x128xf32> to vector<2x128xf32>
    %c1_93 = arith.constant 1 : index
    %c0_94 = arith.constant 0 : index
    %c0_95 = arith.constant 0 : index
    %348 = vector.load %arg4[%c1_93, %c0_94, %c0_95] : memref<2x32x128xf32, #tpu.memory_space<vmem>>, vector<1x32x128xf32>
    %349 = vector.shape_cast %348 : vector<1x32x128xf32> to vector<32x128xf32>
    %cst_96 = arith.constant dense<0.000000e+00> : vector<2x128xf32>
    %350 = tpu.matmul %316, %349, %cst_96 {dimension_numbers = #tpu.dot_dimension_numbers<[1], [0], [0], [1], [0, 0, 1, 1], [], []>} : vector<2x32xf32>, vector<32x128xf32>, vector<2x128xf32> -> vector<2x128xf32>
    %351 = arith.addf %347, %350 : vector<2x128xf32>
    %352 = vector.extract_strided_slice %351 {offsets = [0, 0], sizes = [2, 32], strides = [1, 1]} : vector<2x128xf32> to vector<2x32xf32>
    %353 = arith.negf %352 : vector<2x32xf32>
    %354 = math.exp %353 : vector<2x32xf32>
    %cst_97 = arith.constant 1.000000e+00 : f32
    %355 = vector.broadcast %cst_97 : f32 to vector<2x32xf32>
    %356 = arith.addf %355, %354 : vector<2x32xf32>
    %357 = arith.divf %355, %356 : vector<2x32xf32>
    %358 = vector.extract_strided_slice %351 {offsets = [0, 32], sizes = [2, 32], strides = [1, 1]} : vector<2x128xf32> to vector<2x32xf32>
    %359 = arith.negf %358 : vector<2x32xf32>
    %360 = math.exp %359 : vector<2x32xf32>
    %cst_98 = arith.constant 1.000000e+00 : f32
    %361 = vector.broadcast %cst_98 : f32 to vector<2x32xf32>
    %362 = arith.addf %361, %360 : vector<2x32xf32>
    %363 = arith.divf %361, %362 : vector<2x32xf32>
    %364 = vector.extract_strided_slice %351 {offsets = [0, 64], sizes = [2, 32], strides = [1, 1]} : vector<2x128xf32> to vector<2x32xf32>
    %365 = math.tanh %364 : vector<2x32xf32>
    %366 = vector.extract_strided_slice %351 {offsets = [0, 96], sizes = [2, 32], strides = [1, 1]} : vector<2x128xf32> to vector<2x32xf32>
    %367 = arith.negf %366 : vector<2x32xf32>
    %368 = math.exp %367 : vector<2x32xf32>
    %cst_99 = arith.constant 1.000000e+00 : f32
    %369 = vector.broadcast %cst_99 : f32 to vector<2x32xf32>
    %370 = arith.addf %369, %368 : vector<2x32xf32>
    %371 = arith.divf %369, %370 : vector<2x32xf32>
    %372 = arith.mulf %363, %314 : vector<2x32xf32>
    %373 = arith.mulf %357, %365 : vector<2x32xf32>
    %374 = arith.addf %372, %373 : vector<2x32xf32>
    %375 = math.tanh %374 : vector<2x32xf32>
    %376 = arith.mulf %371, %375 : vector<2x32xf32>
    %377 = vector.extract_strided_slice %7 {offsets = [12, 0], sizes = [2, 128], strides = [1, 1]} : vector<16x128xf32> to vector<2x128xf32>
    %c0_100 = arith.constant 0 : index
    %c0_101 = arith.constant 0 : index
    %c0_102 = arith.constant 0 : index
    %378 = vector.load %arg4[%c0_100, %c0_101, %c0_102] : memref<2x32x128xf32, #tpu.memory_space<vmem>>, vector<1x32x128xf32>
    %379 = vector.shape_cast %378 : vector<1x32x128xf32> to vector<32x128xf32>
    %cst_103 = arith.constant dense<0.000000e+00> : vector<2x128xf32>
    %380 = tpu.matmul %346, %379, %cst_103 {dimension_numbers = #tpu.dot_dimension_numbers<[1], [0], [0], [1], [0, 0, 1, 1], [], []>} : vector<2x32xf32>, vector<32x128xf32>, vector<2x128xf32> -> vector<2x128xf32>
    %381 = arith.addf %377, %380 : vector<2x128xf32>
    %382 = vector.extract_strided_slice %381 {offsets = [0, 0], sizes = [2, 32], strides = [1, 1]} : vector<2x128xf32> to vector<2x32xf32>
    %383 = arith.negf %382 : vector<2x32xf32>
    %384 = math.exp %383 : vector<2x32xf32>
    %cst_104 = arith.constant 1.000000e+00 : f32
    %385 = vector.broadcast %cst_104 : f32 to vector<2x32xf32>
    %386 = arith.addf %385, %384 : vector<2x32xf32>
    %387 = arith.divf %385, %386 : vector<2x32xf32>
    %388 = vector.extract_strided_slice %381 {offsets = [0, 32], sizes = [2, 32], strides = [1, 1]} : vector<2x128xf32> to vector<2x32xf32>
    %389 = arith.negf %388 : vector<2x32xf32>
    %390 = math.exp %389 : vector<2x32xf32>
    %cst_105 = arith.constant 1.000000e+00 : f32
    %391 = vector.broadcast %cst_105 : f32 to vector<2x32xf32>
    %392 = arith.addf %391, %390 : vector<2x32xf32>
    %393 = arith.divf %391, %392 : vector<2x32xf32>
    %394 = vector.extract_strided_slice %381 {offsets = [0, 64], sizes = [2, 32], strides = [1, 1]} : vector<2x128xf32> to vector<2x32xf32>
    %395 = math.tanh %394 : vector<2x32xf32>
    %396 = vector.extract_strided_slice %381 {offsets = [0, 96], sizes = [2, 32], strides = [1, 1]} : vector<2x128xf32> to vector<2x32xf32>
    %397 = arith.negf %396 : vector<2x32xf32>
    %398 = math.exp %397 : vector<2x32xf32>
    %cst_106 = arith.constant 1.000000e+00 : f32
    %399 = vector.broadcast %cst_106 : f32 to vector<2x32xf32>
    %400 = arith.addf %399, %398 : vector<2x32xf32>
    %401 = arith.divf %399, %400 : vector<2x32xf32>
    %402 = arith.mulf %393, %344 : vector<2x32xf32>
    %403 = arith.mulf %387, %395 : vector<2x32xf32>
    %404 = arith.addf %402, %403 : vector<2x32xf32>
    %405 = math.tanh %404 : vector<2x32xf32>
    %406 = arith.mulf %401, %405 : vector<2x32xf32>
    %407 = vector.extract_strided_slice %15 {offsets = [2, 0], sizes = [2, 128], strides = [1, 1]} : vector<16x128xf32> to vector<2x128xf32>
    %c1_107 = arith.constant 1 : index
    %c0_108 = arith.constant 0 : index
    %c0_109 = arith.constant 0 : index
    %408 = vector.load %arg4[%c1_107, %c0_108, %c0_109] : memref<2x32x128xf32, #tpu.memory_space<vmem>>, vector<1x32x128xf32>
    %409 = vector.shape_cast %408 : vector<1x32x128xf32> to vector<32x128xf32>
    %cst_110 = arith.constant dense<0.000000e+00> : vector<2x128xf32>
    %410 = tpu.matmul %376, %409, %cst_110 {dimension_numbers = #tpu.dot_dimension_numbers<[1], [0], [0], [1], [0, 0, 1, 1], [], []>} : vector<2x32xf32>, vector<32x128xf32>, vector<2x128xf32> -> vector<2x128xf32>
    %411 = arith.addf %407, %410 : vector<2x128xf32>
    %412 = vector.extract_strided_slice %411 {offsets = [0, 0], sizes = [2, 32], strides = [1, 1]} : vector<2x128xf32> to vector<2x32xf32>
    %413 = arith.negf %412 : vector<2x32xf32>
    %414 = math.exp %413 : vector<2x32xf32>
    %cst_111 = arith.constant 1.000000e+00 : f32
    %415 = vector.broadcast %cst_111 : f32 to vector<2x32xf32>
    %416 = arith.addf %415, %414 : vector<2x32xf32>
    %417 = arith.divf %415, %416 : vector<2x32xf32>
    %418 = vector.extract_strided_slice %411 {offsets = [0, 32], sizes = [2, 32], strides = [1, 1]} : vector<2x128xf32> to vector<2x32xf32>
    %419 = arith.negf %418 : vector<2x32xf32>
    %420 = math.exp %419 : vector<2x32xf32>
    %cst_112 = arith.constant 1.000000e+00 : f32
    %421 = vector.broadcast %cst_112 : f32 to vector<2x32xf32>
    %422 = arith.addf %421, %420 : vector<2x32xf32>
    %423 = arith.divf %421, %422 : vector<2x32xf32>
    %424 = vector.extract_strided_slice %411 {offsets = [0, 64], sizes = [2, 32], strides = [1, 1]} : vector<2x128xf32> to vector<2x32xf32>
    %425 = math.tanh %424 : vector<2x32xf32>
    %426 = vector.extract_strided_slice %411 {offsets = [0, 96], sizes = [2, 32], strides = [1, 1]} : vector<2x128xf32> to vector<2x32xf32>
    %427 = arith.negf %426 : vector<2x32xf32>
    %428 = math.exp %427 : vector<2x32xf32>
    %cst_113 = arith.constant 1.000000e+00 : f32
    %429 = vector.broadcast %cst_113 : f32 to vector<2x32xf32>
    %430 = arith.addf %429, %428 : vector<2x32xf32>
    %431 = arith.divf %429, %430 : vector<2x32xf32>
    %432 = arith.mulf %423, %374 : vector<2x32xf32>
    %433 = arith.mulf %417, %425 : vector<2x32xf32>
    %434 = arith.addf %432, %433 : vector<2x32xf32>
    %435 = math.tanh %434 : vector<2x32xf32>
    %436 = arith.mulf %431, %435 : vector<2x32xf32>
    %437 = vector.extract_strided_slice %7 {offsets = [14, 0], sizes = [2, 128], strides = [1, 1]} : vector<16x128xf32> to vector<2x128xf32>
    %c0_114 = arith.constant 0 : index
    %c0_115 = arith.constant 0 : index
    %c0_116 = arith.constant 0 : index
    %438 = vector.load %arg4[%c0_114, %c0_115, %c0_116] : memref<2x32x128xf32, #tpu.memory_space<vmem>>, vector<1x32x128xf32>
    %439 = vector.shape_cast %438 : vector<1x32x128xf32> to vector<32x128xf32>
    %cst_117 = arith.constant dense<0.000000e+00> : vector<2x128xf32>
    %440 = tpu.matmul %406, %439, %cst_117 {dimension_numbers = #tpu.dot_dimension_numbers<[1], [0], [0], [1], [0, 0, 1, 1], [], []>} : vector<2x32xf32>, vector<32x128xf32>, vector<2x128xf32> -> vector<2x128xf32>
    %441 = arith.addf %437, %440 : vector<2x128xf32>
    %442 = vector.extract_strided_slice %441 {offsets = [0, 0], sizes = [2, 32], strides = [1, 1]} : vector<2x128xf32> to vector<2x32xf32>
    %443 = arith.negf %442 : vector<2x32xf32>
    %444 = math.exp %443 : vector<2x32xf32>
    %cst_118 = arith.constant 1.000000e+00 : f32
    %445 = vector.broadcast %cst_118 : f32 to vector<2x32xf32>
    %446 = arith.addf %445, %444 : vector<2x32xf32>
    %447 = arith.divf %445, %446 : vector<2x32xf32>
    %448 = vector.extract_strided_slice %441 {offsets = [0, 32], sizes = [2, 32], strides = [1, 1]} : vector<2x128xf32> to vector<2x32xf32>
    %449 = arith.negf %448 : vector<2x32xf32>
    %450 = math.exp %449 : vector<2x32xf32>
    %cst_119 = arith.constant 1.000000e+00 : f32
    %451 = vector.broadcast %cst_119 : f32 to vector<2x32xf32>
    %452 = arith.addf %451, %450 : vector<2x32xf32>
    %453 = arith.divf %451, %452 : vector<2x32xf32>
    %454 = vector.extract_strided_slice %441 {offsets = [0, 64], sizes = [2, 32], strides = [1, 1]} : vector<2x128xf32> to vector<2x32xf32>
    %455 = math.tanh %454 : vector<2x32xf32>
    %456 = vector.extract_strided_slice %441 {offsets = [0, 96], sizes = [2, 32], strides = [1, 1]} : vector<2x128xf32> to vector<2x32xf32>
    %457 = arith.negf %456 : vector<2x32xf32>
    %458 = math.exp %457 : vector<2x32xf32>
    %cst_120 = arith.constant 1.000000e+00 : f32
    %459 = vector.broadcast %cst_120 : f32 to vector<2x32xf32>
    %460 = arith.addf %459, %458 : vector<2x32xf32>
    %461 = arith.divf %459, %460 : vector<2x32xf32>
    %462 = arith.mulf %453, %404 : vector<2x32xf32>
    %463 = arith.mulf %447, %455 : vector<2x32xf32>
    %464 = arith.addf %462, %463 : vector<2x32xf32>
    %465 = math.tanh %464 : vector<2x32xf32>
    %466 = arith.mulf %461, %465 : vector<2x32xf32>
    %467 = vector.extract_strided_slice %15 {offsets = [0, 0], sizes = [2, 128], strides = [1, 1]} : vector<16x128xf32> to vector<2x128xf32>
    %c1_121 = arith.constant 1 : index
    %c0_122 = arith.constant 0 : index
    %c0_123 = arith.constant 0 : index
    %468 = vector.load %arg4[%c1_121, %c0_122, %c0_123] : memref<2x32x128xf32, #tpu.memory_space<vmem>>, vector<1x32x128xf32>
    %469 = vector.shape_cast %468 : vector<1x32x128xf32> to vector<32x128xf32>
    %cst_124 = arith.constant dense<0.000000e+00> : vector<2x128xf32>
    %470 = tpu.matmul %436, %469, %cst_124 {dimension_numbers = #tpu.dot_dimension_numbers<[1], [0], [0], [1], [0, 0, 1, 1], [], []>} : vector<2x32xf32>, vector<32x128xf32>, vector<2x128xf32> -> vector<2x128xf32>
    %471 = arith.addf %467, %470 : vector<2x128xf32>
    %472 = vector.extract_strided_slice %471 {offsets = [0, 0], sizes = [2, 32], strides = [1, 1]} : vector<2x128xf32> to vector<2x32xf32>
    %473 = arith.negf %472 : vector<2x32xf32>
    %474 = math.exp %473 : vector<2x32xf32>
    %cst_125 = arith.constant 1.000000e+00 : f32
    %475 = vector.broadcast %cst_125 : f32 to vector<2x32xf32>
    %476 = arith.addf %475, %474 : vector<2x32xf32>
    %477 = arith.divf %475, %476 : vector<2x32xf32>
    %478 = vector.extract_strided_slice %471 {offsets = [0, 32], sizes = [2, 32], strides = [1, 1]} : vector<2x128xf32> to vector<2x32xf32>
    %479 = arith.negf %478 : vector<2x32xf32>
    %480 = math.exp %479 : vector<2x32xf32>
    %cst_126 = arith.constant 1.000000e+00 : f32
    %481 = vector.broadcast %cst_126 : f32 to vector<2x32xf32>
    %482 = arith.addf %481, %480 : vector<2x32xf32>
    %483 = arith.divf %481, %482 : vector<2x32xf32>
    %484 = vector.extract_strided_slice %471 {offsets = [0, 64], sizes = [2, 32], strides = [1, 1]} : vector<2x128xf32> to vector<2x32xf32>
    %485 = math.tanh %484 : vector<2x32xf32>
    %486 = vector.extract_strided_slice %471 {offsets = [0, 96], sizes = [2, 32], strides = [1, 1]} : vector<2x128xf32> to vector<2x32xf32>
    %487 = arith.negf %486 : vector<2x32xf32>
    %488 = math.exp %487 : vector<2x32xf32>
    %cst_127 = arith.constant 1.000000e+00 : f32
    %489 = vector.broadcast %cst_127 : f32 to vector<2x32xf32>
    %490 = arith.addf %489, %488 : vector<2x32xf32>
    %491 = arith.divf %489, %490 : vector<2x32xf32>
    %492 = arith.mulf %483, %434 : vector<2x32xf32>
    %493 = arith.mulf %477, %485 : vector<2x32xf32>
    %494 = arith.addf %492, %493 : vector<2x32xf32>
    %495 = math.tanh %494 : vector<2x32xf32>
    %496 = arith.mulf %491, %495 : vector<2x32xf32>
    %c0_128 = arith.constant 0 : index
    %c0_129 = arith.constant 0 : index
    %497 = vector.load %arg13[%c0_128, %c0_129] : memref<2x64xf32, #tpu.memory_space<vmem>>, vector<2x32xf32>
    tpu.vector_store %arg13[%c0_128, %c0_129], %466 {strides = array<i32>} : memref<2x64xf32, #tpu.memory_space<vmem>>, vector<2x32xf32>,
    %c0_130 = arith.constant 0 : index
    %c32 = arith.constant 32 : index
    %498 = vector.load %arg13[%c0_130, %c32] : memref<2x64xf32, #tpu.memory_space<vmem>>, vector<2x32xf32>
    tpu.vector_store %arg13[%c0_130, %c32], %496 {strides = array<i32>} : memref<2x64xf32, #tpu.memory_space<vmem>>, vector<2x32xf32>,
    %c0_131 = arith.constant 0 : index
    %c0_132 = arith.constant 0 : index
    %499 = vector.load %arg14[%c0_131, %c0_132] : memref<2x64xf32, #tpu.memory_space<vmem>>, vector<2x32xf32>
    tpu.vector_store %arg14[%c0_131, %c0_132], %464 {strides = array<i32>} : memref<2x64xf32, #tpu.memory_space<vmem>>, vector<2x32xf32>,
    %c0_133 = arith.constant 0 : index
    %c32_134 = arith.constant 32 : index
    %500 = vector.load %arg14[%c0_133, %c32_134] : memref<2x64xf32, #tpu.memory_space<vmem>>, vector<2x32xf32>
    tpu.vector_store %arg14[%c0_133, %c32_134], %494 {strides = array<i32>} : memref<2x64xf32, #tpu.memory_space<vmem>>, vector<2x32xf32>,
    %c0_135 = arith.constant 0 : index
    %c0_136 = arith.constant 0 : index
    %501 = vector.load %arg1[%c0_135, %c0_136] : memref<16x16xf32, #tpu.memory_space<vmem>>, vector<16x16xf32>
    %c0_137 = arith.constant 0 : index
    %c0_138 = arith.constant 0 : index
    %502 = vector.load %arg6[%c0_137, %c0_138] : memref<16x256xf32, #tpu.memory_space<vmem>>, vector<16x256xf32>
    %cst_139 = arith.constant dense<0.000000e+00> : vector<16x256xf32>
    %503 = tpu.matmul %501, %502, %cst_139 {dimension_numbers = #tpu.dot_dimension_numbers<[1], [0], [0], [1], [0, 0, 1, 1], [], []>} : vector<16x16xf32>, vector<16x256xf32>, vector<16x256xf32> -> vector<16x256xf32>
    %c0_140 = arith.constant 0 : index
    %c0_141 = arith.constant 0 : index
    %504 = vector.load %arg8[%c0_140, %c0_141] : memref<1x256xf32, #tpu.memory_space<vmem>>, vector<1x256xf32>
    %505 = vector.broadcast %504 : vector<1x256xf32> to vector<16x256xf32>
    %506 = arith.addf %503, %505 : vector<16x256xf32>
    %c0_142 = arith.constant 0 : index
    %c0_143 = arith.constant 0 : index
    %507 = vector.load %arg13[%c0_142, %c0_143] : memref<2x64xf32, #tpu.memory_space<vmem>>, vector<2x64xf32>
    %c0_144 = arith.constant 0 : index
    %c0_145 = arith.constant 0 : index
    %508 = vector.load %arg14[%c0_144, %c0_145] : memref<2x64xf32, #tpu.memory_space<vmem>>, vector<2x64xf32>
    %509 = vector.extract_strided_slice %506 {offsets = [0, 0], sizes = [2, 256], strides = [1, 1]} : vector<16x256xf32> to vector<2x256xf32>
    %c0_146 = arith.constant 0 : index
    %c0_147 = arith.constant 0 : index
    %510 = vector.load %arg7[%c0_146, %c0_147] : memref<64x256xf32, #tpu.memory_space<vmem>>, vector<64x256xf32>
    %cst_148 = arith.constant dense<0.000000e+00> : vector<2x256xf32>
    %511 = tpu.matmul %507, %510, %cst_148 {dimension_numbers = #tpu.dot_dimension_numbers<[1], [0], [0], [1], [0, 0, 1, 1], [], []>} : vector<2x64xf32>, vector<64x256xf32>, vector<2x256xf32> -> vector<2x256xf32>
    %512 = arith.addf %509, %511 : vector<2x256xf32>
    %513 = vector.extract_strided_slice %512 {offsets = [0, 0], sizes = [2, 64], strides = [1, 1]} : vector<2x256xf32> to vector<2x64xf32>
    %514 = arith.negf %513 : vector<2x64xf32>
    %515 = math.exp %514 : vector<2x64xf32>
    %cst_149 = arith.constant 1.000000e+00 : f32
    %516 = vector.broadcast %cst_149 : f32 to vector<2x64xf32>
    %517 = arith.addf %516, %515 : vector<2x64xf32>
    %518 = arith.divf %516, %517 : vector<2x64xf32>
    %519 = vector.extract_strided_slice %512 {offsets = [0, 64], sizes = [2, 64], strides = [1, 1]} : vector<2x256xf32> to vector<2x64xf32>
    %520 = arith.negf %519 : vector<2x64xf32>
    %521 = math.exp %520 : vector<2x64xf32>
    %cst_150 = arith.constant 1.000000e+00 : f32
    %522 = vector.broadcast %cst_150 : f32 to vector<2x64xf32>
    %523 = arith.addf %522, %521 : vector<2x64xf32>
    %524 = arith.divf %522, %523 : vector<2x64xf32>
    %525 = vector.extract_strided_slice %512 {offsets = [0, 128], sizes = [2, 64], strides = [1, 1]} : vector<2x256xf32> to vector<2x64xf32>
    %526 = math.tanh %525 : vector<2x64xf32>
    %527 = vector.extract_strided_slice %512 {offsets = [0, 192], sizes = [2, 64], strides = [1, 1]} : vector<2x256xf32> to vector<2x64xf32>
    %528 = arith.negf %527 : vector<2x64xf32>
    %529 = math.exp %528 : vector<2x64xf32>
    %cst_151 = arith.constant 1.000000e+00 : f32
    %530 = vector.broadcast %cst_151 : f32 to vector<2x64xf32>
    %531 = arith.addf %530, %529 : vector<2x64xf32>
    %532 = arith.divf %530, %531 : vector<2x64xf32>
    %533 = arith.mulf %524, %508 : vector<2x64xf32>
    %534 = arith.mulf %518, %526 : vector<2x64xf32>
    %535 = arith.addf %533, %534 : vector<2x64xf32>
    %536 = math.tanh %535 : vector<2x64xf32>
    %537 = arith.mulf %532, %536 : vector<2x64xf32>
    %c0_152 = arith.constant 0 : index
    %c0_153 = arith.constant 0 : index
    %538 = vector.load %arg15[%c0_152, %c0_153] : memref<16x64xf32, #tpu.memory_space<vmem>>, vector<2x64xf32>
    tpu.vector_store %arg15[%c0_152, %c0_153], %537 {strides = array<i32>} : memref<16x64xf32, #tpu.memory_space<vmem>>, vector<2x64xf32>,
    %539 = vector.extract_strided_slice %506 {offsets = [2, 0], sizes = [2, 256], strides = [1, 1]} : vector<16x256xf32> to vector<2x256xf32>
    %c0_154 = arith.constant 0 : index
    %c0_155 = arith.constant 0 : index
    %540 = vector.load %arg7[%c0_154, %c0_155] : memref<64x256xf32, #tpu.memory_space<vmem>>, vector<64x256xf32>
    %cst_156 = arith.constant dense<0.000000e+00> : vector<2x256xf32>
    %541 = tpu.matmul %537, %540, %cst_156 {dimension_numbers = #tpu.dot_dimension_numbers<[1], [0], [0], [1], [0, 0, 1, 1], [], []>} : vector<2x64xf32>, vector<64x256xf32>, vector<2x256xf32> -> vector<2x256xf32>
    %542 = arith.addf %539, %541 : vector<2x256xf32>
    %543 = vector.extract_strided_slice %542 {offsets = [0, 0], sizes = [2, 64], strides = [1, 1]} : vector<2x256xf32> to vector<2x64xf32>
    %544 = arith.negf %543 : vector<2x64xf32>
    %545 = math.exp %544 : vector<2x64xf32>
    %cst_157 = arith.constant 1.000000e+00 : f32
    %546 = vector.broadcast %cst_157 : f32 to vector<2x64xf32>
    %547 = arith.addf %546, %545 : vector<2x64xf32>
    %548 = arith.divf %546, %547 : vector<2x64xf32>
    %549 = vector.extract_strided_slice %542 {offsets = [0, 64], sizes = [2, 64], strides = [1, 1]} : vector<2x256xf32> to vector<2x64xf32>
    %550 = arith.negf %549 : vector<2x64xf32>
    %551 = math.exp %550 : vector<2x64xf32>
    %cst_158 = arith.constant 1.000000e+00 : f32
    %552 = vector.broadcast %cst_158 : f32 to vector<2x64xf32>
    %553 = arith.addf %552, %551 : vector<2x64xf32>
    %554 = arith.divf %552, %553 : vector<2x64xf32>
    %555 = vector.extract_strided_slice %542 {offsets = [0, 128], sizes = [2, 64], strides = [1, 1]} : vector<2x256xf32> to vector<2x64xf32>
    %556 = math.tanh %555 : vector<2x64xf32>
    %557 = vector.extract_strided_slice %542 {offsets = [0, 192], sizes = [2, 64], strides = [1, 1]} : vector<2x256xf32> to vector<2x64xf32>
    %558 = arith.negf %557 : vector<2x64xf32>
    %559 = math.exp %558 : vector<2x64xf32>
    %cst_159 = arith.constant 1.000000e+00 : f32
    %560 = vector.broadcast %cst_159 : f32 to vector<2x64xf32>
    %561 = arith.addf %560, %559 : vector<2x64xf32>
    %562 = arith.divf %560, %561 : vector<2x64xf32>
    %563 = arith.mulf %554, %535 : vector<2x64xf32>
    %564 = arith.mulf %548, %556 : vector<2x64xf32>
    %565 = arith.addf %563, %564 : vector<2x64xf32>
    %566 = math.tanh %565 : vector<2x64xf32>
    %567 = arith.mulf %562, %566 : vector<2x64xf32>
    %c2 = arith.constant 2 : index
    %c0_160 = arith.constant 0 : index
    %568 = vector.load %arg15[%c2, %c0_160] : memref<16x64xf32, #tpu.memory_space<vmem>>, vector<2x64xf32>
    tpu.vector_store %arg15[%c2, %c0_160], %567 {strides = array<i32>} : memref<16x64xf32, #tpu.memory_space<vmem>>, vector<2x64xf32>,
    %569 = vector.extract_strided_slice %506 {offsets = [4, 0], sizes = [2, 256], strides = [1, 1]} : vector<16x256xf32> to vector<2x256xf32>
    %c0_161 = arith.constant 0 : index
    %c0_162 = arith.constant 0 : index
    %570 = vector.load %arg7[%c0_161, %c0_162] : memref<64x256xf32, #tpu.memory_space<vmem>>, vector<64x256xf32>
    %cst_163 = arith.constant dense<0.000000e+00> : vector<2x256xf32>
    %571 = tpu.matmul %567, %570, %cst_163 {dimension_numbers = #tpu.dot_dimension_numbers<[1], [0], [0], [1], [0, 0, 1, 1], [], []>} : vector<2x64xf32>, vector<64x256xf32>, vector<2x256xf32> -> vector<2x256xf32>
    %572 = arith.addf %569, %571 : vector<2x256xf32>
    %573 = vector.extract_strided_slice %572 {offsets = [0, 0], sizes = [2, 64], strides = [1, 1]} : vector<2x256xf32> to vector<2x64xf32>
    %574 = arith.negf %573 : vector<2x64xf32>
    %575 = math.exp %574 : vector<2x64xf32>
    %cst_164 = arith.constant 1.000000e+00 : f32
    %576 = vector.broadcast %cst_164 : f32 to vector<2x64xf32>
    %577 = arith.addf %576, %575 : vector<2x64xf32>
    %578 = arith.divf %576, %577 : vector<2x64xf32>
    %579 = vector.extract_strided_slice %572 {offsets = [0, 64], sizes = [2, 64], strides = [1, 1]} : vector<2x256xf32> to vector<2x64xf32>
    %580 = arith.negf %579 : vector<2x64xf32>
    %581 = math.exp %580 : vector<2x64xf32>
    %cst_165 = arith.constant 1.000000e+00 : f32
    %582 = vector.broadcast %cst_165 : f32 to vector<2x64xf32>
    %583 = arith.addf %582, %581 : vector<2x64xf32>
    %584 = arith.divf %582, %583 : vector<2x64xf32>
    %585 = vector.extract_strided_slice %572 {offsets = [0, 128], sizes = [2, 64], strides = [1, 1]} : vector<2x256xf32> to vector<2x64xf32>
    %586 = math.tanh %585 : vector<2x64xf32>
    %587 = vector.extract_strided_slice %572 {offsets = [0, 192], sizes = [2, 64], strides = [1, 1]} : vector<2x256xf32> to vector<2x64xf32>
    %588 = arith.negf %587 : vector<2x64xf32>
    %589 = math.exp %588 : vector<2x64xf32>
    %cst_166 = arith.constant 1.000000e+00 : f32
    %590 = vector.broadcast %cst_166 : f32 to vector<2x64xf32>
    %591 = arith.addf %590, %589 : vector<2x64xf32>
    %592 = arith.divf %590, %591 : vector<2x64xf32>
    %593 = arith.mulf %584, %565 : vector<2x64xf32>
    %594 = arith.mulf %578, %586 : vector<2x64xf32>
    %595 = arith.addf %593, %594 : vector<2x64xf32>
    %596 = math.tanh %595 : vector<2x64xf32>
    %597 = arith.mulf %592, %596 : vector<2x64xf32>
    %c4 = arith.constant 4 : index
    %c0_167 = arith.constant 0 : index
    %598 = vector.load %arg15[%c4, %c0_167] : memref<16x64xf32, #tpu.memory_space<vmem>>, vector<2x64xf32>
    tpu.vector_store %arg15[%c4, %c0_167], %597 {strides = array<i32>} : memref<16x64xf32, #tpu.memory_space<vmem>>, vector<2x64xf32>,
    %599 = vector.extract_strided_slice %506 {offsets = [6, 0], sizes = [2, 256], strides = [1, 1]} : vector<16x256xf32> to vector<2x256xf32>
    %c0_168 = arith.constant 0 : index
    %c0_169 = arith.constant 0 : index
    %600 = vector.load %arg7[%c0_168, %c0_169] : memref<64x256xf32, #tpu.memory_space<vmem>>, vector<64x256xf32>
    %cst_170 = arith.constant dense<0.000000e+00> : vector<2x256xf32>
    %601 = tpu.matmul %597, %600, %cst_170 {dimension_numbers = #tpu.dot_dimension_numbers<[1], [0], [0], [1], [0, 0, 1, 1], [], []>} : vector<2x64xf32>, vector<64x256xf32>, vector<2x256xf32> -> vector<2x256xf32>
    %602 = arith.addf %599, %601 : vector<2x256xf32>
    %603 = vector.extract_strided_slice %602 {offsets = [0, 0], sizes = [2, 64], strides = [1, 1]} : vector<2x256xf32> to vector<2x64xf32>
    %604 = arith.negf %603 : vector<2x64xf32>
    %605 = math.exp %604 : vector<2x64xf32>
    %cst_171 = arith.constant 1.000000e+00 : f32
    %606 = vector.broadcast %cst_171 : f32 to vector<2x64xf32>
    %607 = arith.addf %606, %605 : vector<2x64xf32>
    %608 = arith.divf %606, %607 : vector<2x64xf32>
    %609 = vector.extract_strided_slice %602 {offsets = [0, 64], sizes = [2, 64], strides = [1, 1]} : vector<2x256xf32> to vector<2x64xf32>
    %610 = arith.negf %609 : vector<2x64xf32>
    %611 = math.exp %610 : vector<2x64xf32>
    %cst_172 = arith.constant 1.000000e+00 : f32
    %612 = vector.broadcast %cst_172 : f32 to vector<2x64xf32>
    %613 = arith.addf %612, %611 : vector<2x64xf32>
    %614 = arith.divf %612, %613 : vector<2x64xf32>
    %615 = vector.extract_strided_slice %602 {offsets = [0, 128], sizes = [2, 64], strides = [1, 1]} : vector<2x256xf32> to vector<2x64xf32>
    %616 = math.tanh %615 : vector<2x64xf32>
    %617 = vector.extract_strided_slice %602 {offsets = [0, 192], sizes = [2, 64], strides = [1, 1]} : vector<2x256xf32> to vector<2x64xf32>
    %618 = arith.negf %617 : vector<2x64xf32>
    %619 = math.exp %618 : vector<2x64xf32>
    %cst_173 = arith.constant 1.000000e+00 : f32
    %620 = vector.broadcast %cst_173 : f32 to vector<2x64xf32>
    %621 = arith.addf %620, %619 : vector<2x64xf32>
    %622 = arith.divf %620, %621 : vector<2x64xf32>
    %623 = arith.mulf %614, %595 : vector<2x64xf32>
    %624 = arith.mulf %608, %616 : vector<2x64xf32>
    %625 = arith.addf %623, %624 : vector<2x64xf32>
    %626 = math.tanh %625 : vector<2x64xf32>
    %627 = arith.mulf %622, %626 : vector<2x64xf32>
    %c6 = arith.constant 6 : index
    %c0_174 = arith.constant 0 : index
    %628 = vector.load %arg15[%c6, %c0_174] : memref<16x64xf32, #tpu.memory_space<vmem>>, vector<2x64xf32>
    tpu.vector_store %arg15[%c6, %c0_174], %627 {strides = array<i32>} : memref<16x64xf32, #tpu.memory_space<vmem>>, vector<2x64xf32>,
    %629 = vector.extract_strided_slice %506 {offsets = [8, 0], sizes = [2, 256], strides = [1, 1]} : vector<16x256xf32> to vector<2x256xf32>
    %c0_175 = arith.constant 0 : index
    %c0_176 = arith.constant 0 : index
    %630 = vector.load %arg7[%c0_175, %c0_176] : memref<64x256xf32, #tpu.memory_space<vmem>>, vector<64x256xf32>
    %cst_177 = arith.constant dense<0.000000e+00> : vector<2x256xf32>
    %631 = tpu.matmul %627, %630, %cst_177 {dimension_numbers = #tpu.dot_dimension_numbers<[1], [0], [0], [1], [0, 0, 1, 1], [], []>} : vector<2x64xf32>, vector<64x256xf32>, vector<2x256xf32> -> vector<2x256xf32>
    %632 = arith.addf %629, %631 : vector<2x256xf32>
    %633 = vector.extract_strided_slice %632 {offsets = [0, 0], sizes = [2, 64], strides = [1, 1]} : vector<2x256xf32> to vector<2x64xf32>
    %634 = arith.negf %633 : vector<2x64xf32>
    %635 = math.exp %634 : vector<2x64xf32>
    %cst_178 = arith.constant 1.000000e+00 : f32
    %636 = vector.broadcast %cst_178 : f32 to vector<2x64xf32>
    %637 = arith.addf %636, %635 : vector<2x64xf32>
    %638 = arith.divf %636, %637 : vector<2x64xf32>
    %639 = vector.extract_strided_slice %632 {offsets = [0, 64], sizes = [2, 64], strides = [1, 1]} : vector<2x256xf32> to vector<2x64xf32>
    %640 = arith.negf %639 : vector<2x64xf32>
    %641 = math.exp %640 : vector<2x64xf32>
    %cst_179 = arith.constant 1.000000e+00 : f32
    %642 = vector.broadcast %cst_179 : f32 to vector<2x64xf32>
    %643 = arith.addf %642, %641 : vector<2x64xf32>
    %644 = arith.divf %642, %643 : vector<2x64xf32>
    %645 = vector.extract_strided_slice %632 {offsets = [0, 128], sizes = [2, 64], strides = [1, 1]} : vector<2x256xf32> to vector<2x64xf32>
    %646 = math.tanh %645 : vector<2x64xf32>
    %647 = vector.extract_strided_slice %632 {offsets = [0, 192], sizes = [2, 64], strides = [1, 1]} : vector<2x256xf32> to vector<2x64xf32>
    %648 = arith.negf %647 : vector<2x64xf32>
    %649 = math.exp %648 : vector<2x64xf32>
    %cst_180 = arith.constant 1.000000e+00 : f32
    %650 = vector.broadcast %cst_180 : f32 to vector<2x64xf32>
    %651 = arith.addf %650, %649 : vector<2x64xf32>
    %652 = arith.divf %650, %651 : vector<2x64xf32>
    %653 = arith.mulf %644, %625 : vector<2x64xf32>
    %654 = arith.mulf %638, %646 : vector<2x64xf32>
    %655 = arith.addf %653, %654 : vector<2x64xf32>
    %656 = math.tanh %655 : vector<2x64xf32>
    %657 = arith.mulf %652, %656 : vector<2x64xf32>
    %c8 = arith.constant 8 : index
    %c0_181 = arith.constant 0 : index
    %658 = vector.load %arg15[%c8, %c0_181] : memref<16x64xf32, #tpu.memory_space<vmem>>, vector<2x64xf32>
    tpu.vector_store %arg15[%c8, %c0_181], %657 {strides = array<i32>} : memref<16x64xf32, #tpu.memory_space<vmem>>, vector<2x64xf32>,
    %659 = vector.extract_strided_slice %506 {offsets = [10, 0], sizes = [2, 256], strides = [1, 1]} : vector<16x256xf32> to vector<2x256xf32>
    %c0_182 = arith.constant 0 : index
    %c0_183 = arith.constant 0 : index
    %660 = vector.load %arg7[%c0_182, %c0_183] : memref<64x256xf32, #tpu.memory_space<vmem>>, vector<64x256xf32>
    %cst_184 = arith.constant dense<0.000000e+00> : vector<2x256xf32>
    %661 = tpu.matmul %657, %660, %cst_184 {dimension_numbers = #tpu.dot_dimension_numbers<[1], [0], [0], [1], [0, 0, 1, 1], [], []>} : vector<2x64xf32>, vector<64x256xf32>, vector<2x256xf32> -> vector<2x256xf32>
    %662 = arith.addf %659, %661 : vector<2x256xf32>
    %663 = vector.extract_strided_slice %662 {offsets = [0, 0], sizes = [2, 64], strides = [1, 1]} : vector<2x256xf32> to vector<2x64xf32>
    %664 = arith.negf %663 : vector<2x64xf32>
    %665 = math.exp %664 : vector<2x64xf32>
    %cst_185 = arith.constant 1.000000e+00 : f32
    %666 = vector.broadcast %cst_185 : f32 to vector<2x64xf32>
    %667 = arith.addf %666, %665 : vector<2x64xf32>
    %668 = arith.divf %666, %667 : vector<2x64xf32>
    %669 = vector.extract_strided_slice %662 {offsets = [0, 64], sizes = [2, 64], strides = [1, 1]} : vector<2x256xf32> to vector<2x64xf32>
    %670 = arith.negf %669 : vector<2x64xf32>
    %671 = math.exp %670 : vector<2x64xf32>
    %cst_186 = arith.constant 1.000000e+00 : f32
    %672 = vector.broadcast %cst_186 : f32 to vector<2x64xf32>
    %673 = arith.addf %672, %671 : vector<2x64xf32>
    %674 = arith.divf %672, %673 : vector<2x64xf32>
    %675 = vector.extract_strided_slice %662 {offsets = [0, 128], sizes = [2, 64], strides = [1, 1]} : vector<2x256xf32> to vector<2x64xf32>
    %676 = math.tanh %675 : vector<2x64xf32>
    %677 = vector.extract_strided_slice %662 {offsets = [0, 192], sizes = [2, 64], strides = [1, 1]} : vector<2x256xf32> to vector<2x64xf32>
    %678 = arith.negf %677 : vector<2x64xf32>
    %679 = math.exp %678 : vector<2x64xf32>
    %cst_187 = arith.constant 1.000000e+00 : f32
    %680 = vector.broadcast %cst_187 : f32 to vector<2x64xf32>
    %681 = arith.addf %680, %679 : vector<2x64xf32>
    %682 = arith.divf %680, %681 : vector<2x64xf32>
    %683 = arith.mulf %674, %655 : vector<2x64xf32>
    %684 = arith.mulf %668, %676 : vector<2x64xf32>
    %685 = arith.addf %683, %684 : vector<2x64xf32>
    %686 = math.tanh %685 : vector<2x64xf32>
    %687 = arith.mulf %682, %686 : vector<2x64xf32>
    %c10 = arith.constant 10 : index
    %c0_188 = arith.constant 0 : index
    %688 = vector.load %arg15[%c10, %c0_188] : memref<16x64xf32, #tpu.memory_space<vmem>>, vector<2x64xf32>
    tpu.vector_store %arg15[%c10, %c0_188], %687 {strides = array<i32>} : memref<16x64xf32, #tpu.memory_space<vmem>>, vector<2x64xf32>,
    %689 = vector.extract_strided_slice %506 {offsets = [12, 0], sizes = [2, 256], strides = [1, 1]} : vector<16x256xf32> to vector<2x256xf32>
    %c0_189 = arith.constant 0 : index
    %c0_190 = arith.constant 0 : index
    %690 = vector.load %arg7[%c0_189, %c0_190] : memref<64x256xf32, #tpu.memory_space<vmem>>, vector<64x256xf32>
    %cst_191 = arith.constant dense<0.000000e+00> : vector<2x256xf32>
    %691 = tpu.matmul %687, %690, %cst_191 {dimension_numbers = #tpu.dot_dimension_numbers<[1], [0], [0], [1], [0, 0, 1, 1], [], []>} : vector<2x64xf32>, vector<64x256xf32>, vector<2x256xf32> -> vector<2x256xf32>
    %692 = arith.addf %689, %691 : vector<2x256xf32>
    %693 = vector.extract_strided_slice %692 {offsets = [0, 0], sizes = [2, 64], strides = [1, 1]} : vector<2x256xf32> to vector<2x64xf32>
    %694 = arith.negf %693 : vector<2x64xf32>
    %695 = math.exp %694 : vector<2x64xf32>
    %cst_192 = arith.constant 1.000000e+00 : f32
    %696 = vector.broadcast %cst_192 : f32 to vector<2x64xf32>
    %697 = arith.addf %696, %695 : vector<2x64xf32>
    %698 = arith.divf %696, %697 : vector<2x64xf32>
    %699 = vector.extract_strided_slice %692 {offsets = [0, 64], sizes = [2, 64], strides = [1, 1]} : vector<2x256xf32> to vector<2x64xf32>
    %700 = arith.negf %699 : vector<2x64xf32>
    %701 = math.exp %700 : vector<2x64xf32>
    %cst_193 = arith.constant 1.000000e+00 : f32
    %702 = vector.broadcast %cst_193 : f32 to vector<2x64xf32>
    %703 = arith.addf %702, %701 : vector<2x64xf32>
    %704 = arith.divf %702, %703 : vector<2x64xf32>
    %705 = vector.extract_strided_slice %692 {offsets = [0, 128], sizes = [2, 64], strides = [1, 1]} : vector<2x256xf32> to vector<2x64xf32>
    %706 = math.tanh %705 : vector<2x64xf32>
    %707 = vector.extract_strided_slice %692 {offsets = [0, 192], sizes = [2, 64], strides = [1, 1]} : vector<2x256xf32> to vector<2x64xf32>
    %708 = arith.negf %707 : vector<2x64xf32>
    %709 = math.exp %708 : vector<2x64xf32>
    %cst_194 = arith.constant 1.000000e+00 : f32
    %710 = vector.broadcast %cst_194 : f32 to vector<2x64xf32>
    %711 = arith.addf %710, %709 : vector<2x64xf32>
    %712 = arith.divf %710, %711 : vector<2x64xf32>
    %713 = arith.mulf %704, %685 : vector<2x64xf32>
    %714 = arith.mulf %698, %706 : vector<2x64xf32>
    %715 = arith.addf %713, %714 : vector<2x64xf32>
    %716 = math.tanh %715 : vector<2x64xf32>
    %717 = arith.mulf %712, %716 : vector<2x64xf32>
    %c12 = arith.constant 12 : index
    %c0_195 = arith.constant 0 : index
    %718 = vector.load %arg15[%c12, %c0_195] : memref<16x64xf32, #tpu.memory_space<vmem>>, vector<2x64xf32>
    tpu.vector_store %arg15[%c12, %c0_195], %717 {strides = array<i32>} : memref<16x64xf32, #tpu.memory_space<vmem>>, vector<2x64xf32>,
    %719 = vector.extract_strided_slice %506 {offsets = [14, 0], sizes = [2, 256], strides = [1, 1]} : vector<16x256xf32> to vector<2x256xf32>
    %c0_196 = arith.constant 0 : index
    %c0_197 = arith.constant 0 : index
    %720 = vector.load %arg7[%c0_196, %c0_197] : memref<64x256xf32, #tpu.memory_space<vmem>>, vector<64x256xf32>
    %cst_198 = arith.constant dense<0.000000e+00> : vector<2x256xf32>
    %721 = tpu.matmul %717, %720, %cst_198 {dimension_numbers = #tpu.dot_dimension_numbers<[1], [0], [0], [1], [0, 0, 1, 1], [], []>} : vector<2x64xf32>, vector<64x256xf32>, vector<2x256xf32> -> vector<2x256xf32>
    %722 = arith.addf %719, %721 : vector<2x256xf32>
    %723 = vector.extract_strided_slice %722 {offsets = [0, 0], sizes = [2, 64], strides = [1, 1]} : vector<2x256xf32> to vector<2x64xf32>
    %724 = arith.negf %723 : vector<2x64xf32>
    %725 = math.exp %724 : vector<2x64xf32>
    %cst_199 = arith.constant 1.000000e+00 : f32
    %726 = vector.broadcast %cst_199 : f32 to vector<2x64xf32>
    %727 = arith.addf %726, %725 : vector<2x64xf32>
    %728 = arith.divf %726, %727 : vector<2x64xf32>
    %729 = vector.extract_strided_slice %722 {offsets = [0, 64], sizes = [2, 64], strides = [1, 1]} : vector<2x256xf32> to vector<2x64xf32>
    %730 = arith.negf %729 : vector<2x64xf32>
    %731 = math.exp %730 : vector<2x64xf32>
    %cst_200 = arith.constant 1.000000e+00 : f32
    %732 = vector.broadcast %cst_200 : f32 to vector<2x64xf32>
    %733 = arith.addf %732, %731 : vector<2x64xf32>
    %734 = arith.divf %732, %733 : vector<2x64xf32>
    %735 = vector.extract_strided_slice %722 {offsets = [0, 128], sizes = [2, 64], strides = [1, 1]} : vector<2x256xf32> to vector<2x64xf32>
    %736 = math.tanh %735 : vector<2x64xf32>
    %737 = vector.extract_strided_slice %722 {offsets = [0, 192], sizes = [2, 64], strides = [1, 1]} : vector<2x256xf32> to vector<2x64xf32>
    %738 = arith.negf %737 : vector<2x64xf32>
    %739 = math.exp %738 : vector<2x64xf32>
    %cst_201 = arith.constant 1.000000e+00 : f32
    %740 = vector.broadcast %cst_201 : f32 to vector<2x64xf32>
    %741 = arith.addf %740, %739 : vector<2x64xf32>
    %742 = arith.divf %740, %741 : vector<2x64xf32>
    %743 = arith.mulf %734, %715 : vector<2x64xf32>
    %744 = arith.mulf %728, %736 : vector<2x64xf32>
    %745 = arith.addf %743, %744 : vector<2x64xf32>
    %746 = math.tanh %745 : vector<2x64xf32>
    %747 = arith.mulf %742, %746 : vector<2x64xf32>
    %c14 = arith.constant 14 : index
    %c0_202 = arith.constant 0 : index
    %748 = vector.load %arg15[%c14, %c0_202] : memref<16x64xf32, #tpu.memory_space<vmem>>, vector<2x64xf32>
    tpu.vector_store %arg15[%c14, %c0_202], %747 {strides = array<i32>} : memref<16x64xf32, #tpu.memory_space<vmem>>, vector<2x64xf32>,
    %c0_203 = arith.constant 0 : index
    %c0_204 = arith.constant 0 : index
    %749 = vector.load %arg15[%c0_203, %c0_204] : memref<16x64xf32, #tpu.memory_space<vmem>>, vector<16x64xf32>
    %c0_205 = arith.constant 0 : index
    %c0_206 = arith.constant 0 : index
    %750 = vector.load %arg9[%c0_205, %c0_206] : memref<64x128xf32, #tpu.memory_space<vmem>>, vector<64x128xf32>
    %cst_207 = arith.constant dense<0.000000e+00> : vector<16x128xf32>
    %751 = tpu.matmul %749, %750, %cst_207 {dimension_numbers = #tpu.dot_dimension_numbers<[1], [0], [0], [1], [0, 0, 1, 1], [], []>} : vector<16x64xf32>, vector<64x128xf32>, vector<16x128xf32> -> vector<16x128xf32>
    %c0_208 = arith.constant 0 : index
    %c0_209 = arith.constant 0 : index
    %752 = vector.load %arg10[%c0_208, %c0_209] : memref<1x128xf32, #tpu.memory_space<vmem>>, vector<1x128xf32>
    %753 = vector.broadcast %752 : vector<1x128xf32> to vector<16x128xf32>
    %754 = arith.addf %751, %753 : vector<16x128xf32>
    %c0_210 = arith.constant 0 : index
    %c0_211 = arith.constant 0 : index
    %755 = vector.load %arg11[%c0_210, %c0_211] : memref<16x128xf32, #tpu.memory_space<vmem>>, vector<16x128xf32>
    tpu.vector_store %arg11[%c0_210, %c0_211], %754 {strides = array<i32>} : memref<16x128xf32, #tpu.memory_space<vmem>>, vector<16x128xf32>,
    %cst_212 = arith.constant dense<0xFF800000> : vector<16xf32>
    %756 = vector.multi_reduction <maximumf>, %754, %cst_212 [1] : vector<16x128xf32> to vector<16xf32>
    %757 = vector.shape_cast %756 : vector<16xf32> to vector<16x1xf32>
    %758 = vector.broadcast %757 : vector<16x1xf32> to vector<16x128xf32>
    %759 = arith.subf %754, %758 : vector<16x128xf32>
    %760 = math.exp %759 : vector<16x128xf32>
    %cst_213 = arith.constant dense<0.000000e+00> : vector<16xf32>
    %761 = vector.multi_reduction <add>, %760, %cst_213 [1] : vector<16x128xf32> to vector<16xf32>
    %762 = vector.shape_cast %761 : vector<16xf32> to vector<16x1xf32>
    %763 = math.log %762 : vector<16x1xf32>
    %764 = arith.addf %757, %763 : vector<16x1xf32>
    %c0_214 = arith.constant 0 : index
    %c0_215 = arith.constant 0 : index
    %765 = vector.load %arg2[%c0_214, %c0_215] : memref<16x128xf32, #tpu.memory_space<vmem>>, vector<16x128xf32>
    %766 = arith.mulf %765, %754 : vector<16x128xf32>
    %cst_216 = arith.constant dense<0.000000e+00> : vector<16xf32>
    %767 = vector.multi_reduction <add>, %766, %cst_216 [1] : vector<16x128xf32> to vector<16xf32>
    %768 = vector.shape_cast %767 : vector<16xf32> to vector<16x1xf32>
    %769 = arith.subf %764, %768 : vector<16x1xf32>
    %cst_217 = arith.constant dense<0.000000e+00> : vector<1xf32>
    %770 = vector.multi_reduction <add>, %769, %cst_217 [0] : vector<16x1xf32> to vector<1xf32>
    %771 = vector.shape_cast %770 : vector<1xf32> to vector<1x1xf32>
    %cst_218 = arith.constant 1.600000e+01 : f32
    %772 = vector.broadcast %cst_218 : f32 to vector<1x1xf32>
    %773 = arith.divf %771, %772 : vector<1x1xf32>
    %c0_219 = arith.constant 0 : index
    %c0_220 = arith.constant 0 : index
    %774 = vector.load %arg12[%c0_219, %c0_220] : memref<1x1xf32, #tpu.memory_space<vmem>>, vector<1x1xf32>
    tpu.vector_store %arg12[%c0_219, %c0_220], %773 {strides = array<i32>} : memref<1x1xf32, #tpu.memory_space<vmem>>, vector<1x1xf32>,
    return
  }
}

</mosaic_0001>

<bundles_post_ra>
// kernel: seq2seq_forward.1
= control target key start
LH: loop header
LB: loop body
LE: loop exit
PB: predicated region body
PF: predicated region fallthrough
CT: control target
= control target key end

     0   :  { %vm52_vm0 = vcmask 130048   ;;  %v4112_v4 = vmov 0.0|0.0   ;;  %vm4113_vm1 = vmmov 0   ;;  %v4114_v11 = vmov 0.0   ;;  %s4816_s0 = inlined_call_operand.vmem [shape: f32[16,16], index: 0, kind: input, shape index: {}]   ;;  %s4817_s1 = inlined_call_operand.vmem [shape: f32[16,16], index: 1, kind: input, shape index: {}]   ;;  %s4818_s2 = inlined_call_operand.vmem [shape: f32[16,128], index: 2, kind: input, shape index: {}]   ;;  %s4819_s3 = inlined_call_operand.vmem [shape: f32[2,16,128], index: 3, kind: input, shape index: {}]   ;;  %s4820_s4 = inlined_call_operand.vmem [shape: f32[2,32,128], index: 4, kind: input, shape index: {}]   ;;  %s4821_s5 = inlined_call_operand.vmem [shape: f32[2,1,128], index: 5, kind: input, shape index: {}]   ;;  %s4822_s6 = inlined_call_operand.vmem [shape: f32[16,256], index: 6, kind: input, shape index: {}]   ;;  %s4823_s7 = inlined_call_operand.vmem [shape: f32[64,256], index: 7, kind: input, shape index: {}]   ;;  %s4824_s8 = inlined_call_operand.vmem [shape: f32[1,256], index: 8, kind: input, shape index: {}]   ;;  %s4825_s9 = inlined_call_operand.vmem [shape: f32[64,128], index: 9, kind: input, shape index: {}]   ;;  %s4826_s10 = inlined_call_operand.vmem [shape: f32[1,128], index: 10, kind: input, shape index: {}]   ;;  %s4827_s11 = inlined_call_operand.vmem [shape: f32[16,128], index: 11, kind: output, shape index: {0}]   ;;  %s4828_s12 = inlined_call_operand.hbm [shape: f32[1,1], index: 12, kind: output, shape index: {1}]  }
   0x1   :  { %v43_v0 = vld [vmem:[%s4819_s3] sm:$0xff]  ;;  %v44_v1 = vld [vmem:[%s4819_s3 + $0x8] sm:$0xff]  ;;  %3611 = vmatprep.subr.bf16.mxu1 %v4112_v4  ;;  %v3221_v8 = vld [vmem:[%s4819_s3 + $0x10] sm:$0xff]  ;;  %3421 = vmatprep.mubr.msk.f32.mxu1 %vm4113_vm1, %v4114_v11 }
   0x2   :  { %v3228_v2 = vld [vmem:[%s4820_s4 + $0x20] sm:$0xff]  ;;  %v3597_v3 = vpack.c.bf16 %v44_v1, %v43_v0  ;;  %v3229_v5 = vld [vmem:[%s4820_s4 + $0x28] sm:$0xff]  ;;  %v3222_v9 = vld [vmem:[%s4819_s3 + $0x18] sm:$0xff] }
   0x3   :  { %v41_v6 = vld [vmem:[%s4816_s0] sm:$0xff]  ;;  %v4200_v7 = vpack.c.bf16 %v3229_v5, %v3228_v2  ;;  %v3230_v10 = vld [vmem:[%s4820_s4 + $0x30] sm:$0xff]  ;;  %v3601_v12 = vpack.c.bf16 %v3222_v9, %v3221_v8  ;;  %v3231_v13 = vld [vmem:[%s4820_s4 + $0x38] sm:$0xff] }
   0x4   :  { %3392 = vmatprep.mubr.msk.f32.mxu0 %vm52_vm0, %v41_v6  ;;  %3598 = vmatprep.subr.bf16.mxu0 %v3597_v3  ;;  %v42_v14 = vld [vmem:[%s4816_s0 + $0x8] sm:$0xff]  ;;  %v4221_v15 = vpack.c.bf16 %v3231_v13, %v3230_v10 }
   0x5   :  { %3600 = vmatpush3.bf16.msra.mxu0 %v3597_v3  ;;  %3613 = vmatpush3.bf16.msra.mxu1 %v4200_v7 }
   0x6   :  { %18 = vsyncpa [#allocation6], 0  ;;  %3602 = vmatprep.subr.bf16.mxu0 %v3601_v12  ;;  %3614 = vmatprep.subr.bf16.mxu1 %v4112_v4  ;;  %v220_v16 = vld [vmem:[%s4820_s4] sm:$0xff]  ;;  %v221_v17 = vld [vmem:[%s4820_s4 + $0x8] sm:$0xff]  ;;  %s4116_s14 = smov 32   ;;  %vm224_vm2 = vcmask 261120  }
   0x7   :  { %v4232_v18 = vpack.c.bf16 %v221_v17, %v220_v16  ;;  %v222_v19 = vld [vmem:[%s4820_s4 + $0x10] sm:$0xff]  ;;  %v223_v20 = vld [vmem:[%s4820_s4 + $0x18] sm:$0xff]  ;;  %v3218_v22 = vld [vmem:[%s4821_s5] ss:$0 sm:$0xff]  ;;  %vm1916_vm3 = vcmask 261126   ;;  %vm1922_vm4 = vcmask 517376  }
   0x8   :  { %3393 = vmatmul.mubr.msk.f32.vlgmr.msra.gmra.mrb[0].mxu0 %vm52_vm0, %v42_v14  ;;  %v4246_v21 = vpack.c.bf16 %v223_v20, %v222_v19  ;;  %v3224_v26 = vld [vmem:[%s4821_s5 + $0x1] ss:$0 sm:$0xff]  ;;  %s4115_s5 = smov 64   ;;  %vm2049_vm5 = vcmask 523264   ;;  %vm2156_vm6 = vcmask 517120   ;;  %vm2284_vm7 = vcmask 519170  }
   0x9   :  { %3604 = vmatpush3.bf16.msra.mxu0 %v3601_v12  ;;  %3616 = vmatpush3.bf16.msra.mxu1 %v4221_v15  ;;  %vm2546_vm8 = vcmask 523270   ;;  %vm2415_vm9 = vcmask 521220   ;;  %vm3198_vm10 = vcmask 0  }
   0xa   :  { %3399 = vmatprep.mubr.msk.f32.mxu0 %vm52_vm0, %v41_v6  ;;  %3605 = vmatprep.subr.bf16.mxu0 %v4112_v4 }
   0xb   :  { %3623 = vmatprep.subr.bf16.mxu1 %v4112_v4 }
   0xc   :  { %3400 = vmatmul.mubr.msk.f32.vlgmr.msra.gmra.mrb[2].mxu0 %vm52_vm0, %v42_v14  ;;  %3422 = vmatmul.mubr.f32.vlgmr.msra.gmra.mrb[0].mxu1 %v4114_v11 }
   0xd   :  { %3607 = vmatpush3.bf16.msra.mxu0 %v4232_v18  ;;  %3410 = vmatprep.mubr.msk.f32.mxu0 %vm4113_vm1, %v4114_v11 }
   0xe   :  { %3608 = vmatprep.subr.bf16.mxu0 %v4112_v4  ;;  %3625 = vmatpush3.bf16.msra.mxu1 %v4200_v7 }
   0xf   :  { %3626 = vmatprep.subr.bf16.mxu1 %v4112_v4  ;;  %3443 = vmatprep.mubr.msk.f32.mxu1 %vm4113_vm1, %v4114_v11 }
  0x11   :  { %3610 = vmatpush3.bf16.msra.mxu0 %v4246_v21 }
  0x12   :  { %3617 = vmatprep.subr.bf16.mxu0 %v4112_v4  ;;  %3628 = vmatpush3.bf16.msra.mxu1 %v4221_v15 }
  0x13   :  { %3635 = vmatprep.subr.bf16.mxu1 %v4112_v4 }
  0x14   :  { %3411 = vmatmul.mubr.f32.vlgmr.msra.gmra.mrb[4].mxu0 %v4114_v11 }
  0x15   :  { %3619 = vmatpush3.bf16.msra.mxu0 %v4232_v18  ;;  %3432 = vmatprep.mubr.msk.f32.mxu0 %vm4113_vm1, %v4114_v11 }
  0x16   :  { %3620 = vmatprep.subr.bf16.mxu0 %v4112_v4 }
  0x19   :  { %3622 = vmatpush3.bf16.msra.mxu0 %v4246_v21 }
  0x1a   :  { %3629 = vmatprep.subr.bf16.mxu0 %v4112_v4 }
  0xdb   :  { %v3394_v23 = vpop.f32.mrb[0].mxu0 }
  0xdc   :  { %v4269_v24 = vadd.f32 %v3394_v23, %v3218_v22  ;;  %v125_v25 = vpop.f32.mrb[1].mxu0 }
  0xdd   :  { %v4276_v32 = vadd.f32 %v3218_v22, %v125_v25 }
  0xdf   :  { %v3401_v27 = vpop.f32.mrb[2].mxu0  ;;  %v394_v28 = vpop.f32.mrb[0].mxu1 }
  0xe0   :  { %v211_v29 = vpop.f32.mrb[3].mxu0  ;;  %v3423_v30 = vpop.f32.mrb[1].mxu1  ;;  %v4278_v33 = vadd.f32 %v3401_v27, %v3224_v26  ;;  %v399_v34 = vrot.slane %v394_v28, 2 }
  0xe1   :  { %v4274_v31 = vadd.f32 %v3224_v26, %v211_v29 }
  0xe2   :  { %v401_v38 = vadd.f32 %v399_v34, %v4278_v33 }
  0xe4   :  { %v3232_v42 = vmul.f32 -1.442695, %v401_v38 }
  0xe7   :  { %v294_v35 = vpop.f32.mrb[4].mxu0 }
  0xe8   :  { %v298_v36 = vadd.f32 %v294_v35, %v4276_v32  ;;  %v3412_v37 = vpop.f32.mrb[5].mxu0 }
  0xea   :  { %3856 = vtanh.f32 %v298_v36  ;;  %v3227_v41 = vmul.f32 -1.442695, %v298_v36 }
  0xeb   :  { %3858 = vtanh.f32 %v401_v38 }
  0xec   :  { %3860 = vpow2.f32 %v3227_v41 }
  0xed   :  { %3862 = vpow2.f32 %v3232_v42 }
  0xf4   :  { %v3857_v39 = vpop.eup %3856 }
  0xf5   :  { %308 = vrot.lane.b32.xlu0 %v3857_v39, %s4115_s5  ;;  %v3859_v40 = vpop.eup %3858 }
  0xf6   :  { %v3861_v43 = vpop.eup %3860 }
  0xf7   :  { %v302_v44 = vadd.f32 1.0, %v3861_v43  ;;  %v3863_v45 = vpop.eup %3862 }
  0xf8   :  { %v405_v46 = vadd.f32 1.0, %v3863_v45 }
  0xf9   :  { %411 = vrot.lane.b32.xlu0 %v3859_v40, %s4115_s5  ;;  %3864 = vrcp.f32 %v302_v44 }
  0xfa   :  { %3866 = vrcp.f32 %v405_v46 }
 0x103   :  { %v3865_v47 = vpop.eup %3864 }
 0x104   :  { %v3867_v50 = vpop.eup %3866  ;;  %v306_v53 = vmul.f32 0.0, %v3865_v47 }
 0x105   :  { %v409_v56 = vmul.f32 0.0, %v3867_v50 }
 0x167   :  { %v309_v48 = vpop.permute.xlu0 %308 }
 0x168   :  { %v311_v49 = vmul.f32 %v3865_v47, %v309_v48 }
 0x16a   :  { %313 = vrot.lane.b32.xlu1 %v311_v49, %s4116_s14 }
 0x16b   :  { %v412_v51 = vpop.permute.xlu0 %411 }
 0x16c   :  { %v414_v52 = vmul.f32 %v3867_v50, %v412_v51 }
 0x16e   :  { %416 = vrot.lane.b32.xlu1 %v414_v52, %s4116_s14 }
 0x1dc   :  { %v314_v54 = vpop.permute.xlu1 %313 }
 0x1dd   :  { %v4286_v55 = vadd.f32 %v314_v54, %v306_v53 }
 0x1df   :  { %3868 = vtanh.f32 %v4286_v55  ;;  %v513_v36 = vrot.slane %v4286_v55, 6 }
 0x1e0   :  { %v417_v57 = vpop.permute.xlu1 %416 }
 0x1e1   :  { %v4289_v58 = vadd.f32 %v417_v57, %v409_v56 }
 0x1e3   :  { %3870 = vtanh.f32 %v4289_v58  ;;  %v620_v40 = vrot.slane %v4289_v58, 2 }
 0x1e9   :  { %v3869_v59 = vpop.eup %3868 }
 0x1ea   :  { %319 = vrot.lane.b32.xlu0 %v3869_v59, %s4115_s5 }
 0x1ed   :  { %v3871_v60 = vpop.eup %3870 }
 0x1ee   :  { %422 = vrot.lane.b32.xlu1 %v3871_v60, %s4115_s5 }
 0x25c   :  { %v320_v61 = vpop.permute.xlu0 %319 }
 0x25d   :  { %v322_v62 = vmul.f32 %v3865_v47, %v320_v61 }
 0x25f   :  { %427 = vrot.lane.b32.xlu0 %v322_v62, %s4116_s14 }
 0x260   :  { %v423_v63 = vpop.permute.xlu1 %422 }
 0x261   :  { %v425_v0 = vmul.f32 %v3867_v50, %v423_v63 }
 0x263   :  { %v533_v1 = vrot.slane %v425_v0, 6 }
 0x265   :  { %534 = vrot.lane.b32.xlu1 %v533_v1, %s4116_s14 }
 0x2d1   :  { %v428_v2 = vpop.permute.xlu0 %427 }
 0x2d2   :  { %3433 = vmatmul.mubr.msk.f32.vlgmr.msra.gmra.mrb[6].mxu0 %vm224_vm2, %v428_v2 }
 0x2d3   :  { %3631 = vmatpush3.bf16.msra.mxu0 %v4232_v18  ;;  %3454 = vmatprep.mubr.msk.f32.mxu0 %vm4113_vm1, %v4114_v11 }
 0x2d4   :  { %3632 = vmatprep.subr.bf16.mxu0 %v4112_v4 }
 0x2d7   :  { %v535_v3 = vpop.permute.xlu1 %534  ;;  %3634 = vmatpush3.bf16.msra.mxu0 %v4246_v21 }
 0x2d8   :  { %3444 = vmatmul.mubr.msk.f32.vlgmr.msra.gmra.mrb[2].mxu1 %vm224_vm2, %v535_v3  ;;  %3641 = vmatprep.subr.bf16.mxu0 %v4112_v4 }
 0x2d9   :  { %3637 = vmatpush3.bf16.msra.mxu1 %v4200_v7  ;;  %3465 = vmatprep.mubr.msk.f32.mxu1 %vm4113_vm1, %v4114_v11 }
 0x2da   :  { %3638 = vmatprep.subr.bf16.mxu1 %v4112_v4 }
 0x2dd   :  { %3640 = vmatpush3.bf16.msra.mxu1 %v4221_v15 }
 0x2de   :  { %3647 = vmatprep.subr.bf16.mxu1 %v4112_v4 }
 0x3a5   :  { %v497_v5 = vpop.f32.mrb[6].mxu0 }
 0x3a6   :  { %v502_v6 = vrot.slane %v497_v5, 6  ;;  %v3434_v8 = vpop.f32.mrb[7].mxu0 }
 0x3a8   :  { %v504_v9 = vadd.f32 %v502_v6, %v4276_v32 }
 0x3aa   :  { %3872 = vtanh.f32 %v504_v9  ;;  %v3234_v19 = vmul.f32 -1.442695, %v504_v9 }
 0x3ab   :  { %v604_v10 = vpop.f32.mrb[2].mxu1 }
 0x3ac   :  { %v609_v12 = vrot.slane %v604_v10, 4  ;;  %v3445_v13 = vpop.f32.mrb[3].mxu1 }
 0x3ae   :  { %v611_v14 = vadd.f32 %v609_v12, %v4278_v33 }
 0x3b0   :  { %3874 = vtanh.f32 %v611_v14  ;;  %v3236_v20 = vmul.f32 -1.442695, %v611_v14 }
 0x3b1   :  { %3876 = vpow2.f32 %v3234_v19 }
 0x3b2   :  { %3878 = vpow2.f32 %v3236_v20 }
 0x3b4   :  { %v3873_v16 = vpop.eup %3872 }
 0x3b5   :  { %517 = vrot.lane.b32.xlu0 %v3873_v16, %s4115_s5 }
 0x3ba   :  { %v3875_v17 = vpop.eup %3874 }
 0x3bb   :  { %624 = vrot.lane.b32.xlu1 %v3875_v17, %s4115_s5  ;;  %v3877_v22 = vpop.eup %3876 }
 0x3bc   :  { %v508_v23 = vadd.f32 1.0, %v3877_v22  ;;  %v3879_v25 = vpop.eup %3878 }
 0x3bd   :  { %v615_v26 = vadd.f32 1.0, %v3879_v25 }
 0x3be   :  { %3880 = vrcp.f32 %v508_v23 }
 0x3bf   :  { %3882 = vrcp.f32 %v615_v26 }
 0x3c8   :  { %v3881_v27 = vpop.eup %3880 }
 0x3c9   :  { %v3883_v30 = vpop.eup %3882  ;;  %v515_v37 = vmul.f32 %v3881_v27, %v513_v36 }
 0x3ca   :  { %v622_v41 = vmul.f32 %v3883_v30, %v620_v40 }
 0x427   :  { %v518_v28 = vpop.permute.xlu0 %517 }
 0x428   :  { %v520_v29 = vmul.f32 %v3881_v27, %v518_v28 }
 0x42a   :  { %522 = vrot.lane.b32.xlu0 %v520_v29, %s4116_s14 }
 0x42d   :  { %v625_v34 = vpop.permute.xlu1 %624 }
 0x42e   :  { %v627_v35 = vmul.f32 %v3883_v30, %v625_v34 }
 0x430   :  { %629 = vrot.lane.b32.xlu1 %v627_v35, %s4116_s14 }
 0x49c   :  { %v523_v38 = vpop.permute.xlu0 %522 }
 0x49d   :  { %v4317_v39 = vadd.f32 %v523_v38, %v515_v37 }
 0x49f   :  { %3884 = vtanh.f32 %v4317_v39  ;;  %v727_v16 = vrot.slane %v4317_v39, 6 }
 0x4a2   :  { %v630_v42 = vpop.permute.xlu1 %629 }
 0x4a3   :  { %v4321_v43 = vadd.f32 %v630_v42, %v622_v41 }
 0x4a5   :  { %3886 = vtanh.f32 %v4321_v43  ;;  %v834_v22 = vrot.slane %v4321_v43, 2 }
 0x4a9   :  { %v3885_v44 = vpop.eup %3884 }
 0x4aa   :  { %528 = vrot.lane.b32.xlu0 %v3885_v44, %s4115_s5 }
 0x4af   :  { %v3887_v45 = vpop.eup %3886 }
 0x4b0   :  { %635 = vrot.lane.b32.xlu1 %v3887_v45, %s4115_s5 }
 0x51c   :  { %v529_v46 = vpop.permute.xlu0 %528 }
 0x51d   :  { %v531_v47 = vmul.f32 %v3881_v27, %v529_v46 }
 0x51f   :  { %v640_v48 = vrot.slane %v531_v47, 2 }
 0x521   :  { %641 = vrot.lane.b32.xlu0 %v640_v48, %s4116_s14 }
 0x522   :  { %v636_v49 = vpop.permute.xlu1 %635 }
 0x523   :  { %v638_v50 = vmul.f32 %v3883_v30, %v636_v49 }
 0x525   :  { %v747_v51 = vrot.slane %v638_v50, 4 }
 0x527   :  { %748 = vrot.lane.b32.xlu1 %v747_v51, %s4116_s14 }
 0x593   :  { %v642_v52 = vpop.permute.xlu0 %641 }
 0x594   :  { %3455 = vmatmul.mubr.msk.f32.vlgmr.msra.gmra.mrb[8].mxu0 %vm224_vm2, %v642_v52 }
 0x595   :  { %3643 = vmatpush3.bf16.msra.mxu0 %v4232_v18  ;;  %3476 = vmatprep.mubr.msk.f32.mxu0 %vm4113_vm1, %v4114_v11 }
 0x596   :  { %3644 = vmatprep.subr.bf16.mxu0 %v4112_v4 }
 0x599   :  { %v749_v53 = vpop.permute.xlu1 %748  ;;  %3646 = vmatpush3.bf16.msra.mxu0 %v4246_v21 }
 0x59a   :  { %3466 = vmatmul.mubr.msk.f32.vlgmr.msra.gmra.mrb[4].mxu1 %vm224_vm2, %v749_v53  ;;  %3653 = vmatprep.subr.bf16.mxu0 %v4112_v4 }
 0x59b   :  { %3649 = vmatpush3.bf16.msra.mxu1 %v4200_v7  ;;  %3487 = vmatprep.mubr.msk.f32.mxu1 %vm4113_vm1, %v4114_v11 }
 0x59c   :  { %3650 = vmatprep.subr.bf16.mxu1 %v4112_v4 }
 0x59f   :  { %3652 = vmatpush3.bf16.msra.mxu1 %v4221_v15 }
 0x5a0   :  { %3659 = vmatprep.subr.bf16.mxu1 %v4112_v4 }
 0x667   :  { %v711_v54 = vpop.f32.mrb[8].mxu0 }
 0x668   :  { %v716_v55 = vrot.slane %v711_v54, 4  ;;  %v3456_v56 = vpop.f32.mrb[9].mxu0 }
 0x66a   :  { %v718_v57 = vadd.f32 %v716_v55, %v4276_v32 }
 0x66c   :  { %3888 = vtanh.f32 %v718_v57  ;;  %v3238_v0 = vmul.f32 -1.442695, %v718_v57 }
 0x66d   :  { %v818_v58 = vpop.f32.mrb[4].mxu1 }
 0x66e   :  { %v823_v59 = vrot.slane %v818_v58, 6  ;;  %v3467_v60 = vpop.f32.mrb[5].mxu1 }
 0x670   :  { %v825_v61 = vadd.f32 %v823_v59, %v4278_v33 }
 0x672   :  { %3890 = vtanh.f32 %v825_v61  ;;  %v3240_v1 = vmul.f32 -1.442695, %v825_v61 }
 0x673   :  { %3892 = vpow2.f32 %v3238_v0 }
 0x674   :  { %3894 = vpow2.f32 %v3240_v1 }
 0x676   :  { %v3889_v62 = vpop.eup %3888 }
 0x677   :  { %731 = vrot.lane.b32.xlu0 %v3889_v62, %s4115_s5 }
 0x67c   :  { %v3891_v63 = vpop.eup %3890 }
 0x67d   :  { %838 = vrot.lane.b32.xlu1 %v3891_v63, %s4115_s5  ;;  %v3893_v2 = vpop.eup %3892 }
 0x67e   :  { %v722_v3 = vadd.f32 1.0, %v3893_v2  ;;  %v3895_v5 = vpop.eup %3894 }
 0x67f   :  { %v829_v6 = vadd.f32 1.0, %v3895_v5 }
 0x680   :  { %3896 = vrcp.f32 %v722_v3 }
 0x681   :  { %3898 = vrcp.f32 %v829_v6 }
 0x68a   :  { %v3897_v8 = vpop.eup %3896 }
 0x68b   :  { %v3899_v12 = vpop.eup %3898  ;;  %v729_v17 = vmul.f32 %v3897_v8, %v727_v16 }
 0x68c   :  { %v836_v23 = vmul.f32 %v3899_v12, %v834_v22 }
 0x6e9   :  { %v732_v9 = vpop.permute.xlu0 %731 }
 0x6ea   :  { %v734_v10 = vmul.f32 %v3897_v8, %v732_v9 }
 0x6ec   :  { %736 = vrot.lane.b32.xlu0 %v734_v10, %s4116_s14 }
 0x6ef   :  { %v839_v13 = vpop.permute.xlu1 %838 }
 0x6f0   :  { %v841_v14 = vmul.f32 %v3899_v12, %v839_v13 }
 0x6f2   :  { %843 = vrot.lane.b32.xlu1 %v841_v14, %s4116_s14 }
 0x75e   :  { %v737_v19 = vpop.permute.xlu0 %736 }
 0x75f   :  { %v4349_v20 = vadd.f32 %v737_v19, %v729_v17 }
 0x761   :  { %3900 = vtanh.f32 %v4349_v20  ;;  %v941_v59 = vrot.slane %v4349_v20, 6 }
 0x764   :  { %v844_v25 = vpop.permute.xlu1 %843 }
 0x765   :  { %v4353_v26 = vadd.f32 %v844_v25, %v836_v23 }
 0x767   :  { %3902 = vtanh.f32 %v4353_v26  ;;  %v1045_v62 = vrot.slane %v4353_v26, 2 }
 0x76b   :  { %v3901_v27 = vpop.eup %3900 }
 0x76c   :  { %742 = vrot.lane.b32.xlu0 %v3901_v27, %s4115_s5 }
 0x771   :  { %v3903_v28 = vpop.eup %3902 }
 0x772   :  { %849 = vrot.lane.b32.xlu1 %v3903_v28, %s4115_s5 }
 0x7de   :  { %v743_v29 = vpop.permute.xlu0 %742 }
 0x7df   :  { %v745_v30 = vmul.f32 %v3897_v8, %v743_v29 }
 0x7e1   :  { %v854_v34 = vrot.slane %v745_v30, 4 }
 0x7e3   :  { %855 = vrot.lane.b32.xlu0 %v854_v34, %s4116_s14 }
 0x7e4   :  { %v850_v35 = vpop.permute.xlu1 %849 }
 0x7e5   :  { %v852_v36 = vmul.f32 %v3899_v12, %v850_v35 }
 0x7e7   :  { %v961_v37 = vrot.slane %v852_v36, 2 }
 0x7e9   :  { %962 = vrot.lane.b32.xlu1 %v961_v37, %s4116_s14 }
 0x855   :  { %v856_v38 = vpop.permute.xlu0 %855 }
 0x856   :  { %3477 = vmatmul.mubr.msk.f32.vlgmr.msra.gmra.mrb[10].mxu0 %vm224_vm2, %v856_v38 }
 0x857   :  { %3655 = vmatpush3.bf16.msra.mxu0 %v4232_v18  ;;  %3498 = vmatprep.mubr.msk.f32.mxu0 %vm4113_vm1, %v4114_v11 }
 0x858   :  { %3656 = vmatprep.subr.bf16.mxu0 %v4112_v4 }
 0x85b   :  { %v963_v39 = vpop.permute.xlu1 %962  ;;  %3658 = vmatpush3.bf16.msra.mxu0 %v4246_v21 }
 0x85c   :  { %3488 = vmatmul.mubr.msk.f32.vlgmr.msra.gmra.mrb[6].mxu1 %vm224_vm2, %v963_v39  ;;  %3665 = vmatprep.subr.bf16.mxu0 %v4112_v4 }
 0x85d   :  { %3661 = vmatpush3.bf16.msra.mxu1 %v4200_v7  ;;  %3509 = vmatprep.mubr.msk.f32.mxu1 %vm4113_vm1, %v4114_v11 }
 0x85e   :  { %3662 = vmatprep.subr.bf16.mxu1 %v4112_v4 }
 0x861   :  { %3664 = vmatpush3.bf16.msra.mxu1 %v4221_v15 }
 0x862   :  { %3671 = vmatprep.subr.bf16.mxu1 %v4112_v4 }
 0x929   :  { %v925_v40 = vpop.f32.mrb[10].mxu0 }
 0x92a   :  { %v930_v41 = vrot.slane %v925_v40, 2  ;;  %v3478_v42 = vpop.f32.mrb[11].mxu0 }
 0x92c   :  { %v932_v43 = vadd.f32 %v930_v41, %v4276_v32 }
 0x92e   :  { %3904 = vtanh.f32 %v932_v43  ;;  %v3242_v49 = vmul.f32 -1.442695, %v932_v43 }
 0x92f   :  { %v1032_v44 = vpop.f32.mrb[6].mxu1 }
 0x930   :  { %v1036_v45 = vadd.f32 %v1032_v44, %v4278_v33  ;;  %v3489_v46 = vpop.f32.mrb[7].mxu1 }
 0x932   :  { %3906 = vtanh.f32 %v1036_v45  ;;  %v3244_v50 = vmul.f32 -1.442695, %v1036_v45 }
 0x933   :  { %3908 = vpow2.f32 %v3242_v49 }
 0x934   :  { %3910 = vpow2.f32 %v3244_v50 }
 0x938   :  { %v3905_v47 = vpop.eup %3904 }
 0x939   :  { %945 = vrot.lane.b32.xlu0 %v3905_v47, %s4115_s5 }
 0x93c   :  { %v3907_v48 = vpop.eup %3906 }
 0x93d   :  { %1049 = vrot.lane.b32.xlu1 %v3907_v48, %s4115_s5  ;;  %v3909_v51 = vpop.eup %3908 }
 0x93e   :  { %v936_v52 = vadd.f32 1.0, %v3909_v51  ;;  %v3911_v53 = vpop.eup %3910 }
 0x93f   :  { %v1040_v32 = vadd.f32 1.0, %v3911_v53 }
 0x940   :  { %3912 = vrcp.f32 %v936_v52 }
 0x941   :  { %3914 = vrcp.f32 %v1040_v32 }
 0x94a   :  { %v3913_v54 = vpop.eup %3912 }
 0x94b   :  { %v3915_v56 = vpop.eup %3914  ;;  %v943_v60 = vmul.f32 %v3913_v54, %v941_v59 }
 0x94c   :  { %v1047_v0 = vmul.f32 %v3915_v56, %v1045_v62 }
 0x9ab   :  { %v946_v33 = vpop.permute.xlu0 %945 }
 0x9ac   :  { %v948_v55 = vmul.f32 %v3913_v54, %v946_v33 }
 0x9ae   :  { %950 = vrot.lane.b32.xlu0 %v948_v55, %s4116_s14 }
 0x9af   :  { %v1050_v57 = vpop.permute.xlu1 %1049 }
 0x9b0   :  { %v1052_v58 = vmul.f32 %v3915_v56, %v1050_v57 }
 0x9b2   :  { %1054 = vrot.lane.b32.xlu1 %v1052_v58, %s4116_s14 }
 0xa20   :  { %v951_v61 = vpop.permute.xlu0 %950 }
 0xa21   :  { %v4382_v63 = vadd.f32 %v951_v61, %v943_v60 }
 0xa23   :  { %3916 = vtanh.f32 %v4382_v63  ;;  %v1149_v43 = vrot.slane %v4382_v63, 6 }
 0xa24   :  { %v1055_v1 = vpop.permute.xlu1 %1054 }
 0xa25   :  { %v4385_v2 = vadd.f32 %v1055_v1, %v1047_v0 }
 0xa27   :  { %3918 = vtanh.f32 %v4385_v2  ;;  %v1255_v46 = vrot.slane %v4385_v2, 2 }
 0xa2d   :  { %v3917_v3 = vpop.eup %3916 }
 0xa2e   :  { %956 = vrot.lane.b32.xlu0 %v3917_v3, %s4115_s5 }
 0xa31   :  { %v3919_v5 = vpop.eup %3918 }
 0xa32   :  { %1060 = vrot.lane.b32.xlu1 %v3919_v5, %s4115_s5 }
 0xaa0   :  { %v957_v6 = vpop.permute.xlu0 %956 }
 0xaa1   :  { %v959_v8 = vmul.f32 %v3913_v54, %v957_v6 }
 0xaa3   :  { %v1065_v9 = vrot.slane %v959_v8, 6 }
 0xaa4   :  { %v1061_v10 = vpop.permute.xlu1 %1060 }
 0xaa5   :  { %v1063_v12 = vmul.f32 %v3915_v56, %v1061_v10  ;;  %1066 = vrot.lane.b32.xlu1 %v1065_v9, %s4116_s14 }
 0xaa7   :  { %1169 = vrot.lane.b32.xlu0 %v1063_v12, %s4116_s14 }
 0xb17   :  { %v1067_v13 = vpop.permute.xlu1 %1066 }
 0xb18   :  { %3499 = vmatmul.mubr.msk.f32.vlgmr.msra.gmra.mrb[12].mxu0 %vm224_vm2, %v1067_v13 }
 0xb19   :  { %v1170_v14 = vpop.permute.xlu0 %1169  ;;  %3667 = vmatpush3.bf16.msra.mxu0 %v4232_v18  ;;  %3520 = vmatprep.mubr.msk.f32.mxu0 %vm4113_vm1, %v4114_v11 }
 0xb1a   :  { %3510 = vmatmul.mubr.msk.f32.vlgmr.msra.gmra.mrb[8].mxu1 %vm224_vm2, %v1170_v14  ;;  %3668 = vmatprep.subr.bf16.mxu0 %v4112_v4 }
 0xb1b   :  { %3673 = vmatpush3.bf16.msra.mxu1 %v4200_v7  ;;  %3531 = vmatprep.mubr.msk.f32.mxu1 %vm4113_vm1, %v4114_v11 }
 0xb1c   :  { %3674 = vmatprep.subr.bf16.mxu1 %v4112_v4 }
 0xb1d   :  { %3670 = vmatpush3.bf16.msra.mxu0 %v4246_v21 }
 0xb1e   :  { %3677 = vmatprep.subr.bf16.mxu0 %v4112_v4 }
 0xb1f   :  { %3676 = vmatpush3.bf16.msra.mxu1 %v4221_v15 }
 0xb20   :  { %3683 = vmatprep.subr.bf16.mxu1 %v4112_v4 }
 0xbeb   :  { %v1136_v16 = vpop.f32.mrb[12].mxu0 }
 0xbec   :  { %v1140_v17 = vadd.f32 %v1136_v16, %v4269_v24  ;;  %v3500_v19 = vpop.f32.mrb[13].mxu0 }
 0xbed   :  { %v1239_v20 = vpop.f32.mrb[8].mxu1 }
 0xbee   :  { %3920 = vtanh.f32 %v1140_v17  ;;  %v1244_v22 = vrot.slane %v1239_v20, 2  ;;  %v3511_v23 = vpop.f32.mrb[9].mxu1  ;;  %v3246_v28 = vmul.f32 -1.442695, %v1140_v17 }
 0xbf0   :  { %v1246_v25 = vadd.f32 %v1244_v22, %v4274_v31 }
 0xbf2   :  { %3922 = vtanh.f32 %v1246_v25  ;;  %v3248_v29 = vmul.f32 -1.442695, %v1246_v25 }
 0xbf3   :  { %3924 = vpow2.f32 %v3246_v28 }
 0xbf4   :  { %3926 = vpow2.f32 %v3248_v29 }
 0xbf8   :  { %v3921_v26 = vpop.eup %3920 }
 0xbf9   :  { %1153 = vrot.lane.b32.xlu0 %v3921_v26, %s4115_s5 }
 0xbfc   :  { %v3923_v27 = vpop.eup %3922 }
 0xbfd   :  { %1259 = vrot.lane.b32.xlu1 %v3923_v27, %s4115_s5  ;;  %v3925_v30 = vpop.eup %3924 }
 0xbfe   :  { %v1144_v34 = vadd.f32 1.0, %v3925_v30  ;;  %v3927_v35 = vpop.eup %3926 }
 0xbff   :  { %v1250_v36 = vadd.f32 1.0, %v3927_v35 }
 0xc00   :  { %3928 = vrcp.f32 %v1144_v34 }
 0xc01   :  { %3930 = vrcp.f32 %v1250_v36 }
 0xc0a   :  { %v3929_v37 = vpop.eup %3928 }
 0xc0b   :  { %v3931_v40 = vpop.eup %3930  ;;  %v1151_v44 = vmul.f32 %v3929_v37, %v1149_v43 }
 0xc0c   :  { %v1257_v48 = vmul.f32 %v3931_v40, %v1255_v46 }
 0xc6b   :  { %v1154_v38 = vpop.permute.xlu0 %1153 }
 0xc6c   :  { %v1156_v39 = vmul.f32 %v3929_v37, %v1154_v38 }
 0xc6e   :  { %1158 = vrot.lane.b32.xlu0 %v1156_v39, %s4116_s14 }
 0xc6f   :  { %v1260_v41 = vpop.permute.xlu1 %1259 }
 0xc70   :  { %v1262_v42 = vmul.f32 %v3931_v40, %v1260_v41 }
 0xc72   :  { %1264 = vrot.lane.b32.xlu1 %v1262_v42, %s4116_s14 }
 0xce0   :  { %v1159_v45 = vpop.permute.xlu0 %1158 }
 0xce1   :  { %v4414_v47 = vadd.f32 %v1159_v45, %v1151_v44 }
 0xce3   :  { %3932 = vtanh.f32 %v4414_v47  ;;  %v1361_v22 = vrot.slane %v4414_v47, 6 }
 0xce4   :  { %v1265_v49 = vpop.permute.xlu1 %1264 }
 0xce5   :  { %v4417_v50 = vadd.f32 %v1265_v49, %v1257_v48 }
 0xce7   :  { %3934 = vtanh.f32 %v4417_v50  ;;  %v1468_v27 = vrot.slane %v4417_v50, 2 }
 0xced   :  { %v3933_v51 = vpop.eup %3932 }
 0xcee   :  { %1164 = vrot.lane.b32.xlu0 %v3933_v51, %s4115_s5 }
 0xcf1   :  { %v3935_v52 = vpop.eup %3934 }
 0xcf2   :  { %1270 = vrot.lane.b32.xlu1 %v3935_v52, %s4115_s5 }
 0xd60   :  { %v1165_v53 = vpop.permute.xlu0 %1164 }
 0xd61   :  { %v1167_v32 = vmul.f32 %v3929_v37, %v1165_v53 }
 0xd63   :  { %1275 = vrot.lane.b32.xlu0 %v1167_v32, %s4116_s14 }
 0xd64   :  { %v1271_v54 = vpop.permute.xlu1 %1270 }
 0xd65   :  { %v1273_v33 = vmul.f32 %v3931_v40, %v1271_v54 }
 0xd67   :  { %v1381_v55 = vrot.slane %v1273_v33, 6 }
 0xd69   :  { %1382 = vrot.lane.b32.xlu1 %v1381_v55, %s4116_s14 }
 0xdd5   :  { %v1276_v56 = vpop.permute.xlu0 %1275 }
 0xdd6   :  { %3521 = vmatmul.mubr.msk.f32.vlgmr.msra.gmra.mrb[14].mxu0 %vm224_vm2, %v1276_v56 }
 0xdd7   :  { %3679 = vmatpush3.bf16.msra.mxu0 %v4232_v18  ;;  %3542 = vmatprep.mubr.msk.f32.mxu0 %vm4113_vm1, %v4114_v11 }
 0xdd8   :  { %3680 = vmatprep.subr.bf16.mxu0 %v4112_v4 }
 0xddb   :  { %v1383_v57 = vpop.permute.xlu1 %1382  ;;  %3682 = vmatpush3.bf16.msra.mxu0 %v4246_v21 }
 0xddc   :  { %3532 = vmatmul.mubr.msk.f32.vlgmr.msra.gmra.mrb[10].mxu1 %vm224_vm2, %v1383_v57  ;;  %3689 = vmatprep.subr.bf16.mxu0 %v4112_v4 }
 0xddd   :  { %3685 = vmatpush3.bf16.msra.mxu1 %v4200_v7  ;;  %3553 = vmatprep.mubr.msk.f32.mxu1 %vm4113_vm1, %v4114_v11 }
 0xdde   :  { %3686 = vmatprep.subr.bf16.mxu1 %v4112_v4 }
 0xde1   :  { %3688 = vmatpush3.bf16.msra.mxu1 %v4221_v15 }
 0xde2   :  { %3695 = vmatprep.subr.bf16.mxu1 %v4112_v4 }
 0xea9   :  { %v1345_v58 = vpop.f32.mrb[14].mxu0 }
 0xeaa   :  { %v1350_v59 = vrot.slane %v1345_v58, 6  ;;  %v3522_v60 = vpop.f32.mrb[15].mxu0 }
 0xeac   :  { %v1352_v61 = vadd.f32 %v1350_v59, %v4269_v24 }
 0xeae   :  { %3936 = vtanh.f32 %v1352_v61  ;;  %v3250_v5 = vmul.f32 -1.442695, %v1352_v61 }
 0xeaf   :  { %v1452_v62 = vpop.f32.mrb[10].mxu1 }
 0xeb0   :  { %v1457_v63 = vrot.slane %v1452_v62, 4  ;;  %v3533_v0 = vpop.f32.mrb[11].mxu1 }
 0xeb2   :  { %v1459_v1 = vadd.f32 %v1457_v63, %v4274_v31 }
 0xeb4   :  { %3938 = vtanh.f32 %v1459_v1  ;;  %v3252_v6 = vmul.f32 -1.442695, %v1459_v1 }
 0xeb5   :  { %3940 = vpow2.f32 %v3250_v5 }
 0xeb6   :  { %3942 = vpow2.f32 %v3252_v6 }
 0xeb8   :  { %v3937_v2 = vpop.eup %3936 }
 0xeb9   :  { %1365 = vrot.lane.b32.xlu0 %v3937_v2, %s4115_s5 }
 0xebe   :  { %v3939_v3 = vpop.eup %3938 }
 0xebf   :  { %1472 = vrot.lane.b32.xlu1 %v3939_v3, %s4115_s5  ;;  %v3941_v8 = vpop.eup %3940 }
 0xec0   :  { %v1356_v9 = vadd.f32 1.0, %v3941_v8  ;;  %v3943_v10 = vpop.eup %3942 }
 0xec1   :  { %v1463_v12 = vadd.f32 1.0, %v3943_v10 }
 0xec2   :  { %3944 = vrcp.f32 %v1356_v9 }
 0xec3   :  { %3946 = vrcp.f32 %v1463_v12 }
 0xecc   :  { %v3945_v13 = vpop.eup %3944 }
 0xecd   :  { %v3947_v17 = vpop.eup %3946  ;;  %v1363_v23 = vmul.f32 %v3945_v13, %v1361_v22 }
 0xece   :  { %v1470_v28 = vmul.f32 %v3947_v17, %v1468_v27 }
 0xf2b   :  { %v1366_v14 = vpop.permute.xlu0 %1365 }
 0xf2c   :  { %v1368_v16 = vmul.f32 %v3945_v13, %v1366_v14 }
 0xf2e   :  { %1370 = vrot.lane.b32.xlu0 %v1368_v16, %s4116_s14 }
 0xf31   :  { %v1473_v19 = vpop.permute.xlu1 %1472 }
 0xf32   :  { %v1475_v20 = vmul.f32 %v3947_v17, %v1473_v19 }
 0xf34   :  { %1477 = vrot.lane.b32.xlu1 %v1475_v20, %s4116_s14 }
 0xfa0   :  { %v1371_v25 = vpop.permute.xlu0 %1370 }
 0xfa1   :  { %v4445_v26 = vadd.f32 %v1371_v25, %v1363_v23 }
 0xfa3   :  { %3948 = vtanh.f32 %v4445_v26  ;;  %v1575_v59 = vrot.slane %v4445_v26, 6 }
 0xfa6   :  { %v1478_v29 = vpop.permute.xlu1 %1477 }
 0xfa7   :  { %v4449_v30 = vadd.f32 %v1478_v29, %v1470_v28 }
 0xfa9   :  { %3950 = vtanh.f32 %v4449_v30  ;;  %v1682_v63 = vrot.slane %v4449_v30, 2 }
 0xfad   :  { %v3949_v34 = vpop.eup %3948 }
 0xfae   :  { %1376 = vrot.lane.b32.xlu0 %v3949_v34, %s4115_s5 }
 0xfb3   :  { %v3951_v35 = vpop.eup %3950 }
 0xfb4   :  { %1483 = vrot.lane.b32.xlu1 %v3951_v35, %s4115_s5 }
0x1020   :  { %v1377_v36 = vpop.permute.xlu0 %1376 }
0x1021   :  { %v1379_v37 = vmul.f32 %v3945_v13, %v1377_v36 }
0x1023   :  { %v1488_v38 = vrot.slane %v1379_v37, 2 }
0x1025   :  { %1489 = vrot.lane.b32.xlu0 %v1488_v38, %s4116_s14 }
0x1026   :  { %v1484_v39 = vpop.permute.xlu1 %1483 }
0x1027   :  { %v1486_v40 = vmul.f32 %v3947_v17, %v1484_v39 }
0x1029   :  { %v1595_v41 = vrot.slane %v1486_v40, 4 }
0x102b   :  { %1596 = vrot.lane.b32.xlu1 %v1595_v41, %s4116_s14 }
0x1097   :  { %v1490_v42 = vpop.permute.xlu0 %1489 }
0x1098   :  { %3543 = vmatmul.mubr.msk.f32.vlgmr.msra.gmra.mrb[16].mxu0 %vm224_vm2, %v1490_v42 }
0x1099   :  { %3691 = vmatpush3.bf16.msra.mxu0 %v4232_v18  ;;  %3564 = vmatprep.mubr.msk.f32.mxu0 %vm4113_vm1, %v4114_v11 }
0x109a   :  { %3692 = vmatprep.subr.bf16.mxu0 %v4112_v4 }
0x109d   :  { %v1597_v43 = vpop.permute.xlu1 %1596  ;;  %3694 = vmatpush3.bf16.msra.mxu0 %v4246_v21 }
0x109e   :  { %3554 = vmatmul.mubr.msk.f32.vlgmr.msra.gmra.mrb[12].mxu1 %vm224_vm2, %v1597_v43 }
0x109f   :  { %3697 = vmatpush3.bf16.msra.mxu1 %v4200_v7  ;;  %3575 = vmatprep.mubr.msk.f32.mxu1 %vm4113_vm1, %v4114_v11 }
0x10a0   :  { %3698 = vmatprep.subr.bf16.mxu1 %v4112_v4 }
0x10a3   :  { %3700 = vmatpush3.bf16.msra.mxu1 %v4221_v15 }
0x116b   :  { %v1559_v18 = vpop.f32.mrb[16].mxu0 }
0x116c   :  { %v1564_v44 = vrot.slane %v1559_v18, 4  ;;  %v3544_v45 = vpop.f32.mrb[17].mxu0 }
0x116e   :  { %v1566_v46 = vadd.f32 %v1564_v44, %v4269_v24 }
0x1170   :  { %3952 = vtanh.f32 %v1566_v46  ;;  %v3254_v4 = vmul.f32 -1.442695, %v1566_v46 }
0x1171   :  { %v1666_v47 = vpop.f32.mrb[12].mxu1 }
0x1172   :  { %v1671_v48 = vrot.slane %v1666_v47, 6  ;;  %v3555_v21 = vpop.f32.mrb[13].mxu1 }
0x1173   :  { %v2034_v21 = vld [vmem:[%s4823_s7 + $0x8] sm:$0xff] }
0x1174   :  { %v1673_v49 = vadd.f32 %v1671_v48, %v4274_v31 }
0x1176   :  { %3954 = vtanh.f32 %v1673_v49  ;;  %v3256_v15 = vmul.f32 -1.442695, %v1673_v49  ;;  %v2036_v49 = vld [vmem:[%s4823_s7 + $0x18] sm:$0xff] }
0x1177   :  { %3956 = vpow2.f32 %v3254_v4  ;;  %v2035_v4 = vld [vmem:[%s4823_s7 + $0x10] sm:$0xff] }
0x1178   :  { %3958 = vpow2.f32 %v3256_v15 }
0x117a   :  { %v3953_v7 = vpop.eup %3952 }
0x117b   :  { %1579 = vrot.lane.b32.xlu0 %v3953_v7, %s4115_s5  ;;  %v2033_v7 = vld [vmem:[%s4823_s7] sm:$0xff] }
0x117c   :  { %v4518_v15 = vpack.c.bf16 %v2035_v4, %v2033_v7 }
0x1180   :  { %v3955_v50 = vpop.eup %3954 }
0x1181   :  { %1686 = vrot.lane.b32.xlu1 %v3955_v50, %s4115_s5  ;;  %v3957_v51 = vpop.eup %3956  ;;  %v4513_v50 = vpack.c.bf16 %v2036_v49, %v2034_v21  ;;  %v1931_v21 = vld [vmem:[%s4817_s1 + $0x8] sm:$0xff] }
0x1182   :  { %v1570_v52 = vadd.f32 1.0, %v3957_v51  ;;  %v3959_v53 = vpop.eup %3958 }
0x1183   :  { %v1677_v32 = vadd.f32 1.0, %v3959_v53  ;;  %3706 = vmatprep.subr.bf16.mxu1 %v4513_v50  ;;  %v2038_v53 = vld [vmem:[%s4823_s7 + $0x28] sm:$0xff] }
0x1184   :  { %3960 = vrcp.f32 %v1570_v52 }
0x1185   :  { %3962 = vrcp.f32 %v1677_v32  ;;  %v2040_v32 = vld [vmem:[%s4823_s7 + $0x38] sm:$0xff] }
0x118e   :  { %v3961_v54 = vpop.eup %3960 }
0x118f   :  { %v3963_v56 = vpop.eup %3962  ;;  %v1577_v60 = vmul.f32 %v3961_v54, %v1575_v59 }
0x1190   :  { %v1684_v0 = vmul.f32 %v3963_v56, %v1682_v63 }
0x11ed   :  { %v1580_v33 = vpop.permute.xlu0 %1579 }
0x11ee   :  { %v1582_v55 = vmul.f32 %v3961_v54, %v1580_v33  ;;  %v2037_v33 = vld [vmem:[%s4823_s7 + $0x20] sm:$0xff] }
0x11f0   :  { %1584 = vrot.lane.b32.xlu0 %v1582_v55, %s4116_s14  ;;  %v2039_v55 = vld [vmem:[%s4823_s7 + $0x30] sm:$0xff] }
0x11f3   :  { %v1687_v57 = vpop.permute.xlu1 %1686 }
0x11f4   :  { %v1689_v58 = vmul.f32 %v3963_v56, %v1687_v57  ;;  %v2042_v57 = vld [vmem:[%s4823_s7 + $0x48] sm:$0xff] }
0x11f6   :  { %1691 = vrot.lane.b32.xlu1 %v1689_v58, %s4116_s14  ;;  %v2044_v58 = vld [vmem:[%s4823_s7 + $0x58] sm:$0xff] }
0x11f7   :  { %v4548_v59 = vpack.c.bf16 %v2044_v58, %v2042_v57 }
0x1262   :  { %v1585_v61 = vpop.permute.xlu0 %1584 }
0x1263   :  { %v1587_v62 = vadd.f32 %v1585_v61, %v1577_v60  ;;  %v1933_v60 = vld [vmem:[%s4822_s6 + $0x8] sm:$0xff]  ;;  %v1935_v61 = vld [vmem:[%s4822_s6 + $0x18] sm:$0xff] }
0x1264   :  { %v3701_v63 = vpack.c.bf16 %v1935_v61, %v1933_v60 }
0x1265   :  { %3964 = vtanh.f32 %v1587_v62  ;;  %v1789_v42 = vrot.slane %v1587_v62, 6  ;;  %v2041_v62 = vld [vmem:[%s4823_s7 + $0x40] sm:$0xff] }
0x1266   :  { %3702 = vmatprep.subr.bf16.mxu0 %v3701_v63 }
0x1268   :  { %v1692_v1 = vpop.permute.xlu1 %1691 }
0x1269   :  { %v1694_v2 = vadd.f32 %v1692_v1, %v1684_v0  ;;  %v2043_v0 = vld [vmem:[%s4823_s7 + $0x50] sm:$0xff]  ;;  %v1932_v1 = vld [vmem:[%s4822_s6] sm:$0xff] }
0x126b   :  { %3966 = vtanh.f32 %v1694_v2  ;;  %v1893_v44 = vrot.slane %v1694_v2, 2  ;;  %v1934_v2 = vld [vmem:[%s4822_s6 + $0x10] sm:$0xff] }
0x126f   :  { %v3965_v3 = vpop.eup %3964 }
0x1270   :  { %1590 = vrot.lane.b32.xlu0 %v3965_v3, %s4115_s5  ;;  %v4569_v3 = vpack.c.bf16 %v2043_v0, %v2041_v62 }
0x1275   :  { %v3967_v5 = vpop.eup %3966 }
0x1276   :  { %1697 = vrot.lane.b32.xlu1 %v3967_v5, %s4115_s5  ;;  %v3703_v5 = vpack.c.bf16 %v1934_v2, %v1932_v1 }
0x12e2   :  { %v1591_v6 = vpop.permute.xlu0 %1590 }
0x12e3   :  { %v1593_v8 = vmul.f32 %v3961_v54, %v1591_v6  ;;  %v4530_v54 = vpack.c.bf16 %v2040_v32, %v2038_v53  ;;  %v2046_v6 = vld [vmem:[%s4823_s7 + $0x68] sm:$0xff] }
0x12e5   :  { %v1702_v9 = vrot.slane %v1593_v8, 4  ;;  %v2048_v8 = vld [vmem:[%s4823_s7 + $0x78] sm:$0xff] }
0x12e7   :  { %1703 = vrot.lane.b32.xlu0 %v1702_v9, %s4116_s14  ;;  %v4578_v9 = vpack.c.bf16 %v2048_v8, %v2046_v6 }
0x12e8   :  { %v1698_v10 = vpop.permute.xlu1 %1697 }
0x12e9   :  { %v1700_v12 = vmul.f32 %v3963_v56, %v1698_v10  ;;  %v4538_v56 = vpack.c.bf16 %v2039_v55, %v2037_v33  ;;  %v1930_v10 = vld [vmem:[%s4817_s1] sm:$0xff] }
0x12eb   :  { %v1809_v13 = vrot.slane %v1700_v12, 2  ;;  %v2045_v12 = vld [vmem:[%s4823_s7 + $0x60] sm:$0xff] }
0x12ed   :  { %1810 = vrot.lane.b32.xlu1 %v1809_v13, %s4116_s14  ;;  %v2047_v13 = vld [vmem:[%s4823_s7 + $0x70] sm:$0xff]  ;;  %s4117_s7 = smov 96  }
0x1359   :  { %v1704_v14 = vpop.permute.xlu0 %1703 }
0x135a   :  { %3565 = vmatmul.mubr.msk.f32.vlgmr.msra.gmra.mrb[18].mxu0 %vm224_vm2, %v1704_v14  ;;  %v4589_v14 = vpack.c.bf16 %v2047_v13, %v2045_v12 }
0x135b   :  { %2018 = vmatprep.mubr.f32.mxu0 %v4114_v11  ;;  %3704 = vmatpush1.bf16.msra.mxu0 %v3703_v5 }
0x135c   :  { %3722 = vmatprep.subr.bf16.mxu0 %v4513_v50 }
0x135e   :  { %3261 = vmatmul.mubr.msk.f32.vlgmr.msra.gmra.mrb[20].mxu0 %vm52_vm0, %v1930_v10 }
0x135f   :  { %v1811_v16 = vpop.permute.xlu1 %1810  ;;  %3724 = vmatpush1.bf16.msra.mxu0 %v4518_v15  ;;  %2024 = vmatprep.mubr.f32.mxu0 %v4114_v11 }
0x1360   :  { %3576 = vmatmul.mubr.msk.f32.vlgmr.msra.gmra.mrb[14].mxu1 %vm224_vm2, %v1811_v16  ;;  %3726 = vmatprep.subr.bf16.mxu0 %v4530_v54 }
0x1361   :  { %2117 = vmatprep.mubr.f32.mxu1 %v4114_v11  ;;  %3708 = vmatpush1.bf16.msra.mxu1 %v4518_v15 }
0x1362   :  { %3710 = vmatprep.subr.bf16.mxu1 %v4530_v54  ;;  %3262 = vmatmul.mubr.msk.f32.gmra.mrb[22].mxu0 %vm52_vm0, %v1931_v21 }
0x1363   :  { %3728 = vmatpush1.bf16.msra.mxu0 %v4538_v56  ;;  %2240 = vmatprep.mubr.f32.mxu0 %v4114_v11 }
0x1364   :  { %3730 = vmatprep.subr.bf16.mxu0 %v4548_v59 }
0x1365   :  { %3712 = vmatpush1.bf16.msra.mxu1 %v4538_v56 }
0x1366   :  { %3714 = vmatprep.subr.bf16.mxu1 %v4548_v59 }
0x1367   :  { %3732 = vmatpush1.bf16.msra.mxu0 %v4569_v3 }
0x1368   :  { %3734 = vmatprep.subr.bf16.mxu0 %v4578_v9 }
0x1369   :  { %3716 = vmatpush1.bf16.msra.mxu1 %v4569_v3 }
0x136a   :  { %3718 = vmatprep.subr.bf16.mxu1 %v4578_v9 }
0x136b   :  { %3736 = vmatpush1.bf16.msra.mxu0 %v4589_v14 }
0x136c   :  { %3754 = vmatprep.subr.bf16.mxu0 %v4513_v50 }
0x136d   :  { %3720 = vmatpush1.bf16.msra.mxu1 %v4589_v14 }
0x136e   :  { %3738 = vmatprep.subr.bf16.mxu1 %v4513_v50 }
0x142d   :  { %v1773_v17 = vpop.f32.mrb[18].mxu0 }
0x142e   :  { %v1778_v19 = vrot.slane %v1773_v17, 2  ;;  %v3566_v20 = vpop.f32.mrb[19].mxu0 }
0x1430   :  { %v1780_v22 = vadd.f32 %v1778_v19, %v4269_v24 }
0x1432   :  { %3968 = vtanh.f32 %v1780_v22  ;;  %v3258_v29 = vmul.f32 -1.442695, %v1780_v22 }
0x1433   :  { %v1880_v23 = vpop.f32.mrb[14].mxu1 }
0x1434   :  { %v1884_v25 = vadd.f32 %v1880_v23, %v4274_v31  ;;  %v3577_v26 = vpop.f32.mrb[15].mxu1 }
0x1436   :  { %3970 = vtanh.f32 %v1884_v25  ;;  %v3260_v30 = vmul.f32 -1.442695, %v1884_v25 }
0x1437   :  { %3972 = vpow2.f32 %v3258_v29 }
0x1438   :  { %3974 = vpow2.f32 %v3260_v30  ;;  %v1938_v30 = vlaneseq }
0x143c   :  { %v3969_v27 = vpop.eup %3968 }
0x143d   :  { %1793 = vrot.lane.b32.xlu0 %v3969_v27, %s4115_s5 }
0x1440   :  { %v3971_v28 = vpop.eup %3970 }
0x1441   :  { %1897 = vrot.lane.b32.xlu1 %v3971_v28, %s4115_s5  ;;  %v3973_v34 = vpop.eup %3972  ;;  %v2020_v28 = vpop.f32.mrb[20].mxu0 }
0x1442   :  { %v1784_v35 = vadd.f32 1.0, %v3973_v34  ;;  %v3975_v36 = vpop.eup %3974  ;;  %v2022_v29 = vpop.f32.mrb[21].mxu0  ;;  %v1939_v34 = vshrl.u32 %v1938_v30, 7 }
0x1443   :  { %v1888_v24 = vadd.f32 1.0, %v3975_v36  ;;  %v1936_v36 = vld [vmem:[%s4824_s8] sm:$0x3]  ;;  %v4644_v58 = vpop.f32.mrb[22].mxu0 }
0x1444   :  { %3976 = vrcp.f32 %v1784_v35  ;;  %v1940_v35 = vsub.s32 0, %v1939_v34  ;;  %v4646_v60 = vpop.f32.mrb[23].mxu0 }
0x1445   :  { %3978 = vrcp.f32 %v1888_v24 }
0x1446   :  { %v4625_v24 = vrot.slane %v1936_v36, %v1940_v35 }
0x144e   :  { %v4488_v37 = vpop.eup %3976 }
0x144f   :  { %v4492_v39 = vpop.eup %3978  ;;  %v1791_v43 = vmul.f32 %v4488_v37, %v1789_v42 }
0x1450   :  { %v1895_v46 = vmul.f32 %v4492_v39, %v1893_v44 }
0x14af   :  { %v1794_v31 = vpop.permute.xlu0 %1793 }
0x14b0   :  { %v1796_v38 = vmul.f32 %v4488_v37, %v1794_v31 }
0x14b2   :  { %1798 = vrot.lane.b32.xlu0 %v1796_v38, %s4116_s14  ;;  %v1944_v38 = vsub.s32 1, %v1939_v34 }
0x14b3   :  { %v1898_v40 = vpop.permute.xlu1 %1897 }
0x14b4   :  { %v1900_v41 = vmul.f32 %v4492_v39, %v1898_v40  ;;  %v4631_v42 = vrot.slane %v1936_v36, %v1944_v38 }
0x14b6   :  { %1902 = vrot.lane.b32.xlu1 %v1900_v41, %s4116_s14 }
0x1524   :  { %v1799_v18 = vpop.permute.xlu0 %1798 }
0x1525   :  { %v4497_v45 = vadd.f32 %v1799_v18, %v1791_v43  ;;  %v4634_v43 = vadd.f32 %v2022_v29, %v4631_v42 }
0x1527   :  { %3980 = vtanh.f32 %v4497_v45 }
0x1528   :  { %v1903_v47 = vpop.permute.xlu1 %1902 }
0x1529   :  { %v4501_v48 = vadd.f32 %v1903_v47, %v1895_v46 }
0x152b   :  { %3982 = vtanh.f32 %v4501_v48 }
0x1531   :  { %v3981_v51 = vpop.eup %3980 }
0x1532   :  { %1804 = vrot.lane.b32.xlu0 %v3981_v51, %s4115_s5 }
0x1535   :  { %v3983_v52 = vpop.eup %3982 }
0x1536   :  { %1908 = vrot.lane.b32.xlu1 %v3983_v52, %s4115_s5 }
0x15a4   :  { %v1805_v16 = vpop.permute.xlu0 %1804 }
0x15a5   :  { %v1807_v17 = vmul.f32 %v4488_v37, %v1805_v16  ;;  %v4628_v37 = vadd.f32 %v2020_v28, %v4625_v24 }
0x15a7   :  { %1913 = vrot.lane.b32.xlu0 %v1807_v17, %s4116_s14 }
0x15a8   :  { %v1909_v19 = vpop.permute.xlu1 %1908 }
0x15a9   :  { %v1911_v20 = vmul.f32 %v4492_v39, %v1909_v19 }
0x15ab   :  { %1919 = vrot.lane.b32.xlu1 %v1911_v20, %s4115_s5  ;;  %1925 = vrot.lane.b32.xlu0 %v4497_v45, %s4117_s7 }
0x1619   :  { %v1914_v22 = vpop.permute.xlu0 %1913 }
0x161a   :  { %1917 = vst.msk [vmem:[#allocation2 - $0x6] sm:$0xc0] %vm1916_vm3, %v1914_v22 }
0x161d   :  { %v1920_v23 = vpop.permute.xlu1 %1919  ;;  %v1926_v25 = vpop.permute.xlu0 %1925 }
0x161e   :  { %1923 = vst.msk [vmem:[#allocation2] sm:$0x3] %vm1922_vm4, %v1920_v23 }
0x161f   :  { %1928 = vst.msk [vmem:[#allocation3 - $0x6] sm:$0xc0] %vm1916_vm3, %v1926_v25 }
0x1620   :  { %1929 = vst.msk [vmem:[#allocation3] sm:$0x3] %vm1922_vm4, %v4501_v48 }
0x1625   :  { %v2031_v26 = vld [vmem:[#allocation2] sm:$0x3] }
0x1626   :  { %3263 = vmatmul.mubr.msk.f32.vlgmr.msra.gmra.mrb[16].mxu1 %vm2049_vm5, %v2031_v26 }
0x1627   :  { %v2032_v27 = vld [vmem:[#allocation3] sm:$0x3]  ;;  %3740 = vmatpush1.bf16.msra.mxu1 %v4518_v15  ;;  %2371 = vmatprep.mubr.f32.mxu1 %v4114_v11 }
0x1628   :  { %2140 = vrot.lane.b32.xlu1 %v2032_v27, %s4115_s5  ;;  %3742 = vmatprep.subr.bf16.mxu1 %v4530_v54 }
0x162b   :  { %3744 = vmatpush1.bf16.msra.mxu1 %v4538_v56 }
0x162c   :  { %3746 = vmatprep.subr.bf16.mxu1 %v4548_v59 }
0x162f   :  { %3748 = vmatpush1.bf16.msra.mxu1 %v4569_v3 }
0x1630   :  { %3750 = vmatprep.subr.bf16.mxu1 %v4578_v9 }
0x1633   :  { %3752 = vmatpush1.bf16.msra.mxu1 %v4589_v14 }
0x1634   :  { %3770 = vmatprep.subr.bf16.mxu1 %v4513_v50 }
0x169a   :  { %v2141_v4 = vpop.permute.xlu1 %2140 }
0x16f9   :  { %v2119_v31 = vpop.f32.mrb[16].mxu1 }
0x16fa   :  { %v2124_v39 = vadd.f32 %v2119_v31, %v4628_v37  ;;  %v2121_v40 = vpop.f32.mrb[17].mxu1 }
0x16fb   :  { %v2125_v18 = vadd.f32 %v2121_v40, %v4634_v43 }
0x16fc   :  { %v3264_v41 = vmul.f32 -1.442695, %v2124_v39 }
0x16fd   :  { %v3265_v49 = vmul.f32 -1.442695, %v2125_v18 }
0x16fe   :  { %3984 = vpow2.f32 %v3264_v41 }
0x16ff   :  { %3986 = vtanh.f32 %v2125_v18 }
0x1708   :  { %v3985_v44 = vpop.eup %3984 }
0x1709   :  { %v2129_v45 = vadd.f32 1.0, %v3985_v44  ;;  %v3987_v46 = vpop.eup %3986 }
0x170b   :  { %3988 = vrcp.f32 %v2129_v45 }
0x170c   :  { %3990 = vpow2.f32 %v3265_v49 }
0x1715   :  { %v3989_v47 = vpop.eup %3988 }
0x1716   :  { %v2144_v48 = vmul.f32 %v3989_v47, %v3987_v46  ;;  %v3991_v7 = vpop.eup %3990  ;;  %v2143_v52 = vmul.f32 %v3989_v47, %v2141_v4 }
0x1717   :  { %v2136_v51 = vadd.f32 1.0, %v3991_v7 }
0x1718   :  { %2146 = vrot.lane.b32.xlu0 %v2144_v48, %s4115_s5 }
0x1719   :  { %3992 = vrcp.f32 %v2136_v51 }
0x1723   :  { %v3993_v33 = vpop.eup %3992 }
0x178a   :  { %v2147_v53 = vpop.permute.xlu0 %2146 }
0x178b   :  { %v2149_v32 = vadd.f32 %v2147_v53, %v2143_v52 }
0x178d   :  { %3994 = vtanh.f32 %v2149_v32  ;;  %v2269_v13 = vrot.slane %v2149_v32, 6 }
0x1797   :  { %v3995_v55 = vpop.eup %3994 }
0x1798   :  { %v2151_v57 = vmul.f32 %v3995_v55, %v3993_v33 }
0x179a   :  { %2153 = vrot.lane.b32.xlu1 %v2151_v57, %s4115_s5 }
0x180c   :  { %v2154_v61 = vpop.permute.xlu1 %2153 }
0x180d   :  { %2157 = vst.msk [vmem:[#allocation4] sm:$0x3] %vm2156_vm6, %v2154_v61  ;;  %3266 = vmatmul.mubr.msk.f32.vlgmr.msra.gmra.mrb[24].mxu0 %vm2049_vm5, %v2154_v61 }
0x180e   :  { %3756 = vmatpush1.bf16.msra.mxu0 %v4518_v15  ;;  %2502 = vmatprep.mubr.f32.mxu0 %v4114_v11 }
0x180f   :  { %3758 = vmatprep.subr.bf16.mxu0 %v4530_v54 }
0x1812   :  { %3760 = vmatpush1.bf16.msra.mxu0 %v4538_v56 }
0x1813   :  { %3762 = vmatprep.subr.bf16.mxu0 %v4548_v59 }
0x1816   :  { %3764 = vmatpush1.bf16.msra.mxu0 %v4569_v3 }
0x1817   :  { %3766 = vmatprep.subr.bf16.mxu0 %v4578_v9 }
0x181a   :  { %3768 = vmatpush1.bf16.msra.mxu0 %v4589_v14 }
0x181b   :  { %3786 = vmatprep.subr.bf16.mxu0 %v4513_v50 }
0x18e0   :  { %v2242_v62 = vpop.f32.mrb[24].mxu0 }
0x18e1   :  { %v2249_v63 = vrot.slane %v2242_v62, 6  ;;  %v2244_v0 = vpop.f32.mrb[25].mxu0 }
0x18e2   :  { %v2250_v5 = vrot.slane %v2244_v0, 6 }
0x18e3   :  { %v2253_v1 = vadd.f32 %v2249_v63, %v4628_v37 }
0x18e4   :  { %v2254_v6 = vadd.f32 %v2250_v5, %v4634_v43 }
0x18e5   :  { %v3267_v2 = vmul.f32 -1.442695, %v2253_v1 }
0x18e6   :  { %v3268_v20 = vmul.f32 -1.442695, %v2254_v6 }
0x18e7   :  { %3996 = vpow2.f32 %v3267_v2 }
0x18e8   :  { %3998 = vtanh.f32 %v2254_v6 }
0x18f1   :  { %v3997_v8 = vpop.eup %3996 }
0x18f2   :  { %v2258_v10 = vadd.f32 1.0, %v3997_v8  ;;  %v3999_v12 = vpop.eup %3998 }
0x18f4   :  { %4000 = vrcp.f32 %v2258_v10 }
0x18f5   :  { %4002 = vpow2.f32 %v3268_v20 }
0x18fe   :  { %v4001_v16 = vpop.eup %4000 }
0x18ff   :  { %v2272_v17 = vmul.f32 %v4001_v16, %v3999_v12  ;;  %v2271_v19 = vmul.f32 %v4001_v16, %v2269_v13  ;;  %v4003_v22 = vpop.eup %4002 }
0x1900   :  { %v2265_v23 = vadd.f32 1.0, %v4003_v22 }
0x1901   :  { %2274 = vrot.lane.b32.xlu0 %v2272_v17, %s4115_s5 }
0x1902   :  { %4004 = vrcp.f32 %v2265_v23 }
0x190c   :  { %v4005_v27 = vpop.eup %4004 }
0x1973   :  { %v2275_v25 = vpop.permute.xlu0 %2274 }
0x1974   :  { %v2277_v26 = vadd.f32 %v2275_v25, %v2271_v19 }
0x1976   :  { %4006 = vtanh.f32 %v2277_v26  ;;  %v2400_v46 = vrot.slane %v2277_v26, 6 }
0x1980   :  { %v4007_v28 = vpop.eup %4006 }
0x1981   :  { %v4662_v29 = vmul.f32 %v4007_v28, %v4005_v27  ;;  %v4711_v28 = vadd.f32 %v4644_v58, %v4625_v24 }
0x1983   :  { %v2302_v30 = vrot.slane %v4662_v29, 2 }
0x1985   :  { %2303 = vrot.lane.b32.xlu1 %v2302_v30, %s4115_s5 }
0x19f7   :  { %v2304_v34 = vpop.permute.xlu1 %2303 }
0x19f8   :  { %3269 = vmatmul.mubr.msk.f32.vlgmr.msra.gmra.mrb[18].mxu1 %vm2049_vm5, %v2304_v34 }
0x19f9   :  { %3772 = vmatpush1.bf16.msra.mxu1 %v4518_v15  ;;  %2633 = vmatprep.mubr.f32.mxu1 %v4114_v11 }
0x19fa   :  { %3774 = vmatprep.subr.bf16.mxu1 %v4530_v54 }
0x19fd   :  { %3776 = vmatpush1.bf16.msra.mxu1 %v4538_v56 }
0x19fe   :  { %3778 = vmatprep.subr.bf16.mxu1 %v4548_v59 }
0x1a01   :  { %3780 = vmatpush1.bf16.msra.mxu1 %v4569_v3 }
0x1a02   :  { %3782 = vmatprep.subr.bf16.mxu1 %v4578_v9 }
0x1a05   :  { %3784 = vmatpush1.bf16.msra.mxu1 %v4589_v14 }
0x1a06   :  { %3802 = vmatprep.subr.bf16.mxu1 %v4513_v50 }
0x1acb   :  { %v2373_v35 = vpop.f32.mrb[18].mxu1 }
0x1acc   :  { %v2380_v36 = vrot.slane %v2373_v35, 4  ;;  %v2375_v31 = vpop.f32.mrb[19].mxu1 }
0x1acd   :  { %v2381_v40 = vrot.slane %v2375_v31, 4  ;;  %v4716_v31 = vadd.f32 %v4646_v60, %v4631_v42 }
0x1ace   :  { %v2384_v38 = vadd.f32 %v2380_v36, %v4628_v37 }
0x1acf   :  { %v2385_v41 = vadd.f32 %v2381_v40, %v4634_v43 }
0x1ad0   :  { %v3270_v39 = vmul.f32 -1.442695, %v2384_v38 }
0x1ad1   :  { %v3271_v49 = vmul.f32 -1.442695, %v2385_v41 }
0x1ad2   :  { %4008 = vpow2.f32 %v3270_v39 }
0x1ad3   :  { %4010 = vtanh.f32 %v2385_v41 }
0x1adc   :  { %v4009_v18 = vpop.eup %4008 }
0x1add   :  { %v2389_v44 = vadd.f32 1.0, %v4009_v18  ;;  %v4011_v45 = vpop.eup %4010 }
0x1adf   :  { %4012 = vrcp.f32 %v2389_v44 }
0x1ae0   :  { %4014 = vpow2.f32 %v3271_v49 }
0x1ae9   :  { %v4013_v47 = vpop.eup %4012 }
0x1aea   :  { %v2403_v48 = vmul.f32 %v4013_v47, %v4011_v45  ;;  %v2402_v21 = vmul.f32 %v4013_v47, %v2400_v46  ;;  %v4015_v7 = vpop.eup %4014 }
0x1aeb   :  { %v2396_v4 = vadd.f32 1.0, %v4015_v7 }
0x1aec   :  { %2405 = vrot.lane.b32.xlu0 %v2403_v48, %s4115_s5 }
0x1aed   :  { %4016 = vrcp.f32 %v2396_v4 }
0x1af7   :  { %v4017_v53 = vpop.eup %4016 }
0x1b5e   :  { %v2406_v51 = vpop.permute.xlu0 %2405 }
0x1b5f   :  { %v2408_v52 = vadd.f32 %v2406_v51, %v2402_v21 }
0x1b61   :  { %4018 = vtanh.f32 %v2408_v52  ;;  %v2531_v12 = vrot.slane %v2408_v52, 6 }
0x1b6b   :  { %v4019_v32 = vpop.eup %4018 }
0x1b6c   :  { %v4679_v33 = vmul.f32 %v4019_v32, %v4017_v53 }
0x1b6e   :  { %v2433_v55 = vrot.slane %v4679_v33, 4 }
0x1b70   :  { %2434 = vrot.lane.b32.xlu1 %v2433_v55, %s4115_s5 }
0x1be2   :  { %v2435_v57 = vpop.permute.xlu1 %2434 }
0x1be3   :  { %3272 = vmatmul.mubr.msk.f32.vlgmr.msra.gmra.mrb[26].mxu0 %vm2049_vm5, %v2435_v57 }
0x1be4   :  { %3788 = vmatpush1.bf16.msra.mxu0 %v4518_v15  ;;  %2754 = vmatprep.mubr.f32.mxu0 %v4114_v11 }
0x1be5   :  { %3790 = vmatprep.subr.bf16.mxu0 %v4530_v54 }
0x1be8   :  { %3792 = vmatpush1.bf16.msra.mxu0 %v4538_v56 }
0x1be9   :  { %3794 = vmatprep.subr.bf16.mxu0 %v4548_v59 }
0x1bec   :  { %3796 = vmatpush1.bf16.msra.mxu0 %v4569_v3 }
0x1bed   :  { %3798 = vmatprep.subr.bf16.mxu0 %v4578_v9 }
0x1bf0   :  { %3800 = vmatpush1.bf16.msra.mxu0 %v4589_v14 }
0x1bf1   :  { %3818 = vmatprep.subr.bf16.mxu0 %v4513_v50 }
0x1cb6   :  { %v2504_v61 = vpop.f32.mrb[26].mxu0 }
0x1cb7   :  { %v2511_v62 = vrot.slane %v2504_v61, 2  ;;  %v2506_v63 = vpop.f32.mrb[27].mxu0 }
0x1cb8   :  { %v2512_v2 = vrot.slane %v2506_v63, 2 }
0x1cb9   :  { %v2515_v0 = vadd.f32 %v2511_v62, %v4628_v37 }
0x1cba   :  { %v2516_v5 = vadd.f32 %v2512_v2, %v4634_v43 }
0x1cbb   :  { %v3273_v1 = vmul.f32 -1.442695, %v2515_v0 }
0x1cbc   :  { %v3274_v50 = vmul.f32 -1.442695, %v2516_v5 }
0x1cbd   :  { %4020 = vpow2.f32 %v3273_v1 }
0x1cbe   :  { %4022 = vtanh.f32 %v2516_v5 }
0x1cc7   :  { %v4021_v6 = vpop.eup %4020 }
0x1cc8   :  { %v2520_v8 = vadd.f32 1.0, %v4021_v6  ;;  %v4023_v10 = vpop.eup %4022 }
0x1cca   :  { %4024 = vrcp.f32 %v2520_v8 }
0x1ccb   :  { %4026 = vpow2.f32 %v3274_v50 }
0x1cd4   :  { %v4025_v13 = vpop.eup %4024 }
0x1cd5   :  { %v2534_v16 = vmul.f32 %v4025_v13, %v4023_v10  ;;  %v2533_v17 = vmul.f32 %v4025_v13, %v2531_v12  ;;  %v4027_v19 = vpop.eup %4026 }
0x1cd6   :  { %v2527_v37 = vadd.f32 1.0, %v4027_v19 }
0x1cd7   :  { %2536 = vrot.lane.b32.xlu0 %v2534_v16, %s4115_s5 }
0x1cd8   :  { %4028 = vrcp.f32 %v2527_v37 }
0x1ce2   :  { %v4029_v43 = vpop.eup %4028 }
0x1d49   :  { %v2537_v20 = vpop.permute.xlu0 %2536 }
0x1d4a   :  { %v2539_v22 = vadd.f32 %v2537_v20, %v2533_v17 }
0x1d4c   :  { %4030 = vtanh.f32 %v2539_v22  ;;  %v2656_v18 = vrot.slane %v2539_v22, 6 }
0x1d56   :  { %v4031_v23 = vpop.eup %4030 }
0x1d57   :  { %v4696_v25 = vmul.f32 %v4031_v23, %v4029_v43 }
0x1d59   :  { %v2564_v26 = vrot.slane %v4696_v25, 6 }
0x1d5b   :  { %2565 = vrot.lane.b32.xlu1 %v2564_v26, %s4115_s5 }
0x1dcd   :  { %v2566_v27 = vpop.permute.xlu1 %2565 }
0x1dce   :  { %3275 = vmatmul.mubr.msk.f32.vlgmr.msra.gmra.mrb[20].mxu1 %vm2049_vm5, %v2566_v27 }
0x1dcf   :  { %3804 = vmatpush1.bf16.msra.mxu1 %v4518_v15  ;;  %2884 = vmatprep.mubr.f32.mxu1 %v4114_v11 }
0x1dd0   :  { %3806 = vmatprep.subr.bf16.mxu1 %v4530_v54 }
0x1dd3   :  { %3808 = vmatpush1.bf16.msra.mxu1 %v4538_v56 }
0x1dd4   :  { %3810 = vmatprep.subr.bf16.mxu1 %v4548_v59 }
0x1dd7   :  { %3812 = vmatpush1.bf16.msra.mxu1 %v4569_v3 }
0x1dd8   :  { %3814 = vmatprep.subr.bf16.mxu1 %v4578_v9 }
0x1ddb   :  { %3816 = vmatpush1.bf16.msra.mxu1 %v4589_v14 }
0x1ea1   :  { %v2635_v30 = vpop.f32.mrb[20].mxu1 }
0x1ea2   :  { %v2640_v34 = vadd.f32 %v2635_v30, %v4711_v28  ;;  %v2637_v35 = vpop.f32.mrb[21].mxu1 }
0x1ea3   :  { %v2641_v38 = vadd.f32 %v2637_v35, %v4716_v31 }
0x1ea4   :  { %v3276_v36 = vmul.f32 -1.442695, %v2640_v34 }
0x1ea5   :  { %v3277_v45 = vmul.f32 -1.442695, %v2641_v38 }
0x1ea6   :  { %4032 = vpow2.f32 %v3276_v36 }
0x1ea7   :  { %4034 = vtanh.f32 %v2641_v38 }
0x1eb0   :  { %v4033_v39 = vpop.eup %4032 }
0x1eb1   :  { %v2645_v40 = vadd.f32 1.0, %v4033_v39  ;;  %v4035_v41 = vpop.eup %4034 }
0x1eb3   :  { %4036 = vrcp.f32 %v2645_v40 }
0x1eb4   :  { %4038 = vpow2.f32 %v3277_v45 }
0x1ebd   :  { %v4037_v24 = vpop.eup %4036 }
0x1ebe   :  { %v2659_v58 = vmul.f32 %v4037_v24, %v4035_v41  ;;  %v2658_v44 = vmul.f32 %v4037_v24, %v2656_v18  ;;  %v4039_v46 = vpop.eup %4038 }
0x1ebf   :  { %v2652_v47 = vadd.f32 1.0, %v4039_v46 }
0x1ec0   :  { %2661 = vrot.lane.b32.xlu0 %v2659_v58, %s4115_s5 }
0x1ec1   :  { %4040 = vrcp.f32 %v2652_v47 }
0x1ecb   :  { %v4041_v60 = vpop.eup %4040 }
0x1f32   :  { %v2662_v48 = vpop.permute.xlu0 %2661 }
0x1f33   :  { %v2664_v42 = vadd.f32 %v2662_v48, %v2658_v44 }
0x1f35   :  { %4042 = vtanh.f32 %v2664_v42 }
0x1f3f   :  { %v4043_v21 = vpop.eup %4042 }
0x1f40   :  { %v2666_v49 = vmul.f32 %v4043_v21, %v4041_v60 }
0x1f42   :  { %2668 = vrot.lane.b32.xlu1 %v2666_v49, %s4115_s5 }
0x1fb4   :  { %v2669_v7 = vpop.permute.xlu1 %2668 }
0x1fb5   :  { %2671 = vst.msk [vmem:[#allocation4 + $0x8] sm:$0x3] %vm2156_vm6, %v2669_v7  ;;  %3278 = vmatmul.mubr.msk.f32.vlgmr.msra.gmra.mrb[28].mxu0 %vm2049_vm5, %v2669_v7 }
0x1fb6   :  { %3820 = vmatpush1.bf16.msra.mxu0 %v4518_v15  ;;  %3014 = vmatprep.mubr.f32.mxu0 %v4114_v11 }
0x1fb7   :  { %3822 = vmatprep.subr.bf16.mxu0 %v4530_v54 }
0x1fba   :  { %3824 = vmatpush1.bf16.msra.mxu0 %v4538_v56 }
0x1fbb   :  { %3826 = vmatprep.subr.bf16.mxu0 %v4548_v59 }
0x1fbe   :  { %3828 = vmatpush1.bf16.msra.mxu0 %v4569_v3  ;;  %v2783_v3 = vrot.slane %v2664_v42, 6 }
0x1fbf   :  { %3830 = vmatprep.subr.bf16.mxu0 %v4578_v9 }
0x1fc2   :  { %3832 = vmatpush1.bf16.msra.mxu0 %v4589_v14 }
0x2088   :  { %v2756_v4 = vpop.f32.mrb[28].mxu0 }
0x2089   :  { %v2763_v51 = vrot.slane %v2756_v4, 6  ;;  %v2758_v52 = vpop.f32.mrb[29].mxu0 }
0x208a   :  { %v2764_v11 = vrot.slane %v2758_v52, 6 }
0x208b   :  { %v2767_v53 = vadd.f32 %v2763_v51, %v4711_v28 }
0x208c   :  { %v2768_v54 = vadd.f32 %v2764_v11, %v4716_v31 }
0x208d   :  { %v3279_v15 = vmul.f32 -1.442695, %v2767_v53 }
0x208e   :  { %v3280_v14 = vmul.f32 -1.442695, %v2768_v54 }
0x208f   :  { %4044 = vpow2.f32 %v3279_v15  ;;  %v3062_v15 = vld [vmem:[%s4825_s9 + $0x8] sm:$0xff] }
0x2090   :  { %4046 = vtanh.f32 %v2768_v54  ;;  %v3064_v54 = vld [vmem:[%s4825_s9 + $0x18] sm:$0xff] }
0x2099   :  { %v4045_v32 = vpop.eup %4044 }
0x209a   :  { %v2772_v56 = vadd.f32 1.0, %v4045_v32  ;;  %v4047_v59 = vpop.eup %4046 }
0x209c   :  { %4048 = vrcp.f32 %v2772_v56 }
0x209d   :  { %4050 = vpow2.f32 %v3280_v14 }
0x20a6   :  { %v4049_v55 = vpop.eup %4048 }
0x20a7   :  { %v2786_v9 = vmul.f32 %v4049_v55, %v4047_v59  ;;  %v2785_v57 = vmul.f32 %v4049_v55, %v2783_v3  ;;  %v4051_v61 = vpop.eup %4050 }
0x20a8   :  { %v2779_v62 = vadd.f32 1.0, %v4051_v61  ;;  %v3067_v61 = vld [vmem:[%s4825_s9 + $0x30] sm:$0xff] }
0x20a9   :  { %2788 = vrot.lane.b32.xlu0 %v2786_v9, %s4115_s5  ;;  %v3065_v9 = vld [vmem:[%s4825_s9 + $0x20] sm:$0xff] }
0x20aa   :  { %4052 = vrcp.f32 %v2779_v62  ;;  %v3068_v62 = vld [vmem:[%s4825_s9 + $0x38] sm:$0xff] }
0x20b4   :  { %v4053_v1 = vpop.eup %4052 }
0x211b   :  { %v2789_v63 = vpop.permute.xlu0 %2788 }
0x211c   :  { %v2791_v0 = vadd.f32 %v2789_v63, %v2785_v57 }
0x211e   :  { %4054 = vtanh.f32 %v2791_v0  ;;  %v2913_v43 = vrot.slane %v2791_v0, 6  ;;  %v3845_v0 = vpack.c.bf16 %v3068_v62, %v3067_v61 }
0x2128   :  { %v4055_v2 = vpop.eup %4054 }
0x2129   :  { %v4734_v5 = vmul.f32 %v4055_v2, %v4053_v1 }
0x212b   :  { %v2815_v6 = vrot.slane %v4734_v5, 2 }
0x212d   :  { %2816 = vrot.lane.b32.xlu1 %v2815_v6, %s4115_s5 }
0x219f   :  { %v2817_v8 = vpop.permute.xlu1 %2816 }
0x21a0   :  { %3281 = vmatmul.mubr.msk.f32.vlgmr.msra.gmra.mrb[22].mxu1 %vm2049_vm5, %v2817_v8 }
0x2273   :  { %v2886_v10 = vpop.f32.mrb[22].mxu1 }
0x2274   :  { %v2893_v12 = vrot.slane %v2886_v10, 4  ;;  %v2888_v13 = vpop.f32.mrb[23].mxu1 }
0x2275   :  { %v2894_v50 = vrot.slane %v2888_v13, 4  ;;  %v3287_v13 = vld [vmem:[%s4826_s10] ss:$0 sm:$0xff] }
0x2276   :  { %v2897_v16 = vadd.f32 %v2893_v12, %v4711_v28 }
0x2277   :  { %v2898_v19 = vadd.f32 %v2894_v50, %v4716_v31 }
0x2278   :  { %v3282_v17 = vmul.f32 -1.442695, %v2897_v16 }
0x2279   :  { %v3283_v30 = vmul.f32 -1.442695, %v2898_v19 }
0x227a   :  { %4056 = vpow2.f32 %v3282_v17 }
0x227b   :  { %4058 = vtanh.f32 %v2898_v19 }
0x2284   :  { %v4057_v37 = vpop.eup %4056 }
0x2285   :  { %v2902_v20 = vadd.f32 1.0, %v4057_v37  ;;  %v4059_v22 = vpop.eup %4058 }
0x2287   :  { %4060 = vrcp.f32 %v2902_v20 }
0x2288   :  { %4062 = vpow2.f32 %v3283_v30  ;;  %v3180_v30 = vld [vmem:[%s4818_s2 + $0x8] sm:$0xff] }
0x2291   :  { %v4061_v23 = vpop.eup %4060 }
0x2292   :  { %v2916_v26 = vmul.f32 %v4061_v23, %v4059_v22  ;;  %v2915_v27 = vmul.f32 %v4061_v23, %v2913_v43  ;;  %v4063_v34 = vpop.eup %4062 }
0x2293   :  { %v2909_v35 = vadd.f32 1.0, %v4063_v34 }
0x2294   :  { %2918 = vrot.lane.b32.xlu0 %v2916_v26, %s4115_s5 }
0x2295   :  { %4064 = vrcp.f32 %v2909_v35  ;;  %v3179_v35 = vld [vmem:[%s4818_s2] sm:$0xff]  ;;  %s4118_s2 = smov [#allocation5]  }
0x229f   :  { %v4065_v39 = vpop.eup %4064 }
0x2306   :  { %v2919_v36 = vpop.permute.xlu0 %2918 }
0x2307   :  { %v2921_v38 = vadd.f32 %v2919_v36, %v2915_v27 }
0x2309   :  { %4066 = vtanh.f32 %v2921_v38  ;;  %v3043_v4 = vrot.slane %v2921_v38, 6 }
0x2313   :  { %v4067_v40 = vpop.eup %4066 }
0x2314   :  { %v2923_v41 = vmul.f32 %v4067_v40, %v4065_v39 }
0x2316   :  { %v2945_v18 = vrot.slane %v2923_v41, 4 }
0x2318   :  { %2946 = vrot.lane.b32.xlu1 %v2945_v18, %s4115_s5 }
0x231c   :  { %2281 = vrot.lane.b32.xlu1 %v4662_v29, %s4115_s5 }
0x2320   :  { %2543 = vrot.lane.b32.xlu1 %v4696_v25, %s4115_s5 }
0x2324   :  { %2925 = vrot.lane.b32.xlu1 %v2923_v41, %s4115_s5 }
0x238a   :  { %v2947_v24 = vpop.permute.xlu1 %2946 }
0x238b   :  { %3284 = vmatmul.mubr.msk.f32.vlgmr.msra.gmra.mrb[30].mxu0 %vm2049_vm5, %v2947_v24 }
0x238e   :  { %v2282_v58 = vpop.permute.xlu1 %2281 }
0x238f   :  { %2285 = vst.msk [vmem:[#allocation4] sm:$0xc] %vm2284_vm7, %v2282_v58 }
0x2392   :  { %v2544_v44 = vpop.permute.xlu1 %2543 }
0x2393   :  { %2547 = vst.msk [vmem:[#allocation4] sm:$0xc0] %vm2546_vm8, %v2544_v44 }
0x2396   :  { %v2926_v45 = vpop.permute.xlu1 %2925 }
0x2397   :  { %2928 = vst.msk [vmem:[#allocation4 + $0x8] sm:$0x30] %vm2415_vm9, %v2926_v45 }
0x245e   :  { %v3016_v29 = vpop.f32.mrb[30].mxu0 }
0x245f   :  { %v3023_v46 = vrot.slane %v3016_v29, 2  ;;  %v3018_v25 = vpop.f32.mrb[31].mxu0 }
0x2460   :  { %v3024_v42 = vrot.slane %v3018_v25, 2 }
0x2461   :  { %v3027_v47 = vadd.f32 %v3023_v46, %v4711_v28  ;;  %v3061_v28 = vld [vmem:[%s4825_s9] sm:$0xff] }
0x2462   :  { %v3028_v60 = vadd.f32 %v3024_v42, %v4716_v31  ;;  %v3063_v31 = vld [vmem:[%s4825_s9 + $0x10] sm:$0xff]  ;;  %v3833_v11 = vpack.c.bf16 %v3062_v15, %v3061_v28 }
0x2463   :  { %v3285_v48 = vmul.f32 -1.442695, %v3027_v47  ;;  %v3837_v32 = vpack.c.bf16 %v3064_v54, %v3063_v31 }
0x2464   :  { %3834 = vmatprep.subr.bf16.mxu1 %v3833_v11  ;;  %v3286_v56 = vmul.f32 -1.442695, %v3028_v60 }
0x2465   :  { %4068 = vpow2.f32 %v3285_v48  ;;  %3836 = vmatpush3.bf16.msra.mxu1 %v3833_v11 }
0x2466   :  { %4070 = vtanh.f32 %v3028_v60  ;;  %3838 = vmatprep.subr.bf16.mxu1 %v3837_v32 }
0x2469   :  { %3840 = vmatpush3.bf16.msra.mxu1 %v3837_v32 }
0x246f   :  { %v4069_v21 = vpop.eup %4068 }
0x2470   :  { %v3032_v49 = vadd.f32 1.0, %v4069_v21  ;;  %v4071_v7 = vpop.eup %4070 }
0x2472   :  { %4072 = vrcp.f32 %v3032_v49 }
0x2473   :  { %4074 = vpow2.f32 %v3286_v56 }
0x247c   :  { %v4073_v51 = vpop.eup %4072 }
0x247d   :  { %v3046_v52 = vmul.f32 %v4073_v51, %v4071_v7  ;;  %v3045_v53 = vmul.f32 %v4073_v51, %v3043_v4  ;;  %v4075_v59 = vpop.eup %4074 }
0x247e   :  { %v3039_v3 = vadd.f32 1.0, %v4075_v59 }
0x247f   :  { %3048 = vrot.lane.b32.xlu0 %v3046_v52, %s4115_s5 }
0x2480   :  { %4076 = vrcp.f32 %v3039_v3 }
0x2483   :  { %2412 = vrot.lane.b32.xlu0 %v4679_v33, %s4115_s5  ;;  %v3066_v33 = vld [vmem:[%s4825_s9 + $0x28] sm:$0xff] }
0x2484   :  { %v3841_v14 = vpack.c.bf16 %v3066_v33, %v3065_v9 }
0x2486   :  { %3842 = vmatprep.subr.bf16.mxu1 %v3841_v14 }
0x2487   :  { %2795 = vrot.lane.b32.xlu0 %v4734_v5, %s4115_s5  ;;  %3844 = vmatpush3.bf16.msra.mxu1 %v3841_v14 }
0x2488   :  { %3846 = vmatprep.subr.bf16.mxu1 %v3845_v0 }
0x248a   :  { %v4077_v2 = vpop.eup %4076 }
0x248b   :  { %3848 = vmatpush3.bf16.msra.mxu1 %v3845_v0 }
0x24f1   :  { %v3049_v55 = vpop.permute.xlu0 %3048 }
0x24f2   :  { %v3051_v57 = vadd.f32 %v3049_v55, %v3045_v53 }
0x24f4   :  { %4078 = vtanh.f32 %v3051_v57 }
0x24f5   :  { %v2413_v63 = vpop.permute.xlu0 %2412 }
0x24f6   :  { %2416 = vst.msk [vmem:[#allocation4] sm:$0x30] %vm2415_vm9, %v2413_v63 }
0x24f9   :  { %v2796_v1 = vpop.permute.xlu0 %2795 }
0x24fa   :  { %2798 = vst.msk [vmem:[#allocation4 + $0x8] sm:$0xc] %vm2284_vm7, %v2796_v1 }
0x24fd   :  { %v3059_v5 = vld [vmem:[#allocation4] sm:$0xff] }
0x24fe   :  { %v4079_v6 = vpop.eup %4078  ;;  %3594 = vmatprep.mubr.msk.f32.mxu1 %vm2049_vm5, %v3059_v5 }
0x24ff   :  { %v3053_v8 = vmul.f32 %v4079_v6, %v4077_v2 }
0x2501   :  { %3055 = vrot.lane.b32.xlu0 %v3053_v8, %s4115_s5 }
0x2573   :  { %v3056_v10 = vpop.permute.xlu0 %3055 }
0x2574   :  { %3058 = vst.msk [vmem:[#allocation4 + $0x8] sm:$0xc0] %vm2546_vm8, %v3056_v10 }
0x257b   :  { %v3060_v12 = vld [vmem:[#allocation4 + $0x8] sm:$0xff] }
0x257c   :  { %3595 = vmatmul.mubr.msk.f32.vlgmr.msra.gmra.mrb[24].mxu1 %vm2049_vm5, %v3060_v12 }
0x264f   :  { %v3596_v16 = vpop.f32.mrb[24].mxu1 }
0x2650   :  { %v3154_v17 = vadd.f32 %v3596_v16, %v3287_v13  ;;  %v3148_v50 = vpop.f32.mrb[25].mxu1 }
0x2651   :  { %v3149_v19 = vadd.f32 %v3287_v13, %v3148_v50 }
0x2652   :  { %3158 = vst [vmem:[%s4827_s11 + $0x8] sm:$0xff] %v3154_v17  ;;  %3161 = vmax.xlane.f32.xlu0 %v3154_v17  ;;  %v3182_v36 = vmul.f32 %v3180_v30, %v3154_v17 }
0x2653   :  { %3157 = vst [vmem:[%s4827_s11] sm:$0xff] %v3149_v19  ;;  %3159 = vmax.xlane.f32.xlu1 %v3149_v19  ;;  %v3181_v38 = vmul.f32 %v3179_v35, %v3149_v19  ;;  %s3208_s11 = sshll.u32 %s4118_s2, 4  ;;  %s3209_s11 = int_to_ptr.vmem [resolvable:$true] %s3208_s11 }
0x2654   :  { %s4088_s8 = scalar_lea.vmem %s3209_s11, 16  ;;  %s4092_s17 = scalar_lea.vmem %s3209_s11, 32 }
0x2655   :  { %p4089_p0 = scmp.ne.s32.totalorder %s3209_s11, %s4088_s8  ;;  %p4093_p1 = scmp.lt.s32.totalorder %s3209_s11, %s3209_s11 }
0x2656   :  { %p4094_p2 = scmp.lt.s32.totalorder %s4092_s17, %s4088_s8 }
0x2658   :  { %p4095_p3 = por %p4094_p2, %p4093_p1 }
0x265a   :  { %p4096_p4 = pnand %p4095_p3, %p4089_p0 }
0x26df   :  { %v3162_v37 = vpop.xlane.xlu0 %3161 }
0x26e0   :  { %v3164_v20 = vsub.f32 %v3154_v17, %v3162_v37  ;;  %v3160_v22 = vpop.xlane.xlu1 %3159 }
0x26e1   :  { %v3163_v43 = vsub.f32 %v3149_v19, %v3160_v22 }
0x26e2   :  { %v3167_v23 = vmul.f32 1.442695, %v3164_v20 }
0x26e3   :  { %v3165_v26 = vmul.f32 1.442695, %v3163_v43 }
0x26e4   :  { %4080 = vpow2.f32 %v3167_v23 }
0x26e5   :  { %4082 = vpow2.f32 %v3165_v26 }
0x26ee   :  { %v4081_v27 = vpop.eup %4080 }
0x26ef   :  { %v4083_v34 = vpop.eup %4082  ;;  %3171 = vadd.xlane.f32.xlu1 %v4081_v27 }
0x26f0   :  { %3169 = vadd.xlane.f32.xlu0 %v4083_v34 }
0x26f3   :  { %3185 = vadd.xlane.f32.xlu1 %v3182_v36 }
0x26f4   :  { %3183 = vadd.xlane.f32.xlu0 %v3181_v38 }
0x277c   :  { %v3172_v39 = vpop.xlane.xlu1 %3171 }
0x277d   :  { %4084 = vlog2.f32 %v3172_v39  ;;  %v3170_v40 = vpop.xlane.xlu0 %3169 }
0x277e   :  { %4086 = vlog2.f32 %v3170_v40 }
0x2780   :  { %v3186_v45 = vpop.xlane.xlu1 %3185 }
0x2781   :  { %v3184_v25 = vpop.xlane.xlu0 %3183 }
0x2787   :  { %v4085_v41 = vpop.eup %4084 }
0x2788   :  { %v4087_v18 = vpop.eup %4086  ;;  %v3176_v24 = vmul.f32 0.6931472, %v4085_v41 }
0x2789   :  { %v3174_v58 = vmul.f32 0.6931472, %v4087_v18 }
0x278a   :  { %v3178_v44 = vadd.f32 %v3176_v24, %v3162_v37 }
0x278b   :  { %v3177_v29 = vadd.f32 %v3174_v58, %v3160_v22 }
0x278c   :  { %v3188_v46 = vsub.f32 %v3178_v44, %v3186_v45 }
0x278d   :  { %v3187_v47 = vsub.f32 %v3177_v29, %v3184_v25 }
0x278f   :  { %v3189_v48 = vadd.f32 %v3188_v46, %v3187_v47 }
0x2791   :  { %v3190_v42 = vrot.slane %v3189_v48, 4 }
0x2793   :  { %v3191_v60 = vadd.f32 %v3190_v42, %v3189_v48 }
0x2795   :  { %v3192_v21 = vrot.slane %v3191_v60, 2 }
0x2797   :  { %v3193_v49 = vadd.f32 %v3192_v21, %v3191_v60 }
0x2799   :  { %v3194_v7 = vrot.slane %v3193_v49, 1 }
0x279b   :  { %v3195_v4 = vadd.f32 %v3194_v7, %v3193_v49 }
0x279d   :  { %v3197_v51 = vmul.f32 0.0625, %v3195_v4 }
0x279f   :  { %3199 = vst.msk [vmem:[#allocation5] sm:$0x1] %vm3198_vm10, %v3197_v51 }
0x27a0   :  { %4099 = shalt.err (!%p4096_p4)
}
0x27a1   :  { %s4100_s19 = scalar_lea.hbm %s4828_s12, 16 }
0x27a2   :  { %p4101_p5 = scmp.ne.s32.totalorder %s4828_s12, %s4100_s19  ;;  %p4104_p6 = scmp.lt.u32.totalorder %s4100_s19, %s4828_s12 }
0x27a4   :  { %p4106_p7 = pnand %p4104_p6, %p4101_p5 }
0x27a6   :  { %4109 = shalt.err (!%p4106_p7)
}
0x27a7   :  { %3211 = dma.vmem_to_hbm [thread:$0]  %s3209_s11, 16, %s4828_s12, [#allocation6]  }
0x27a8   :  { %4110 = dma.done.wait [#allocation6], 16  }
0x27a9   :  { %4111 = vsyncadd [#allocation6], 4294967280 }
0x27aa   :  { %3217 = vsyncpa [#allocation6], 1 }

</bundles_post_ra>
